<compile_context>
chip_gen: v7x
topology: tpu7x:2x2x1
jax: 0.10.0
libtpu: 0.0.40
codegen_flags: <defaults>
</compile_context>

<pallas_src>
import functools

import jax
import jax.numpy as jnp
from jax.experimental import pallas as pl
from jax.experimental.pallas import tpu as pltpu

TILE_B = 256      # batch rows per grid step
NSPLIT = 2        # independent sub-tiles per batch tile (hide MXU drain)
LANE = 128


def _round_up(n, m):
    return ((n + m - 1) // m) * m


def _pad_axis(a, axis, target):
    pad = target - a.shape[axis]
    if pad == 0:
        return a
    widths = [(0, 0)] * a.ndim
    widths[axis] = (0, pad)
    return jnp.pad(a, widths)


def mlp_kernel(x_ref, pe_ref, w_emb_ref, b_emb_ref, w1_ref, b1_ref,
               w_mid_ref, b_mid_ref, w_out_ref, b_out_ref, o_ref):
    tb = x_ref.shape[0]
    sub = tb // NSPLIT
    n_mid = w_mid_ref.shape[0]

    w_emb = w_emb_ref[...]          # bf16 (EMB_PAD, H)
    b_emb = b_emb_ref[...]          # f32  (1, H)
    w1 = w1_ref[...]                # bf16 (D_PAD, H)
    b1 = b1_ref[...]                # f32  (1, H)

    # l1 + time embedding, per independent sub-tile.
    acts = []
    t_embs = []
    for s in range(NSPLIT):
        sl = pl.ds(s * sub, sub)
        pe = pe_ref[sl, :]                                       # f32
        silu = pe * (1.0 / (1.0 + jnp.exp(-pe)))                 # SiLU (EUP exp)
        t_emb = jnp.dot(silu.astype(jnp.bfloat16), w_emb,
                        preferred_element_type=jnp.float32) + b_emb
        a = jnp.maximum(
            jnp.dot(x_ref[sl, :], w1,                            # x already bf16
                    preferred_element_type=jnp.float32) + b1, 0.0) + t_emb
        t_embs.append(t_emb)
        acts.append(a)

    # l2 .. l10 (unrolled).  For each layer the NSPLIT sub-tile matmuls are
    # independent, so the scheduler interleaves them and keeps the MXU fed.
    for i in range(n_mid):
        w_i = w_mid_ref[i]           # bf16 (H, H)
        b_i = b_mid_ref[i]           # f32  (1, H)
        for s in range(NSPLIT):
            acts[s] = jnp.maximum(
                jnp.dot(acts[s].astype(jnp.bfloat16), w_i,
                        preferred_element_type=jnp.float32) + b_i,
                0.0) + t_embs[s]

    # l11 (no activation) -> lane-dense (multiple-of-128) output store.
    w_out = w_out_ref[...]           # bf16 (H, D_PAD)
    b_out = b_out_ref[...]           # f32  (1, D_PAD)
    for s in range(NSPLIT):
        o_ref[pl.ds(s * sub, sub), :] = jnp.dot(
            acts[s].astype(jnp.bfloat16), w_out,
            preferred_element_type=jnp.float32) + b_out


def pos_encoding(t, channels):
    # matches MLP.pos_encoding (t is (B,), channels even)
    tt = t.astype(jnp.float32)[:, None]                                   # (B,1)
    inv_freq = 1.0 / (10000.0 ** (jnp.arange(0, channels, 2,
                                             dtype=jnp.float32) / channels))
    ang = tt * inv_freq[None, :]                                          # (B, C/2)
    return jnp.concatenate([jnp.sin(ang), jnp.cos(ang)], axis=-1)         # (B, C)


def pack_params(params):
    """Pad feature dims to multiples of 128 and cast matmul weights to bf16."""
    d_in, h = params["w1"].shape
    emb = params["w_emb"].shape[0]
    d_pad = _round_up(d_in, LANE)
    emb_pad = _round_up(emb, LANE)

    def pad2(w, r, c):
        return _pad_axis(_pad_axis(w, 0, r), 1, c)

    return dict(
        w_emb=pad2(params["w_emb"], emb_pad, h).astype(jnp.bfloat16),
        b_emb=params["b_emb"].astype(jnp.float32),
        w1=pad2(params["w1"], d_pad, h).astype(jnp.bfloat16),
        b1=params["b1"].astype(jnp.float32),
        w_mid=params["w_mid"].astype(jnp.bfloat16),
        b_mid=params["b_mid"].astype(jnp.float32),
        w_out=pad2(params["w_out"], h, d_pad).astype(jnp.bfloat16),
        b_out=_pad_axis(params["b_out"], 1, d_pad).astype(jnp.float32),
    )


@functools.partial(jax.jit, static_argnames=("data_dim", "emb_dim"))
def mlp_forward(x, t, kp, *, data_dim, emb_dim):
    assert TILE_B % NSPLIT == 0 and (TILE_B // NSPLIT) % 8 == 0
    B = x.shape[0]
    d_pad, h = kp["w1"].shape
    emb_pad = kp["w_emb"].shape[0]
    n_mid = kp["w_mid"].shape[0]

    b_pad = _round_up(B, TILE_B)
    n_tiles = b_pad // TILE_B

    # pos-encoding (tiny sin/cos glue) in plain JAX; pad to lane-dense shapes.
    pe = pos_encoding(t, emb_dim)                                    # (B, emb)
    pe = _pad_axis(_pad_axis(pe, 0, b_pad), 1, emb_pad)              # (Bp, Ep) f32
    xp = _pad_axis(_pad_axis(x.astype(jnp.float32), 0, b_pad), 1, d_pad)
    xp = xp.astype(jnp.bfloat16)   # bf16 streaming: halves activation DMA bytes

    const2 = lambda i: (0, 0)
    const3 = lambda i: (0, 0, 0)
    grid_spec = pltpu.PrefetchScalarGridSpec(
        num_scalar_prefetch=0,
        grid=(n_tiles,),
        in_specs=[
            pl.BlockSpec((TILE_B, d_pad), lambda i: (i, 0)),     # x tile (bf16)
            pl.BlockSpec((TILE_B, emb_pad), lambda i: (i, 0)),   # pos_enc tile
            pl.BlockSpec(kp["w_emb"].shape, const2),             # weights stay
            pl.BlockSpec(kp["b_emb"].shape, const2),             # VMEM-resident
            pl.BlockSpec(kp["w1"].shape, const2),
            pl.BlockSpec(kp["b1"].shape, const2),
            pl.BlockSpec(kp["w_mid"].shape, const3),
            pl.BlockSpec(kp["b_mid"].shape, const3),
            pl.BlockSpec(kp["w_out"].shape, const2),
            pl.BlockSpec(kp["b_out"].shape, const2),
        ],
        out_specs=pl.BlockSpec((TILE_B, d_pad), lambda i: (i, 0)),
    )

    flops = 2 * b_pad * (emb_pad * h + d_pad * h + n_mid * h * h + h * d_pad)
    weight_bytes = sum(
        int(kp[k].size) * kp[k].dtype.itemsize
        for k in ("w_emb", "b_emb", "w1", "b1", "w_mid", "b_mid",
                  "w_out", "b_out"))
    bytes_accessed = (int(xp.size) * xp.dtype.itemsize
                      + int(pe.size) * 4
                      + b_pad * d_pad * 4
                      + weight_bytes)

    out = pl.pallas_call(
        mlp_kernel,
        out_shape=jax.ShapeDtypeStruct((b_pad, d_pad), jnp.float32),
        grid_spec=grid_spec,
        compiler_params=pltpu.CompilerParams(
            dimension_semantics=("parallel",)),
        cost_estimate=pl.CostEstimate(
            flops=flops,
            transcendentals=b_pad * emb_pad,
            bytes_accessed=bytes_accessed),
    )(xp, pe,
      kp["w_emb"], kp["b_emb"], kp["w1"], kp["b1"],
      kp["w_mid"], kp["b_mid"], kp["w_out"], kp["b_out"])

    return out[:B, :data_dim]


def mlp_reference(x, t, params, matmul_dtype=jnp.float32):
    """Pure-JAX reference.  matmul_dtype=bf16 mirrors the kernel's numerics."""
    def dot(a, w):
        return jnp.dot(a.astype(matmul_dtype), w.astype(matmul_dtype),
                       preferred_element_type=jnp.float32)
    emb_dim = params["w_emb"].shape[0]
    pe = pos_encoding(t, emb_dim)
    silu = pe * (1.0 / (1.0 + jnp.exp(-pe)))
    t_emb = dot(silu, params["w_emb"]) + params["b_emb"]
    a = jnp.maximum(dot(x, params["w1"]) + params["b1"], 0.0) + t_emb
    for i in range(params["w_mid"].shape[0]):
        a = jnp.maximum(dot(a, params["w_mid"][i]) + params["b_mid"][i],
                        0.0) + t_emb
    return dot(a, params["w_out"]) + params["b_out"]


def init_params(key, data_dim, hidden_dim, emb_dim):
    # Deterministic PyTorch-style uniform(-1/sqrt(fan_in), 1/sqrt(fan_in)) init.
    def linear(k, fan_in, fan_out):
        kw, kb = jax.random.split(k)
        bound = 1.0 / jnp.sqrt(jnp.float32(fan_in))
        w = jax.random.uniform(kw, (fan_in, fan_out), jnp.float32, -bound, bound)
        b = jax.random.uniform(kb, (1, fan_out), jnp.float32, -bound, bound)
        return w, b

    ks = jax.random.split(key, 12)
    w1, b1 = linear(ks[0], data_dim, hidden_dim)
    w_mid, b_mid = [], []
    for i in range(9):                                     # l2 .. l10
        w, b = linear(ks[1 + i], hidden_dim, hidden_dim)
        w_mid.append(w)
        b_mid.append(b)
    w_out, b_out = linear(ks[10], hidden_dim, data_dim)    # l11
    w_emb, b_emb = linear(ks[11], emb_dim, hidden_dim)     # emb_layer Linear
    return dict(
        w1=w1, b1=b1,
        w_mid=jnp.stack(w_mid), b_mid=jnp.stack(b_mid),    # (9,H,H), (9,1,H)
        w_out=w_out, b_out=b_out,
        w_emb=w_emb, b_emb=b_emb,
    )


if __name__ == "__main__":
    # Small shapes consistent with the module (data_dim / hidden_dim / emb_dim),
    # with a batch large enough to exercise the batch grid + padding.
    B, DATA_DIM, HIDDEN_DIM, EMB_DIM = 500, 96, 128, 64

    key = jax.random.PRNGKey(0)
    k_params, k_x, k_t = jax.random.split(key, 3)

    params = init_params(k_params, DATA_DIM, HIDDEN_DIM, EMB_DIM)
    x = jax.random.normal(k_x, (B, DATA_DIM), dtype=jnp.float32)
    t = jax.random.randint(k_t, (B,), 0, 1000)              # diffusion timesteps

    kparams = pack_params(params)
    out = jax.block_until_ready(
        mlp_forward(x, t, kparams, data_dim=DATA_DIM, emb_dim=EMB_DIM))
    assert out.shape == (B, DATA_DIM)

    # Tight check vs. a reference with the same bf16-operand / f32-accumulate
    # matmul numerics as the kernel.
    ref_bf16 = jax.block_until_ready(
        mlp_reference(x, t, params, matmul_dtype=jnp.bfloat16))
    err_b = float(jnp.max(jnp.abs(out - ref_bf16)))
    assert jnp.allclose(out, ref_bf16, rtol=5e-3, atol=5e-3), (
        f"bf16-ref max abs err {err_b}")

    # Loose semantic check vs. the full-f32 PyTorch-equivalent forward pass.
    ref_f32 = jax.block_until_ready(
        mlp_reference(x, t, params, matmul_dtype=jnp.float32))
    err_f = float(jnp.max(jnp.abs(out - ref_f32)))
    assert jnp.allclose(out, ref_f32, rtol=5e-2, atol=5e-2), (
        f"f32-ref max abs err {err_f}")

    print("KERNEL_OK")
</pallas_src>

<mosaic_0001>
module attributes {stable_mosaic.version = 11 : i64} {
  func.func @mlp_kernel(%arg0: i32, %arg1: memref<256x128xbf16, #tpu.memory_space<vmem>>, %arg2: memref<256x128xf32, #tpu.memory_space<vmem>>, %arg3: memref<128x128xbf16, #tpu.memory_space<vmem>>, %arg4: memref<1x128xf32, #tpu.memory_space<vmem>>, %arg5: memref<128x128xbf16, #tpu.memory_space<vmem>>, %arg6: memref<1x128xf32, #tpu.memory_space<vmem>>, %arg7: memref<9x128x128xbf16, #tpu.memory_space<vmem>>, %arg8: memref<9x1x128xf32, #tpu.memory_space<vmem>>, %arg9: memref<128x128xbf16, #tpu.memory_space<vmem>>, %arg10: memref<1x128xf32, #tpu.memory_space<vmem>>, %arg11: memref<256x128xf32, #tpu.memory_space<vmem>>) attributes {dimension_semantics = [#tpu.dimension_semantics<parallel>], iteration_bounds = array<i64: 2>, scalar_prefetch = 0 : i64, scratch_operands = 0 : i64, tpu.core_type = #tpu.core_type<tc>, window_params = [{transform_indices = @transform_0, window_bounds = array<i64: 256, 128>}, {transform_indices = @transform_1, window_bounds = array<i64: 256, 128>}, {pipeline_mode = #tpu.pipeline_mode<synchronous>, transform_indices = @transform_2, window_bounds = array<i64: 128, 128>}, {pipeline_mode = #tpu.pipeline_mode<synchronous>, transform_indices = @transform_3, window_bounds = array<i64: 1, 128>}, {pipeline_mode = #tpu.pipeline_mode<synchronous>, transform_indices = @transform_4, window_bounds = array<i64: 128, 128>}, {pipeline_mode = #tpu.pipeline_mode<synchronous>, transform_indices = @transform_5, window_bounds = array<i64: 1, 128>}, {pipeline_mode = #tpu.pipeline_mode<synchronous>, transform_indices = @transform_6, window_bounds = array<i64: 9, 128, 128>}, {pipeline_mode = #tpu.pipeline_mode<synchronous>, transform_indices = @transform_7, window_bounds = array<i64: 9, 1, 128>}, {pipeline_mode = #tpu.pipeline_mode<synchronous>, transform_indices = @transform_8, window_bounds = array<i64: 128, 128>}, {pipeline_mode = #tpu.pipeline_mode<synchronous>, transform_indices = @transform_9, window_bounds = array<i64: 1, 128>}, {transform_indices = @transform_10, window_bounds = array<i64: 256, 128>}]} {
    %c0 = arith.constant 0 : index
    %c0_0 = arith.constant 0 : index
    %0 = vector.load %arg3[%c0, %c0_0] : memref<128x128xbf16, #tpu.memory_space<vmem>>, vector<128x128xbf16>
    %c0_1 = arith.constant 0 : index
    %c0_2 = arith.constant 0 : index
    %1 = vector.load %arg4[%c0_1, %c0_2] : memref<1x128xf32, #tpu.memory_space<vmem>>, vector<1x128xf32>
    %c0_3 = arith.constant 0 : index
    %c0_4 = arith.constant 0 : index
    %2 = vector.load %arg5[%c0_3, %c0_4] : memref<128x128xbf16, #tpu.memory_space<vmem>>, vector<128x128xbf16>
    %c0_5 = arith.constant 0 : index
    %c0_6 = arith.constant 0 : index
    %3 = vector.load %arg6[%c0_5, %c0_6] : memref<1x128xf32, #tpu.memory_space<vmem>>, vector<1x128xf32>
    %c0_7 = arith.constant 0 : index
    %c0_8 = arith.constant 0 : index
    %4 = vector.load %arg2[%c0_7, %c0_8] : memref<256x128xf32, #tpu.memory_space<vmem>>, vector<128x128xf32>
    %cst = arith.constant 0.000000e+00 : f32
    %5 = vector.broadcast %cst : f32 to vector<128x128xf32>
    %6 = arith.subf %5, %4 : vector<128x128xf32>
    %7 = math.exp %6 : vector<128x128xf32>
    %cst_9 = arith.constant 1.000000e+00 : f32
    %8 = vector.broadcast %cst_9 : f32 to vector<128x128xf32>
    %9 = arith.addf %8, %7 : vector<128x128xf32>
    %cst_10 = arith.constant 1.000000e+00 : f32
    %10 = vector.broadcast %cst_10 : f32 to vector<128x128xf32>
    %11 = arith.divf %10, %9 : vector<128x128xf32>
    %12 = arith.mulf %4, %11 : vector<128x128xf32>
    %13 = arith.truncf %12 : vector<128x128xf32> to vector<128x128xbf16>
    %cst_11 = arith.constant dense<0.000000e+00> : vector<128x128xf32>
    %14 = tpu.matmul %13, %0, %cst_11 {dimension_numbers = #tpu.dot_dimension_numbers<[1], [0], [0], [1], [0, 0, 1, 1], [], []>} : vector<128x128xbf16>, vector<128x128xbf16>, vector<128x128xf32> -> vector<128x128xf32>
    %15 = vector.broadcast %1 : vector<1x128xf32> to vector<128x128xf32>
    %16 = arith.addf %14, %15 : vector<128x128xf32>
    %c0_12 = arith.constant 0 : index
    %c0_13 = arith.constant 0 : index
    %17 = vector.load %arg1[%c0_12, %c0_13] : memref<256x128xbf16, #tpu.memory_space<vmem>>, vector<128x128xbf16>
    %cst_14 = arith.constant dense<0.000000e+00> : vector<128x128xf32>
    %18 = tpu.matmul %17, %2, %cst_14 {dimension_numbers = #tpu.dot_dimension_numbers<[1], [0], [0], [1], [0, 0, 1, 1], [], []>} : vector<128x128xbf16>, vector<128x128xbf16>, vector<128x128xf32> -> vector<128x128xf32>
    %19 = vector.broadcast %3 : vector<1x128xf32> to vector<128x128xf32>
    %20 = arith.addf %18, %19 : vector<128x128xf32>
    %cst_15 = arith.constant 0.000000e+00 : f32
    %21 = vector.broadcast %cst_15 : f32 to vector<128x128xf32>
    %22 = arith.maximumf %20, %21 : vector<128x128xf32>
    %23 = arith.addf %22, %16 : vector<128x128xf32>
    %c128 = arith.constant 128 : index
    %c0_16 = arith.constant 0 : index
    %24 = vector.load %arg2[%c128, %c0_16] : memref<256x128xf32, #tpu.memory_space<vmem>>, vector<128x128xf32>
    %cst_17 = arith.constant 0.000000e+00 : f32
    %25 = vector.broadcast %cst_17 : f32 to vector<128x128xf32>
    %26 = arith.subf %25, %24 : vector<128x128xf32>
    %27 = math.exp %26 : vector<128x128xf32>
    %cst_18 = arith.constant 1.000000e+00 : f32
    %28 = vector.broadcast %cst_18 : f32 to vector<128x128xf32>
    %29 = arith.addf %28, %27 : vector<128x128xf32>
    %cst_19 = arith.constant 1.000000e+00 : f32
    %30 = vector.broadcast %cst_19 : f32 to vector<128x128xf32>
    %31 = arith.divf %30, %29 : vector<128x128xf32>
    %32 = arith.mulf %24, %31 : vector<128x128xf32>
    %33 = arith.truncf %32 : vector<128x128xf32> to vector<128x128xbf16>
    %cst_20 = arith.constant dense<0.000000e+00> : vector<128x128xf32>
    %34 = tpu.matmul %33, %0, %cst_20 {dimension_numbers = #tpu.dot_dimension_numbers<[1], [0], [0], [1], [0, 0, 1, 1], [], []>} : vector<128x128xbf16>, vector<128x128xbf16>, vector<128x128xf32> -> vector<128x128xf32>
    %35 = vector.broadcast %1 : vector<1x128xf32> to vector<128x128xf32>
    %36 = arith.addf %34, %35 : vector<128x128xf32>
    %c128_21 = arith.constant 128 : index
    %c0_22 = arith.constant 0 : index
    %37 = vector.load %arg1[%c128_21, %c0_22] : memref<256x128xbf16, #tpu.memory_space<vmem>>, vector<128x128xbf16>
    %cst_23 = arith.constant dense<0.000000e+00> : vector<128x128xf32>
    %38 = tpu.matmul %37, %2, %cst_23 {dimension_numbers = #tpu.dot_dimension_numbers<[1], [0], [0], [1], [0, 0, 1, 1], [], []>} : vector<128x128xbf16>, vector<128x128xbf16>, vector<128x128xf32> -> vector<128x128xf32>
    %39 = vector.broadcast %3 : vector<1x128xf32> to vector<128x128xf32>
    %40 = arith.addf %38, %39 : vector<128x128xf32>
    %cst_24 = arith.constant 0.000000e+00 : f32
    %41 = vector.broadcast %cst_24 : f32 to vector<128x128xf32>
    %42 = arith.maximumf %40, %41 : vector<128x128xf32>
    %43 = arith.addf %42, %36 : vector<128x128xf32>
    %c0_25 = arith.constant 0 : index
    %c0_26 = arith.constant 0 : index
    %c0_27 = arith.constant 0 : index
    %44 = vector.load %arg7[%c0_25, %c0_26, %c0_27] : memref<9x128x128xbf16, #tpu.memory_space<vmem>>, vector<1x128x128xbf16>
    %45 = vector.shape_cast %44 : vector<1x128x128xbf16> to vector<128x128xbf16>
    %c0_28 = arith.constant 0 : index
    %c0_29 = arith.constant 0 : index
    %c0_30 = arith.constant 0 : index
    %46 = vector.load %arg8[%c0_28, %c0_29, %c0_30] : memref<9x1x128xf32, #tpu.memory_space<vmem>>, vector<1x1x128xf32>
    %47 = vector.shape_cast %46 : vector<1x1x128xf32> to vector<1x128xf32>
    %48 = arith.truncf %23 : vector<128x128xf32> to vector<128x128xbf16>
    %cst_31 = arith.constant dense<0.000000e+00> : vector<128x128xf32>
    %49 = tpu.matmul %48, %45, %cst_31 {dimension_numbers = #tpu.dot_dimension_numbers<[1], [0], [0], [1], [0, 0, 1, 1], [], []>} : vector<128x128xbf16>, vector<128x128xbf16>, vector<128x128xf32> -> vector<128x128xf32>
    %50 = vector.broadcast %47 : vector<1x128xf32> to vector<128x128xf32>
    %51 = arith.addf %49, %50 : vector<128x128xf32>
    %cst_32 = arith.constant 0.000000e+00 : f32
    %52 = vector.broadcast %cst_32 : f32 to vector<128x128xf32>
    %53 = arith.maximumf %51, %52 : vector<128x128xf32>
    %54 = arith.addf %53, %16 : vector<128x128xf32>
    %55 = arith.truncf %43 : vector<128x128xf32> to vector<128x128xbf16>
    %cst_33 = arith.constant dense<0.000000e+00> : vector<128x128xf32>
    %56 = tpu.matmul %55, %45, %cst_33 {dimension_numbers = #tpu.dot_dimension_numbers<[1], [0], [0], [1], [0, 0, 1, 1], [], []>} : vector<128x128xbf16>, vector<128x128xbf16>, vector<128x128xf32> -> vector<128x128xf32>
    %57 = vector.broadcast %47 : vector<1x128xf32> to vector<128x128xf32>
    %58 = arith.addf %56, %57 : vector<128x128xf32>
    %cst_34 = arith.constant 0.000000e+00 : f32
    %59 = vector.broadcast %cst_34 : f32 to vector<128x128xf32>
    %60 = arith.maximumf %58, %59 : vector<128x128xf32>
    %61 = arith.addf %60, %36 : vector<128x128xf32>
    %c1 = arith.constant 1 : index
    %c0_35 = arith.constant 0 : index
    %c0_36 = arith.constant 0 : index
    %62 = vector.load %arg7[%c1, %c0_35, %c0_36] : memref<9x128x128xbf16, #tpu.memory_space<vmem>>, vector<1x128x128xbf16>
    %63 = vector.shape_cast %62 : vector<1x128x128xbf16> to vector<128x128xbf16>
    %c1_37 = arith.constant 1 : index
    %c0_38 = arith.constant 0 : index
    %c0_39 = arith.constant 0 : index
    %64 = vector.load %arg8[%c1_37, %c0_38, %c0_39] : memref<9x1x128xf32, #tpu.memory_space<vmem>>, vector<1x1x128xf32>
    %65 = vector.shape_cast %64 : vector<1x1x128xf32> to vector<1x128xf32>
    %66 = arith.truncf %54 : vector<128x128xf32> to vector<128x128xbf16>
    %cst_40 = arith.constant dense<0.000000e+00> : vector<128x128xf32>
    %67 = tpu.matmul %66, %63, %cst_40 {dimension_numbers = #tpu.dot_dimension_numbers<[1], [0], [0], [1], [0, 0, 1, 1], [], []>} : vector<128x128xbf16>, vector<128x128xbf16>, vector<128x128xf32> -> vector<128x128xf32>
    %68 = vector.broadcast %65 : vector<1x128xf32> to vector<128x128xf32>
    %69 = arith.addf %67, %68 : vector<128x128xf32>
    %cst_41 = arith.constant 0.000000e+00 : f32
    %70 = vector.broadcast %cst_41 : f32 to vector<128x128xf32>
    %71 = arith.maximumf %69, %70 : vector<128x128xf32>
    %72 = arith.addf %71, %16 : vector<128x128xf32>
    %73 = arith.truncf %61 : vector<128x128xf32> to vector<128x128xbf16>
    %cst_42 = arith.constant dense<0.000000e+00> : vector<128x128xf32>
    %74 = tpu.matmul %73, %63, %cst_42 {dimension_numbers = #tpu.dot_dimension_numbers<[1], [0], [0], [1], [0, 0, 1, 1], [], []>} : vector<128x128xbf16>, vector<128x128xbf16>, vector<128x128xf32> -> vector<128x128xf32>
    %75 = vector.broadcast %65 : vector<1x128xf32> to vector<128x128xf32>
    %76 = arith.addf %74, %75 : vector<128x128xf32>
    %cst_43 = arith.constant 0.000000e+00 : f32
    %77 = vector.broadcast %cst_43 : f32 to vector<128x128xf32>
    %78 = arith.maximumf %76, %77 : vector<128x128xf32>
    %79 = arith.addf %78, %36 : vector<128x128xf32>
    %c2 = arith.constant 2 : index
    %c0_44 = arith.constant 0 : index
    %c0_45 = arith.constant 0 : index
    %80 = vector.load %arg7[%c2, %c0_44, %c0_45] : memref<9x128x128xbf16, #tpu.memory_space<vmem>>, vector<1x128x128xbf16>
    %81 = vector.shape_cast %80 : vector<1x128x128xbf16> to vector<128x128xbf16>
    %c2_46 = arith.constant 2 : index
    %c0_47 = arith.constant 0 : index
    %c0_48 = arith.constant 0 : index
    %82 = vector.load %arg8[%c2_46, %c0_47, %c0_48] : memref<9x1x128xf32, #tpu.memory_space<vmem>>, vector<1x1x128xf32>
    %83 = vector.shape_cast %82 : vector<1x1x128xf32> to vector<1x128xf32>
    %84 = arith.truncf %72 : vector<128x128xf32> to vector<128x128xbf16>
    %cst_49 = arith.constant dense<0.000000e+00> : vector<128x128xf32>
    %85 = tpu.matmul %84, %81, %cst_49 {dimension_numbers = #tpu.dot_dimension_numbers<[1], [0], [0], [1], [0, 0, 1, 1], [], []>} : vector<128x128xbf16>, vector<128x128xbf16>, vector<128x128xf32> -> vector<128x128xf32>
    %86 = vector.broadcast %83 : vector<1x128xf32> to vector<128x128xf32>
    %87 = arith.addf %85, %86 : vector<128x128xf32>
    %cst_50 = arith.constant 0.000000e+00 : f32
    %88 = vector.broadcast %cst_50 : f32 to vector<128x128xf32>
    %89 = arith.maximumf %87, %88 : vector<128x128xf32>
    %90 = arith.addf %89, %16 : vector<128x128xf32>
    %91 = arith.truncf %79 : vector<128x128xf32> to vector<128x128xbf16>
    %cst_51 = arith.constant dense<0.000000e+00> : vector<128x128xf32>
    %92 = tpu.matmul %91, %81, %cst_51 {dimension_numbers = #tpu.dot_dimension_numbers<[1], [0], [0], [1], [0, 0, 1, 1], [], []>} : vector<128x128xbf16>, vector<128x128xbf16>, vector<128x128xf32> -> vector<128x128xf32>
    %93 = vector.broadcast %83 : vector<1x128xf32> to vector<128x128xf32>
    %94 = arith.addf %92, %93 : vector<128x128xf32>
    %cst_52 = arith.constant 0.000000e+00 : f32
    %95 = vector.broadcast %cst_52 : f32 to vector<128x128xf32>
    %96 = arith.maximumf %94, %95 : vector<128x128xf32>
    %97 = arith.addf %96, %36 : vector<128x128xf32>
    %c3 = arith.constant 3 : index
    %c0_53 = arith.constant 0 : index
    %c0_54 = arith.constant 0 : index
    %98 = vector.load %arg7[%c3, %c0_53, %c0_54] : memref<9x128x128xbf16, #tpu.memory_space<vmem>>, vector<1x128x128xbf16>
    %99 = vector.shape_cast %98 : vector<1x128x128xbf16> to vector<128x128xbf16>
    %c3_55 = arith.constant 3 : index
    %c0_56 = arith.constant 0 : index
    %c0_57 = arith.constant 0 : index
    %100 = vector.load %arg8[%c3_55, %c0_56, %c0_57] : memref<9x1x128xf32, #tpu.memory_space<vmem>>, vector<1x1x128xf32>
    %101 = vector.shape_cast %100 : vector<1x1x128xf32> to vector<1x128xf32>
    %102 = arith.truncf %90 : vector<128x128xf32> to vector<128x128xbf16>
    %cst_58 = arith.constant dense<0.000000e+00> : vector<128x128xf32>
    %103 = tpu.matmul %102, %99, %cst_58 {dimension_numbers = #tpu.dot_dimension_numbers<[1], [0], [0], [1], [0, 0, 1, 1], [], []>} : vector<128x128xbf16>, vector<128x128xbf16>, vector<128x128xf32> -> vector<128x128xf32>
    %104 = vector.broadcast %101 : vector<1x128xf32> to vector<128x128xf32>
    %105 = arith.addf %103, %104 : vector<128x128xf32>
    %cst_59 = arith.constant 0.000000e+00 : f32
    %106 = vector.broadcast %cst_59 : f32 to vector<128x128xf32>
    %107 = arith.maximumf %105, %106 : vector<128x128xf32>
    %108 = arith.addf %107, %16 : vector<128x128xf32>
    %109 = arith.truncf %97 : vector<128x128xf32> to vector<128x128xbf16>
    %cst_60 = arith.constant dense<0.000000e+00> : vector<128x128xf32>
    %110 = tpu.matmul %109, %99, %cst_60 {dimension_numbers = #tpu.dot_dimension_numbers<[1], [0], [0], [1], [0, 0, 1, 1], [], []>} : vector<128x128xbf16>, vector<128x128xbf16>, vector<128x128xf32> -> vector<128x128xf32>
    %111 = vector.broadcast %101 : vector<1x128xf32> to vector<128x128xf32>
    %112 = arith.addf %110, %111 : vector<128x128xf32>
    %cst_61 = arith.constant 0.000000e+00 : f32
    %113 = vector.broadcast %cst_61 : f32 to vector<128x128xf32>
    %114 = arith.maximumf %112, %113 : vector<128x128xf32>
    %115 = arith.addf %114, %36 : vector<128x128xf32>
    %c4 = arith.constant 4 : index
    %c0_62 = arith.constant 0 : index
    %c0_63 = arith.constant 0 : index
    %116 = vector.load %arg7[%c4, %c0_62, %c0_63] : memref<9x128x128xbf16, #tpu.memory_space<vmem>>, vector<1x128x128xbf16>
    %117 = vector.shape_cast %116 : vector<1x128x128xbf16> to vector<128x128xbf16>
    %c4_64 = arith.constant 4 : index
    %c0_65 = arith.constant 0 : index
    %c0_66 = arith.constant 0 : index
    %118 = vector.load %arg8[%c4_64, %c0_65, %c0_66] : memref<9x1x128xf32, #tpu.memory_space<vmem>>, vector<1x1x128xf32>
    %119 = vector.shape_cast %118 : vector<1x1x128xf32> to vector<1x128xf32>
    %120 = arith.truncf %108 : vector<128x128xf32> to vector<128x128xbf16>
    %cst_67 = arith.constant dense<0.000000e+00> : vector<128x128xf32>
    %121 = tpu.matmul %120, %117, %cst_67 {dimension_numbers = #tpu.dot_dimension_numbers<[1], [0], [0], [1], [0, 0, 1, 1], [], []>} : vector<128x128xbf16>, vector<128x128xbf16>, vector<128x128xf32> -> vector<128x128xf32>
    %122 = vector.broadcast %119 : vector<1x128xf32> to vector<128x128xf32>
    %123 = arith.addf %121, %122 : vector<128x128xf32>
    %cst_68 = arith.constant 0.000000e+00 : f32
    %124 = vector.broadcast %cst_68 : f32 to vector<128x128xf32>
    %125 = arith.maximumf %123, %124 : vector<128x128xf32>
    %126 = arith.addf %125, %16 : vector<128x128xf32>
    %127 = arith.truncf %115 : vector<128x128xf32> to vector<128x128xbf16>
    %cst_69 = arith.constant dense<0.000000e+00> : vector<128x128xf32>
    %128 = tpu.matmul %127, %117, %cst_69 {dimension_numbers = #tpu.dot_dimension_numbers<[1], [0], [0], [1], [0, 0, 1, 1], [], []>} : vector<128x128xbf16>, vector<128x128xbf16>, vector<128x128xf32> -> vector<128x128xf32>
    %129 = vector.broadcast %119 : vector<1x128xf32> to vector<128x128xf32>
    %130 = arith.addf %128, %129 : vector<128x128xf32>
    %cst_70 = arith.constant 0.000000e+00 : f32
    %131 = vector.broadcast %cst_70 : f32 to vector<128x128xf32>
    %132 = arith.maximumf %130, %131 : vector<128x128xf32>
    %133 = arith.addf %132, %36 : vector<128x128xf32>
    %c5 = arith.constant 5 : index
    %c0_71 = arith.constant 0 : index
    %c0_72 = arith.constant 0 : index
    %134 = vector.load %arg7[%c5, %c0_71, %c0_72] : memref<9x128x128xbf16, #tpu.memory_space<vmem>>, vector<1x128x128xbf16>
    %135 = vector.shape_cast %134 : vector<1x128x128xbf16> to vector<128x128xbf16>
    %c5_73 = arith.constant 5 : index
    %c0_74 = arith.constant 0 : index
    %c0_75 = arith.constant 0 : index
    %136 = vector.load %arg8[%c5_73, %c0_74, %c0_75] : memref<9x1x128xf32, #tpu.memory_space<vmem>>, vector<1x1x128xf32>
    %137 = vector.shape_cast %136 : vector<1x1x128xf32> to vector<1x128xf32>
    %138 = arith.truncf %126 : vector<128x128xf32> to vector<128x128xbf16>
    %cst_76 = arith.constant dense<0.000000e+00> : vector<128x128xf32>
    %139 = tpu.matmul %138, %135, %cst_76 {dimension_numbers = #tpu.dot_dimension_numbers<[1], [0], [0], [1], [0, 0, 1, 1], [], []>} : vector<128x128xbf16>, vector<128x128xbf16>, vector<128x128xf32> -> vector<128x128xf32>
    %140 = vector.broadcast %137 : vector<1x128xf32> to vector<128x128xf32>
    %141 = arith.addf %139, %140 : vector<128x128xf32>
    %cst_77 = arith.constant 0.000000e+00 : f32
    %142 = vector.broadcast %cst_77 : f32 to vector<128x128xf32>
    %143 = arith.maximumf %141, %142 : vector<128x128xf32>
    %144 = arith.addf %143, %16 : vector<128x128xf32>
    %145 = arith.truncf %133 : vector<128x128xf32> to vector<128x128xbf16>
    %cst_78 = arith.constant dense<0.000000e+00> : vector<128x128xf32>
    %146 = tpu.matmul %145, %135, %cst_78 {dimension_numbers = #tpu.dot_dimension_numbers<[1], [0], [0], [1], [0, 0, 1, 1], [], []>} : vector<128x128xbf16>, vector<128x128xbf16>, vector<128x128xf32> -> vector<128x128xf32>
    %147 = vector.broadcast %137 : vector<1x128xf32> to vector<128x128xf32>
    %148 = arith.addf %146, %147 : vector<128x128xf32>
    %cst_79 = arith.constant 0.000000e+00 : f32
    %149 = vector.broadcast %cst_79 : f32 to vector<128x128xf32>
    %150 = arith.maximumf %148, %149 : vector<128x128xf32>
    %151 = arith.addf %150, %36 : vector<128x128xf32>
    %c6 = arith.constant 6 : index
    %c0_80 = arith.constant 0 : index
    %c0_81 = arith.constant 0 : index
    %152 = vector.load %arg7[%c6, %c0_80, %c0_81] : memref<9x128x128xbf16, #tpu.memory_space<vmem>>, vector<1x128x128xbf16>
    %153 = vector.shape_cast %152 : vector<1x128x128xbf16> to vector<128x128xbf16>
    %c6_82 = arith.constant 6 : index
    %c0_83 = arith.constant 0 : index
    %c0_84 = arith.constant 0 : index
    %154 = vector.load %arg8[%c6_82, %c0_83, %c0_84] : memref<9x1x128xf32, #tpu.memory_space<vmem>>, vector<1x1x128xf32>
    %155 = vector.shape_cast %154 : vector<1x1x128xf32> to vector<1x128xf32>
    %156 = arith.truncf %144 : vector<128x128xf32> to vector<128x128xbf16>
    %cst_85 = arith.constant dense<0.000000e+00> : vector<128x128xf32>
    %157 = tpu.matmul %156, %153, %cst_85 {dimension_numbers = #tpu.dot_dimension_numbers<[1], [0], [0], [1], [0, 0, 1, 1], [], []>} : vector<128x128xbf16>, vector<128x128xbf16>, vector<128x128xf32> -> vector<128x128xf32>
    %158 = vector.broadcast %155 : vector<1x128xf32> to vector<128x128xf32>
    %159 = arith.addf %157, %158 : vector<128x128xf32>
    %cst_86 = arith.constant 0.000000e+00 : f32
    %160 = vector.broadcast %cst_86 : f32 to vector<128x128xf32>
    %161 = arith.maximumf %159, %160 : vector<128x128xf32>
    %162 = arith.addf %161, %16 : vector<128x128xf32>
    %163 = arith.truncf %151 : vector<128x128xf32> to vector<128x128xbf16>
    %cst_87 = arith.constant dense<0.000000e+00> : vector<128x128xf32>
    %164 = tpu.matmul %163, %153, %cst_87 {dimension_numbers = #tpu.dot_dimension_numbers<[1], [0], [0], [1], [0, 0, 1, 1], [], []>} : vector<128x128xbf16>, vector<128x128xbf16>, vector<128x128xf32> -> vector<128x128xf32>
    %165 = vector.broadcast %155 : vector<1x128xf32> to vector<128x128xf32>
    %166 = arith.addf %164, %165 : vector<128x128xf32>
    %cst_88 = arith.constant 0.000000e+00 : f32
    %167 = vector.broadcast %cst_88 : f32 to vector<128x128xf32>
    %168 = arith.maximumf %166, %167 : vector<128x128xf32>
    %169 = arith.addf %168, %36 : vector<128x128xf32>
    %c7 = arith.constant 7 : index
    %c0_89 = arith.constant 0 : index
    %c0_90 = arith.constant 0 : index
    %170 = vector.load %arg7[%c7, %c0_89, %c0_90] : memref<9x128x128xbf16, #tpu.memory_space<vmem>>, vector<1x128x128xbf16>
    %171 = vector.shape_cast %170 : vector<1x128x128xbf16> to vector<128x128xbf16>
    %c7_91 = arith.constant 7 : index
    %c0_92 = arith.constant 0 : index
    %c0_93 = arith.constant 0 : index
    %172 = vector.load %arg8[%c7_91, %c0_92, %c0_93] : memref<9x1x128xf32, #tpu.memory_space<vmem>>, vector<1x1x128xf32>
    %173 = vector.shape_cast %172 : vector<1x1x128xf32> to vector<1x128xf32>
    %174 = arith.truncf %162 : vector<128x128xf32> to vector<128x128xbf16>
    %cst_94 = arith.constant dense<0.000000e+00> : vector<128x128xf32>
    %175 = tpu.matmul %174, %171, %cst_94 {dimension_numbers = #tpu.dot_dimension_numbers<[1], [0], [0], [1], [0, 0, 1, 1], [], []>} : vector<128x128xbf16>, vector<128x128xbf16>, vector<128x128xf32> -> vector<128x128xf32>
    %176 = vector.broadcast %173 : vector<1x128xf32> to vector<128x128xf32>
    %177 = arith.addf %175, %176 : vector<128x128xf32>
    %cst_95 = arith.constant 0.000000e+00 : f32
    %178 = vector.broadcast %cst_95 : f32 to vector<128x128xf32>
    %179 = arith.maximumf %177, %178 : vector<128x128xf32>
    %180 = arith.addf %179, %16 : vector<128x128xf32>
    %181 = arith.truncf %169 : vector<128x128xf32> to vector<128x128xbf16>
    %cst_96 = arith.constant dense<0.000000e+00> : vector<128x128xf32>
    %182 = tpu.matmul %181, %171, %cst_96 {dimension_numbers = #tpu.dot_dimension_numbers<[1], [0], [0], [1], [0, 0, 1, 1], [], []>} : vector<128x128xbf16>, vector<128x128xbf16>, vector<128x128xf32> -> vector<128x128xf32>
    %183 = vector.broadcast %173 : vector<1x128xf32> to vector<128x128xf32>
    %184 = arith.addf %182, %183 : vector<128x128xf32>
    %cst_97 = arith.constant 0.000000e+00 : f32
    %185 = vector.broadcast %cst_97 : f32 to vector<128x128xf32>
    %186 = arith.maximumf %184, %185 : vector<128x128xf32>
    %187 = arith.addf %186, %36 : vector<128x128xf32>
    %c8 = arith.constant 8 : index
    %c0_98 = arith.constant 0 : index
    %c0_99 = arith.constant 0 : index
    %188 = vector.load %arg7[%c8, %c0_98, %c0_99] : memref<9x128x128xbf16, #tpu.memory_space<vmem>>, vector<1x128x128xbf16>
    %189 = vector.shape_cast %188 : vector<1x128x128xbf16> to vector<128x128xbf16>
    %c8_100 = arith.constant 8 : index
    %c0_101 = arith.constant 0 : index
    %c0_102 = arith.constant 0 : index
    %190 = vector.load %arg8[%c8_100, %c0_101, %c0_102] : memref<9x1x128xf32, #tpu.memory_space<vmem>>, vector<1x1x128xf32>
    %191 = vector.shape_cast %190 : vector<1x1x128xf32> to vector<1x128xf32>
    %192 = arith.truncf %180 : vector<128x128xf32> to vector<128x128xbf16>
    %cst_103 = arith.constant dense<0.000000e+00> : vector<128x128xf32>
    %193 = tpu.matmul %192, %189, %cst_103 {dimension_numbers = #tpu.dot_dimension_numbers<[1], [0], [0], [1], [0, 0, 1, 1], [], []>} : vector<128x128xbf16>, vector<128x128xbf16>, vector<128x128xf32> -> vector<128x128xf32>
    %194 = vector.broadcast %191 : vector<1x128xf32> to vector<128x128xf32>
    %195 = arith.addf %193, %194 : vector<128x128xf32>
    %cst_104 = arith.constant 0.000000e+00 : f32
    %196 = vector.broadcast %cst_104 : f32 to vector<128x128xf32>
    %197 = arith.maximumf %195, %196 : vector<128x128xf32>
    %198 = arith.addf %197, %16 : vector<128x128xf32>
    %199 = arith.truncf %187 : vector<128x128xf32> to vector<128x128xbf16>
    %cst_105 = arith.constant dense<0.000000e+00> : vector<128x128xf32>
    %200 = tpu.matmul %199, %189, %cst_105 {dimension_numbers = #tpu.dot_dimension_numbers<[1], [0], [0], [1], [0, 0, 1, 1], [], []>} : vector<128x128xbf16>, vector<128x128xbf16>, vector<128x128xf32> -> vector<128x128xf32>
    %201 = vector.broadcast %191 : vector<1x128xf32> to vector<128x128xf32>
    %202 = arith.addf %200, %201 : vector<128x128xf32>
    %cst_106 = arith.constant 0.000000e+00 : f32
    %203 = vector.broadcast %cst_106 : f32 to vector<128x128xf32>
    %204 = arith.maximumf %202, %203 : vector<128x128xf32>
    %205 = arith.addf %204, %36 : vector<128x128xf32>
    %c0_107 = arith.constant 0 : index
    %c0_108 = arith.constant 0 : index
    %206 = vector.load %arg9[%c0_107, %c0_108] : memref<128x128xbf16, #tpu.memory_space<vmem>>, vector<128x128xbf16>
    %c0_109 = arith.constant 0 : index
    %c0_110 = arith.constant 0 : index
    %207 = vector.load %arg10[%c0_109, %c0_110] : memref<1x128xf32, #tpu.memory_space<vmem>>, vector<1x128xf32>
    %208 = arith.truncf %198 : vector<128x128xf32> to vector<128x128xbf16>
    %cst_111 = arith.constant dense<0.000000e+00> : vector<128x128xf32>
    %209 = tpu.matmul %208, %206, %cst_111 {dimension_numbers = #tpu.dot_dimension_numbers<[1], [0], [0], [1], [0, 0, 1, 1], [], []>} : vector<128x128xbf16>, vector<128x128xbf16>, vector<128x128xf32> -> vector<128x128xf32>
    %210 = vector.broadcast %207 : vector<1x128xf32> to vector<128x128xf32>
    %211 = arith.addf %209, %210 : vector<128x128xf32>
    %c0_112 = arith.constant 0 : index
    %c0_113 = arith.constant 0 : index
    %212 = vector.load %arg11[%c0_112, %c0_113] : memref<256x128xf32, #tpu.memory_space<vmem>>, vector<128x128xf32>
    tpu.vector_store %arg11[%c0_112, %c0_113], %211 {strides = array<i32>} : memref<256x128xf32, #tpu.memory_space<vmem>>, vector<128x128xf32>,
    %213 = arith.truncf %205 : vector<128x128xf32> to vector<128x128xbf16>
    %cst_114 = arith.constant dense<0.000000e+00> : vector<128x128xf32>
    %214 = tpu.matmul %213, %206, %cst_114 {dimension_numbers = #tpu.dot_dimension_numbers<[1], [0], [0], [1], [0, 0, 1, 1], [], []>} : vector<128x128xbf16>, vector<128x128xbf16>, vector<128x128xf32> -> vector<128x128xf32>
    %215 = vector.broadcast %207 : vector<1x128xf32> to vector<128x128xf32>
    %216 = arith.addf %214, %215 : vector<128x128xf32>
    %c128_115 = arith.constant 128 : index
    %c0_116 = arith.constant 0 : index
    %217 = vector.load %arg11[%c128_115, %c0_116] : memref<256x128xf32, #tpu.memory_space<vmem>>, vector<128x128xf32>
    tpu.vector_store %arg11[%c128_115, %c0_116], %216 {strides = array<i32>} : memref<256x128xf32, #tpu.memory_space<vmem>>, vector<128x128xf32>,
    return
  }
  func.func @transform_0(%arg0: i32) -> (i32, i32) {
    %c0_i32 = arith.constant 0 : i32
    %c0_i32_0 = arith.constant 0 : i32
    return %arg0, %c0_i32 : i32, i32
  }
  func.func @transform_1(%arg0: i32) -> (i32, i32) {
    %c0_i32 = arith.constant 0 : i32
    %c0_i32_0 = arith.constant 0 : i32
    return %arg0, %c0_i32 : i32, i32
  }
  func.func @transform_2(%arg0: i32) -> (i32, i32) {
    %c0_i32 = arith.constant 0 : i32
    %c0_i32_0 = arith.constant 0 : i32
    %c0_i32_1 = arith.constant 0 : i32
    return %c0_i32, %c0_i32_0 : i32, i32
  }
  func.func @transform_3(%arg0: i32) -> (i32, i32) {
    %c0_i32 = arith.constant 0 : i32
    %c0_i32_0 = arith.constant 0 : i32
    %c0_i32_1 = arith.constant 0 : i32
    return %c0_i32, %c0_i32_0 : i32, i32
  }
  func.func @transform_4(%arg0: i32) -> (i32, i32) {
    %c0_i32 = arith.constant 0 : i32
    %c0_i32_0 = arith.constant 0 : i32
    %c0_i32_1 = arith.constant 0 : i32
    return %c0_i32, %c0_i32_0 : i32, i32
  }
  func.func @transform_5(%arg0: i32) -> (i32, i32) {
    %c0_i32 = arith.constant 0 : i32
    %c0_i32_0 = arith.constant 0 : i32
    %c0_i32_1 = arith.constant 0 : i32
    return %c0_i32, %c0_i32_0 : i32, i32
  }
  func.func @transform_6(%arg0: i32) -> (i32, i32, i32) {
    %c0_i32 = arith.constant 0 : i32
    %c0_i32_0 = arith.constant 0 : i32
    %c0_i32_1 = arith.constant 0 : i32
    %c0_i32_2 = arith.constant 0 : i32
    return %c0_i32, %c0_i32_0, %c0_i32_1 : i32, i32, i32
  }
  func.func @transform_7(%arg0: i32) -> (i32, i32, i32) {
    %c0_i32 = arith.constant 0 : i32
    %c0_i32_0 = arith.constant 0 : i32
    %c0_i32_1 = arith.constant 0 : i32
    %c0_i32_2 = arith.constant 0 : i32
    return %c0_i32, %c0_i32_0, %c0_i32_1 : i32, i32, i32
  }
  func.func @transform_8(%arg0: i32) -> (i32, i32) {
    %c0_i32 = arith.constant 0 : i32
    %c0_i32_0 = arith.constant 0 : i32
    %c0_i32_1 = arith.constant 0 : i32
    return %c0_i32, %c0_i32_0 : i32, i32
  }
  func.func @transform_9(%arg0: i32) -> (i32, i32) {
    %c0_i32 = arith.constant 0 : i32
    %c0_i32_0 = arith.constant 0 : i32
    %c0_i32_1 = arith.constant 0 : i32
    return %c0_i32, %c0_i32_0 : i32, i32
  }
  func.func @transform_10(%arg0: i32) -> (i32, i32) {
    %c0_i32 = arith.constant 0 : i32
    %c0_i32_0 = arith.constant 0 : i32
    return %arg0, %c0_i32 : i32, i32
  }
}

</mosaic_0001>

<bundles_post_ra>
// kernel: mlp_forward.1
= control target key start
LH: loop header
LB: loop body
LE: loop exit
PB: predicated region body
PF: predicated region fallthrough
CT: control target
= control target key end

     0   :  { %s6618_s13 = smov 0   ;;  %s8447_s0 = inlined_call_operand.vmem [shape: bf16[512,128], index: 0, kind: input, shape index: {}]   ;;  %s8448_s1 = inlined_call_operand.vmem [shape: f32[512,128], index: 1, kind: input, shape index: {}]   ;;  %s8449_s2 = inlined_call_operand.vmem [shape: bf16[128,128], index: 2, kind: input, shape index: {}]   ;;  %s8450_s3 = inlined_call_operand.vmem [shape: f32[1,128], index: 3, kind: input, shape index: {}]   ;;  %s8451_s4 = inlined_call_operand.vmem [shape: bf16[128,128], index: 4, kind: input, shape index: {}]   ;;  %s8452_s5 = inlined_call_operand.vmem [shape: f32[1,128], index: 5, kind: input, shape index: {}]   ;;  %s8453_s6 = inlined_call_operand.vmem [shape: bf16[9,128,128], index: 6, kind: input, shape index: {}]   ;;  %s8454_s7 = inlined_call_operand.vmem [shape: f32[9,1,128], index: 7, kind: input, shape index: {}]   ;;  %s8455_s8 = inlined_call_operand.vmem [shape: bf16[128,128], index: 8, kind: input, shape index: {}]   ;;  %s8456_s9 = inlined_call_operand.vmem [shape: f32[1,128], index: 9, kind: input, shape index: {}]   ;;  %s8457_s10 = inlined_call_operand.vmem [shape: f32[512,128], index: 10, kind: output, shape index: {}]  }
   0x1 LB: > { %s4882_s14 = sadd.s32 4294967295, %s6561_s13   ;;  %p4886_p0 = scmp.ge.s32.totalorder %s6561_s13, 1  ;;  %s6561_s13 = sphi %s6618_s13, %s20_s13  }
   0x2   : > { %p324_p1 = scmp.lt.s32.totalorder %s6561_s13, 3 }
   0x4   : > { %p325_p2 = pnand %p4886_p0, %p324_p1 }
   0x5   : > { %v6629_v0 = vld [vmem:[%s8451_s4] sm:$0xff] (!%p325_p2)   ;;  %s4887_s17 = sshll.u32 (!%p325_p2), %s4882_s14, 5  ;;  %v6640_v2 = vld [vmem:[%s8451_s4 + $0x8] sm:$0xff] (!%p325_p2)   ;;  %v6654_v4 = vld [vmem:[%s8451_s4 + $0x10] sm:$0xff] (!%p325_p2)  }
   0x6   : > { %328 = sbr.rel (%p325_p2) target bundleno = 2570 (0xa0a), region = 60  ;;  %v6634_v1 = vld [vmem:[%s8449_s2] sm:$0xff] (!%p325_p2)   ;;  %5571 = vmatprep.subr.bf16.mxu1 (!%p325_p2), %v6629_v0  ;;  %v6647_v3 = vld [vmem:[%s8449_s2 + $0x8] sm:$0xff] (!%p325_p2)   ;;  %p368_p3 = scmp.lt.s32.totalorder (!%p325_p2), %s4887_s17, 63  ;;  %v6660_v5 = vld [vmem:[%s8449_s2 + $0x10] sm:$0xff] (!%p325_p2)  }
   0x7   : > { %5572 = vmatpush3.bf16.msra.mxu1 (!%p325_p2), %v6629_v0  ;;  %5539 = vmatprep.subr.bf16.mxu0 (!%p325_p2), %v6634_v1  ;;  %v6670_v6 = vld [vmem:[%s8451_s4 + $0x18] sm:$0xff] (!%p325_p2)   ;;  %v6685_v8 = vld [vmem:[%s8451_s4 + $0x20] sm:$0xff] (!%p325_p2)   ;;  %v6713_v11 = vld [vmem:[%s8451_s4 + $0x28] sm:$0xff] (!%p325_p2)  }
   0x8   : > { %5573 = vmatprep.subr.bf16.mxu1 (!%p325_p2), %v6640_v2  ;;  %5540 = vmatpush3.bf16.msra.mxu0 (!%p325_p2), %v6634_v1  ;;  %v6676_v7 = vld [vmem:[%s8449_s2 + $0x18] sm:$0xff] (!%p325_p2)   ;;  %v6697_v9 = vld [vmem:[%s8449_s2 + $0x20] sm:$0xff] (!%p325_p2)   ;;  %v6719_v12 = vld [vmem:[%s8449_s2 + $0x28] sm:$0xff] (!%p325_p2)  }
   0x9   : > { %5541 = vmatprep.subr.bf16.mxu0 (!%p325_p2), %v6647_v3  ;;  %v6724_v13 = vld [vmem:[%s8451_s4 + $0x30] sm:$0xff] (!%p325_p2)   ;;  %v6754_v26 = vld [vmem:[%s8451_s4 + $0x38] sm:$0xff] (!%p325_p2)  }
   0xa   : > { %v6747_v21 = vld [vmem:[%s8449_s2 + $0x30] sm:$0xff] (!%p325_p2)   ;;  %v6775_v33 = vld [vmem:[%s8449_s2 + $0x38] sm:$0xff] (!%p325_p2)  }
   0xb   : > { %5574 = vmatpush3.bf16.msra.mxu1 (!%p325_p2), %v6640_v2 }
   0xc   : > { %5575 = vmatprep.subr.bf16.mxu1 (!%p325_p2), %v6654_v4  ;;  %5542 = vmatpush3.bf16.msra.mxu0 (!%p325_p2), %v6647_v3 }
   0xd   : > { %s8459_s17 = smov (!%p368_p3, %s4887_s17), 63  ;;  %5543 = vmatprep.subr.bf16.mxu0 %v6660_v5 }
   0xe   : > { %s4888_s12 = sshll.u32 %s8459_s17, 2  ;;  %s4890_s20 = sshll.u32 %s8459_s17, 3 }
   0xf   : > { %5576 = vmatpush3.bf16.msra.mxu1 %v6654_v4  ;;  %s6690_s19 = scalar_lea.vmem %s8447_s0, %s4888_s12  ;;  %s6706_s25 = scalar_lea.vmem %s8448_s1, %s4890_s20 }
  0x10   : > { %5577 = vmatprep.subr.bf16.mxu1 %v6670_v6  ;;  %5544 = vmatpush3.bf16.msra.mxu0 %v6660_v5  ;;  %v6330_v10 = vld [vmem:[%s6690_s19] sm:$0xff]   ;;  %v6730_v15 = vld [vmem:[%s6706_s25 + $0x8] sm:$0xff]  ;;  %v6733_v16 = vld [vmem:[%s6706_s25 + $0x10] sm:$0xff]  ;;  %s8378_s21 = scalar_lea.vmem %s8457_s10, %s4890_s20 }
  0x11   : > { %5545 = vmatprep.subr.bf16.mxu0 %v6676_v7  ;;  %5587 = vmatprep.mubr.bf16.mxu1 %v6330_v10  ;;  %v6727_v14 = vld [vmem:[%s6706_s25] sm:$0xff]  ;;  %v437_v18 = vsub.f32 0.0, %v6730_v15  ;;  %v6739_v19 = vld [vmem:[%s6706_s25 + $0x18] sm:$0xff]  ;;  %v438_v20 = vsub.f32 0.0, %v6733_v16  ;;  %v6761_v29 = vld [vmem:[%s6706_s25 + $0x28] sm:$0xff] }
  0x12   : > { %v436_v17 = vsub.f32 0.0, %v6727_v14  ;;  %v439_v22 = vsub.f32 0.0, %v6739_v19  ;;  %v6757_v28 = vld [vmem:[%s6706_s25 + $0x20] sm:$0xff]  ;;  %v6765_v31 = vld [vmem:[%s6706_s25 + $0x30] sm:$0xff]  ;;  %v6768_v32 = vld [vmem:[%s6706_s25 + $0x38] sm:$0xff]  ;;  %v441_v34 = vsub.f32 0.0, %v6761_v29 }
  0x13   : > { %5578 = vmatpush3.bf16.msra.mxu1 %v6670_v6  ;;  %v454_v24 = vmul.f32 1.442695, %v437_v18  ;;  %v456_v25 = vmul.f32 1.442695, %v438_v20  ;;  %v440_v30 = vsub.f32 0.0, %v6757_v28  ;;  %v442_v35 = vsub.f32 0.0, %v6765_v31 }
  0x14   : > { %5579 = vmatprep.subr.bf16.mxu1 %v6685_v8  ;;  %5546 = vmatpush3.bf16.msra.mxu0 %v6676_v7  ;;  %v452_v23 = vmul.f32 1.442695, %v436_v17  ;;  %v458_v27 = vmul.f32 1.442695, %v439_v22  ;;  %v443_v36 = vsub.f32 0.0, %v6768_v32  ;;  %v6783_v41 = vld [vmem:[%s6706_s25 + $0x40] sm:$0xff] }
  0x15   : > { %5547 = vmatprep.subr.bf16.mxu0 %v6697_v9  ;;  %v460_v37 = vmul.f32 1.442695, %v440_v30  ;;  %v462_v38 = vmul.f32 1.442695, %v441_v34  ;;  %v464_v39 = vmul.f32 1.442695, %v442_v35 }
  0x16   : > { %6427 = vpow2.f32 %v452_v23  ;;  %v466_v40 = vmul.f32 1.442695, %v443_v36  ;;  %v6332_v42 = vld [vmem:[%s6690_s19 + $0x8] sm:$0xff]   ;;  %v444_v44 = vsub.f32 0.0, %v6783_v41  ;;  %v6793_v45 = vld [vmem:[%s6706_s25 + $0x50] sm:$0xff]  ;;  %v6796_v46 = vld [vmem:[%s6706_s25 + $0x58] sm:$0xff] }
  0x17   : > { %5580 = vmatpush3.bf16.msra.mxu1 %v6685_v8  ;;  %6429 = vpow2.f32 %v454_v24  ;;  %v6789_v43 = vld [vmem:[%s6706_s25 + $0x48] sm:$0xff]  ;;  %v6333_v47 = vld [vmem:[%s6690_s19 + $0x10] sm:$0xff]   ;;  %v446_v49 = vsub.f32 0.0, %v6793_v45  ;;  %v447_v50 = vsub.f32 0.0, %v6796_v46  ;;  %v6807_v55 = vld [vmem:[%s6706_s25 + $0x60] sm:$0xff] }
  0x18   : > { %5581 = vmatprep.subr.bf16.mxu1 %v6713_v11  ;;  %5548 = vmatpush3.bf16.msra.mxu0 %v6697_v9  ;;  %6431 = vpow2.f32 %v456_v25  ;;  %v445_v48 = vsub.f32 0.0, %v6789_v43  ;;  %v468_v51 = vmul.f32 1.442695, %v444_v44  ;;  %v6811_v57 = vld [vmem:[%s6706_s25 + $0x68] sm:$0xff]  ;;  %v448_v58 = vsub.f32 0.0, %v6807_v55  ;;  %v6815_v59 = vld [vmem:[%s6706_s25 + $0x70] sm:$0xff] }
  0x19   : > { %5549 = vmatprep.subr.bf16.mxu0 %v6719_v12  ;;  %6433 = vpow2.f32 %v458_v27  ;;  %v472_v53 = vmul.f32 1.442695, %v446_v49  ;;  %v474_v54 = vmul.f32 1.442695, %v447_v50  ;;  %v6818_v60 = vld [vmem:[%s6706_s25 + $0x78] sm:$0xff]  ;;  %v449_v63 = vsub.f32 0.0, %v6811_v57 }
  0x1a   : > { %6435 = vpow2.f32 %v460_v37  ;;  %v470_v52 = vmul.f32 1.442695, %v445_v48  ;;  %v450_v10 = vsub.f32 0.0, %v6815_v59  ;;  %v476_v20 = vmul.f32 1.442695, %v448_v58  ;;  %v6334_v24 = vld [vmem:[%s6690_s19 + $0x18] sm:$0xff]  }
  0x1b   : > { %5582 = vmatpush3.bf16.msra.mxu1 %v6713_v11  ;;  %6437 = vpow2.f32 %v462_v38  ;;  %v6825_v25 = vmul.f32 1.442695, %v449_v63  ;;  %v451_v27 = vsub.f32 0.0, %v6818_v60  ;;  %v6335_v34 = vld [vmem:[%s6690_s19 + $0x20] sm:$0xff]   ;;  %v6844_v49 = vld [vmem:[%s6706_s25 + $0x98] sm:$0xff] }
  0x1c   : > { %5583 = vmatprep.subr.bf16.mxu1 %v6724_v13  ;;  %5550 = vmatpush3.bf16.msra.mxu0 %v6719_v12  ;;  %6439 = vpow2.f32 %v464_v39  ;;  %v6829_v35 = vmul.f32 1.442695, %v450_v10  ;;  %v6832_v36 = vld [vmem:[%s6706_s25 + $0x80] sm:$0xff]  ;;  %v6835_v39 = vld [vmem:[%s6706_s25 + $0x88] sm:$0xff] }
  0x1d   : > { %5551 = vmatprep.subr.bf16.mxu0 %v6747_v21  ;;  %6441 = vpow2.f32 %v466_v40  ;;  %v970_v40 = vsub.f32 0.0, %v6832_v36  ;;  %v971_v48 = vsub.f32 0.0, %v6835_v39 }
  0x1e   : > { %6443 = vpow2.f32 %v468_v51 }
  0x1f   : > { %5584 = vmatpush3.bf16.msra.mxu1 %v6724_v13  ;;  %6445 = vpow2.f32 %v470_v52  ;;  %v6853_v58 = vmul.f32 1.442695, %v971_v48 }
  0x20   : > { %5585 = vmatprep.subr.bf16.mxu1 %v6754_v26  ;;  %5552 = vmatpush3.bf16.msra.mxu0 %v6747_v21  ;;  %v6428_v56 = vpop.eup %6427  ;;  %6447 = vpow2.f32 %v472_v53  ;;  %v6848_v53 = vmul.f32 1.442695, %v451_v27 }
  0x21   : > { %5553 = vmatprep.subr.bf16.mxu0 %v6775_v33  ;;  %v6430_v61 = vpop.eup %6429  ;;  %v484_v62 = vadd.f32 1.0, %v6428_v56  ;;  %6449 = vpow2.f32 %v474_v54  ;;  %v973_v54 = vsub.f32 0.0, %v6844_v49  ;;  %v6851_v56 = vmul.f32 1.442695, %v970_v40  ;;  %v6337_v40 = vld [vmem:[%s6690_s19 + $0x30] sm:$0xff]  }
  0x22   : > { %v6432_v17 = vpop.eup %6431  ;;  %v485_v18 = vadd.f32 1.0, %v6430_v61 }
  0x23   : > { %5586 = vmatpush3.bf16.msra.mxu1 %v6754_v26  ;;  %v6434_v22 = vpop.eup %6433  ;;  %6451 = vrcp.f32 %v484_v62  ;;  %v486_v23 = vadd.f32 1.0, %v6432_v17  ;;  %v6858_v17 = vmul.f32 1.442695, %v973_v54 }
  0x24   : > { %5635 = vmatprep.subr.bf16.mxu1 %v6629_v0  ;;  %5554 = vmatpush3.bf16.msra.mxu0 %v6775_v33  ;;  %v6436_v30 = vpop.eup %6435  ;;  %6453 = vrcp.f32 %v485_v18  ;;  %v6861_v18 = vld [vmem:[%s6706_s25 + $0xa0] sm:$0xff] }
  0x25   : > { %5603 = vmatprep.subr.bf16.mxu0 %v6634_v1  ;;  %v6438_v37 = vpop.eup %6437  ;;  %6455 = vrcp.f32 %v486_v23  ;;  %v488_v38 = vadd.f32 1.0, %v6436_v30  ;;  %v974_v30 = vsub.f32 0.0, %v6861_v18 }
  0x26   : > { %5588 = vmatmul.mubr.bf16.vlgmr.msra.gmra.mrb[0].mxu1 %v6332_v42  ;;  %v6839_v42 = vld [vmem:[%s6706_s25 + $0x90] sm:$0xff]  ;;  %v6440_v44 = vpop.eup %6439 }
  0x27   : > { %5636 = vmatpush3.bf16.msra.mxu1 %v6629_v0  ;;  %5591 = vmatprep.mubr.bf16.mxu1 %v6333_v47  ;;  %v487_v0 = vadd.f32 1.0, %v6434_v22  ;;  %v489_v47 = vadd.f32 1.0, %v6438_v37  ;;  %v972_v50 = vsub.f32 0.0, %v6839_v42  ;;  %v6442_v51 = vpop.eup %6441  ;;  %v490_v52 = vadd.f32 1.0, %v6440_v44  ;;  %v6864_v22 = vld [vmem:[%s6706_s25 + $0xa8] sm:$0xff] }
  0x28   : > { %5637 = vmatprep.subr.bf16.mxu1 %v6640_v2  ;;  %v6444_v61 = vpop.eup %6443 }
  0x29   : > { %6457 = vrcp.f32 %v487_v0  ;;  %v6855_v62 = vmul.f32 1.442695, %v972_v50  ;;  %v6446_v63 = vpop.eup %6445  ;;  %v492_v10 = vadd.f32 1.0, %v6444_v61  ;;  %v6871_v0 = vld [vmem:[%s6706_s25 + $0xb0] sm:$0xff]  ;;  %v6879_v50 = vmul.f32 1.442695, %v974_v30 }
  0x2a   : > { %6459 = vrcp.f32 %v488_v38  ;;  %v6448_v23 = vpop.eup %6447  ;;  %v493_v27 = vadd.f32 1.0, %v6446_v63  ;;  %v976_v44 = vsub.f32 0.0, %v6871_v0 }
  0x2b   : > { %5638 = vmatpush3.bf16.msra.mxu1 %v6640_v2  ;;  %6461 = vrcp.f32 %v489_v47  ;;  %v491_v2 = vadd.f32 1.0, %v6442_v51  ;;  %v6450_v37 = vpop.eup %6449  ;;  %v494_v38 = vadd.f32 1.0, %v6448_v23 }
  0x2c   : > { %5639 = vmatprep.subr.bf16.mxu1 %v6654_v4  ;;  %6463 = vrcp.f32 %v490_v52  ;;  %v6884_v52 = vld [vmem:[%s6706_s25 + $0xc0] sm:$0xff]  ;;  %v6888_v61 = vmul.f32 1.442695, %v976_v44 }
  0x2d   : > { %6465 = vrcp.f32 %v491_v2  ;;  %v6452_v48 = vpop.eup %6451  ;;  %v978_v30 = vsub.f32 0.0, %v6884_v52 }
  0x2e   : > { %5592 = vmatmul.mubr.bf16.gmra.mrb[4].mxu1 %v6334_v24  ;;  %v6336_v24 = vld [vmem:[%s6690_s19 + $0x28] sm:$0xff]   ;;  %6467 = vpow2.f32 %v476_v20  ;;  %v495_v20 = vadd.f32 1.0, %v6450_v37  ;;  %v6454_v54 = vpop.eup %6453  ;;  %v532_v2 = vmul.f32 %v6452_v48, %v6727_v14  ;;  %v6902_v37 = vld [vmem:[%s6706_s25 + $0xd0] sm:$0xff] }
  0x2f   : > { %5640 = vmatpush3.bf16.msra.mxu1 %v6654_v4  ;;  %5595 = vmatprep.mubr.bf16.mxu1 %v6335_v34  ;;  %v975_v4 = vsub.f32 0.0, %v6864_v22  ;;  %v6874_v34 = vld [vmem:[%s6706_s25 + $0xb8] sm:$0xff]  ;;  %6469 = vrcp.f32 %v492_v10  ;;  %v6456_v10 = vpop.eup %6455  ;;  %v533_v23 = vmul.f32 %v6454_v54, %v6730_v15  ;;  %v6909_v48 = vmul.f32 1.442695, %v978_v30  ;;  %v6933_v30 = vld [vmem:[%s6706_s25 + $0xf0] sm:$0xff] }
  0x30   : > { %5641 = vmatprep.subr.bf16.mxu1 %v6670_v6  ;;  %v977_v47 = vsub.f32 0.0, %v6874_v34  ;;  %6471 = vrcp.f32 %v493_v27  ;;  %v6895_v27 = vld [vmem:[%s6706_s25 + $0xc8] sm:$0xff]  ;;  %v534_v14 = vmul.f32 %v6456_v10, %v6733_v16  ;;  %v980_v54 = vsub.f32 0.0, %v6902_v37 }
  0x31   : > { %v6881_v51 = vmul.f32 1.442695, %v975_v4  ;;  %6473 = vrcp.f32 %v494_v38  ;;  %v6905_v38 = vld [vmem:[%s6706_s25 + $0xd8] sm:$0xff]  ;;  %v548_v44 = vpack.c.bf16 %v533_v23, %v532_v2 }
  0x32   : > { %v6890_v63 = vmul.f32 1.442695, %v977_v47  ;;  %6475 = vrcp.f32 %v495_v20  ;;  %v6929_v10 = vmul.f32 1.442695, %v980_v54 }
  0x33   : > { %5642 = vmatpush3.bf16.msra.mxu1 %v6670_v6  ;;  %v6458_v4 = vpop.eup %6457  ;;  %6477 = vpow2.f32 %v6825_v25  ;;  %v979_v6 = vsub.f32 0.0, %v6895_v27  ;;  %5555 = vmatprep.mubr.bf16.mxu0 %v548_v44 }
  0x34   : > { %5643 = vmatprep.subr.bf16.mxu1 %v6685_v8  ;;  %v6460_v15 = vpop.eup %6459  ;;  %v535_v47 = vmul.f32 %v6458_v4, %v6739_v19  ;;  %6479 = vpow2.f32 %v6829_v35  ;;  %v6918_v19 = vld [vmem:[%s6706_s25 + $0xe0] sm:$0xff] }
  0x35   : > { %v6462_v16 = vpop.eup %6461  ;;  %v536_v25 = vmul.f32 %v6460_v15, %v6757_v28  ;;  %6481 = vpow2.f32 %v6848_v53  ;;  %v6914_v20 = vmul.f32 1.442695, %v979_v6  ;;  %v6925_v28 = vld [vmem:[%s6706_s25 + $0xe8] sm:$0xff]  ;;  %v982_v23 = vsub.f32 0.0, %v6918_v19  ;;  %v6941_v15 = vld [vmem:[%s6706_s25 + $0xf8] sm:$0xff] }
  0x36   : > { %5596 = vmatmul.mubr.bf16.gmra.mrb[8].mxu1 %v6336_v24  ;;  %v6464_v24 = vpop.eup %6463  ;;  %v549_v35 = vpack.c.bf16 %v535_v47, %v534_v14  ;;  %v537_v2 = vmul.f32 %v6462_v16, %v6761_v29  ;;  %6483 = vpow2.f32 %v6851_v56  ;;  %v6338_v14 = vld [vmem:[%s6690_s19 + $0x38] sm:$0xff]   ;;  %v983_v44 = vsub.f32 0.0, %v6925_v28 }
  0x37   : > { %5644 = vmatpush3.bf16.msra.mxu1 %v6685_v8  ;;  %5599 = vmatprep.mubr.bf16.mxu1 %v6337_v40  ;;  %v981_v8 = vsub.f32 0.0, %v6905_v38  ;;  %v6466_v53 = vpop.eup %6465  ;;  %v538_v40 = vmul.f32 %v6464_v24, %v6765_v31  ;;  %6485 = vpow2.f32 %v6853_v58  ;;  %v6947_v47 = vmul.f32 1.442695, %v982_v23 }
  0x38   : > { %5645 = vmatprep.subr.bf16.mxu1 %v6713_v11  ;;  %v6468_v29 = vpop.eup %6467  ;;  %5556 = vmatmul.mubr.bf16.vlgmr.msra.gmra.mrb[0].mxu0 %v549_v35  ;;  %v550_v4 = vpack.c.bf16 %v537_v2, %v536_v25  ;;  %v539_v56 = vmul.f32 %v6466_v53, %v6768_v32  ;;  %6487 = vpow2.f32 %v6855_v62  ;;  %v6956_v25 = vmul.f32 1.442695, %v983_v44 }
  0x39   : > { %v6938_v6 = vmul.f32 1.442695, %v981_v8  ;;  %v6470_v31 = vpop.eup %6469  ;;  %5604 = vmatpush3.bf16.msra.mxu0 %v6634_v1  ;;  %v496_v58 = vadd.f32 1.0, %v6468_v29  ;;  %6489 = vpow2.f32 %v6858_v17  ;;  %v984_v1 = vsub.f32 0.0, %v6933_v30  ;;  %v6339_v17 = vld [vmem:[%s6690_s19 + $0x40] sm:$0xff]   ;;  %v6340_v29 = vld [vmem:[%s6690_s19 + $0x48] sm:$0xff]  }
  0x3a   : > { %v6472_v32 = vpop.eup %6471  ;;  %5605 = vmatprep.subr.bf16.mxu0 %v6647_v3  ;;  %5559 = vmatprep.mubr.bf16.mxu0 %v550_v4  ;;  %v540_v62 = vmul.f32 %v6470_v31, %v6783_v41  ;;  %6491 = vpow2.f32 %v6879_v50  ;;  %v985_v54 = vsub.f32 0.0, %v6941_v15  ;;  %v551_v35 = vpack.c.bf16 %v539_v56, %v538_v40 }
  0x3b   : > { %5646 = vmatpush3.bf16.msra.mxu1 %v6713_v11  ;;  %v6474_v16 = vpop.eup %6473  ;;  %v541_v11 = vmul.f32 %v6472_v32, %v6789_v43  ;;  %6493 = vrcp.f32 %v496_v58  ;;  %v6960_v41 = vmul.f32 1.442695, %v984_v1 }
  0x3c   : > { %5647 = vmatprep.subr.bf16.mxu1 %v6724_v13  ;;  %v6476_v24 = vpop.eup %6475  ;;  %6495 = vpow2.f32 %v6881_v51  ;;  %v6965_v43 = vmul.f32 1.442695, %v985_v54 }
  0x3d   : > { %v6478_v50 = vpop.eup %6477  ;;  %5606 = vmatpush3.bf16.msra.mxu0 %v6647_v3  ;;  %v552_v2 = vpack.c.bf16 %v541_v11, %v540_v62  ;;  %6497 = vpow2.f32 %v6888_v61  ;;  %v543_v61 = vmul.f32 %v6476_v24, %v6796_v46  ;;  %v6341_v46 = vld [vmem:[%s6690_s19 + $0x50] sm:$0xff]  }
  0x3e   : > { %5600 = vmatmul.mubr.bf16.gmra.mrb[12].mxu1 %v6338_v14  ;;  %v6480_v8 = vpop.eup %6479  ;;  %5607 = vmatprep.subr.bf16.mxu0 %v6660_v5  ;;  %v497_v53 = vadd.f32 1.0, %v6478_v50  ;;  %6499 = vpow2.f32 %v6890_v63 }
  0x3f   : > { %5648 = vmatpush3.bf16.msra.mxu1 %v6724_v13  ;;  %v6482_v51 = vpop.eup %6481  ;;  %v498_v40 = vadd.f32 1.0, %v6480_v8  ;;  %5651 = vmatprep.mubr.bf16.mxu1 %v6339_v17  ;;  %6501 = vpow2.f32 %v6909_v48  ;;  %v542_v13 = vmul.f32 %v6474_v16, %v6793_v45  ;;  %v6978_v48 = vld [vmem:[%s8453_s6] sm:$0xff]   ;;  %v6342_v17 = vld [vmem:[%s6690_s19 + $0x58] sm:$0xff]  }
  0x40   : > { %5649 = vmatprep.subr.bf16.mxu1 %v6754_v26  ;;  %v6484_v3 = vpop.eup %6483  ;;  %5560 = vmatmul.mubr.bf16.gmra.mrb[4].mxu0 %v551_v35  ;;  %6503 = vrcp.f32 %v497_v53  ;;  %v499_v23 = vadd.f32 1.0, %v6482_v51  ;;  %v7002_v51 = vld [vmem:[%s8453_s6 + $0x10] sm:$0xff]  }
  0x41   : > { %v6486_v4 = vpop.eup %6485  ;;  %5608 = vmatpush3.bf16.msra.mxu0 %v6660_v5  ;;  %5563 = vmatprep.mubr.bf16.mxu0 %v552_v2  ;;  %6505 = vrcp.f32 %v498_v40  ;;  %v1018_v63 = vadd.f32 1.0, %v6484_v3  ;;  %v553_v58 = vpack.c.bf16 %v543_v61, %v542_v13  ;;  %v6343_v2 = vld [vmem:[%s6690_s19 + $0x60] sm:$0xff]   ;;  %v7010_v3 = vld [vmem:[%s8453_s6 + $0x18] sm:$0xff]  }
  0x42   : > { %v6488_v56 = vpop.eup %6487  ;;  %5609 = vmatprep.subr.bf16.mxu0 %v6676_v7  ;;  %6507 = vrcp.f32 %v499_v23  ;;  %v1019_v45 = vadd.f32 1.0, %v6486_v4 }
  0x43   : > { %5650 = vmatpush3.bf16.msra.mxu1 %v6754_v26  ;;  %v6490_v14 = vpop.eup %6489  ;;  %6509 = vrcp.f32 %v1018_v63  ;;  %v1020_v31 = vadd.f32 1.0, %v6488_v56  ;;  %v6988_v26 = vld [vmem:[%s8453_s6 + $0x8] sm:$0xff]  }
  0x44   : > { %5699 = vmatprep.subr.bf16.mxu1 %v6978_v48  ;;  %v6492_v5 = vpop.eup %6491  ;;  %6511 = vrcp.f32 %v1019_v45  ;;  %v1021_v44 = vadd.f32 1.0, %v6490_v14  ;;  %v6344_v63 = vld [vmem:[%s6690_s19 + $0x68] sm:$0xff]  }
  0x45   : > { %v6494_v32 = vpop.eup %6493  ;;  %5610 = vmatpush3.bf16.msra.mxu0 %v6676_v7  ;;  %6513 = vrcp.f32 %v1020_v31  ;;  %v1022_v62 = vadd.f32 1.0, %v6492_v5 }
  0x46   : > { %5652 = vmatmul.mubr.bf16.vlgmr.msra.gmra.mrb[16].mxu1 %v6340_v29  ;;  %v6496_v1 = vpop.eup %6495  ;;  %5611 = vmatprep.subr.bf16.mxu0 %v6697_v9  ;;  %6515 = vrcp.f32 %v1021_v44  ;;  %v544_v35 = vmul.f32 %v6494_v32, %v6807_v55 }
  0x47   : > { %5655 = vmatprep.mubr.bf16.mxu1 %v6341_v46  ;;  %v6498_v16 = vpop.eup %6497  ;;  %v1023_v11 = vadd.f32 1.0, %v6496_v1  ;;  %6517 = vrcp.f32 %v1022_v62  ;;  %5700 = vmatpush3.bf16.msra.mxu1 %v6978_v48  ;;  %v6346_v62 = vld [vmem:[%s6690_s19 + $0x78] sm:$0xff]  }
  0x48   : > { %v6500_v7 = vpop.eup %6499  ;;  %5564 = vmatmul.mubr.bf16.gmra.mrb[8].mxu0 %v553_v58  ;;  %v1024_v54 = vadd.f32 1.0, %v6498_v16  ;;  %6519 = vpow2.f32 %v6914_v20  ;;  %5701 = vmatprep.subr.bf16.mxu1 %v6988_v26 }
  0x49   : > { %v6502_v24 = vpop.eup %6501  ;;  %5612 = vmatpush3.bf16.msra.mxu0 %v6697_v9  ;;  %6521 = vrcp.f32 %v1023_v11  ;;  %v1025_v50 = vadd.f32 1.0, %v6500_v7 }
  0x4a   : > { %v6504_v8 = vpop.eup %6503  ;;  %5613 = vmatprep.subr.bf16.mxu0 %v6719_v12  ;;  %6523 = vrcp.f32 %v1024_v54  ;;  %v1026_v53 = vadd.f32 1.0, %v6502_v24 }
  0x4b   : > { %v6506_v20 = vpop.eup %6505  ;;  %v545_v40 = vmul.f32 %v6504_v8, %v6811_v57  ;;  %6525 = vrcp.f32 %v1025_v50  ;;  %5702 = vmatpush3.bf16.msra.mxu1 %v6988_v26 }
  0x4c   : > { %v6508_v9 = vpop.eup %6507  ;;  %v546_v55 = vmul.f32 %v6506_v20, %v6815_v59  ;;  %6527 = vrcp.f32 %v1026_v53  ;;  %5703 = vmatprep.subr.bf16.mxu1 %v7002_v51 }
  0x4d   : > { %v6510_v13 = vpop.eup %6509  ;;  %5614 = vmatpush3.bf16.msra.mxu0 %v6719_v12  ;;  %v554_v61 = vpack.c.bf16 %v545_v40, %v544_v35  ;;  %v547_v57 = vmul.f32 %v6508_v9, %v6818_v60  ;;  %6529 = vpow2.f32 %v6929_v10  ;;  %v6345_v10 = vld [vmem:[%s6690_s19 + $0x70] sm:$0xff]  }
  0x4e   : > { %5656 = vmatmul.mubr.bf16.gmra.mrb[20].mxu1 %v6342_v17  ;;  %v6512_v59 = vpop.eup %6511  ;;  %5615 = vmatprep.subr.bf16.mxu0 %v6747_v21  ;;  %v1066_v23 = vmul.f32 %v6510_v13, %v6832_v36  ;;  %6531 = vpow2.f32 %v6938_v6 }
  0x4f   : > { %5659 = vmatprep.mubr.bf16.mxu1 %v6343_v2  ;;  %v6514_v29 = vpop.eup %6513  ;;  %5567 = vmatprep.mubr.bf16.mxu0 %v554_v61  ;;  %v555_v4 = vpack.c.bf16 %v547_v57, %v546_v55  ;;  %v1067_v12 = vmul.f32 %v6512_v59, %v6835_v39  ;;  %6533 = vpow2.f32 %v6947_v47 }
  0x50   : > { %5704 = vmatpush3.bf16.msra.mxu1 %v7002_v51  ;;  %v6516_v60 = vpop.eup %6515  ;;  %6535 = vpow2.f32 %v6956_v25  ;;  %v1068_v6 = vmul.f32 %v6514_v29, %v6839_v42 }
  0x51   : > { %5705 = vmatprep.subr.bf16.mxu1 %v7010_v3  ;;  %v6518_v36 = vpop.eup %6517  ;;  %5568 = vmatmul.mubr.bf16.gmra.mrb[12].mxu0 %v555_v4  ;;  %v1082_v56 = vpack.c.bf16 %v1067_v12, %v1066_v23  ;;  %v1069_v45 = vmul.f32 %v6516_v60, %v6844_v49  ;;  %6537 = vpow2.f32 %v6960_v41  ;;  %v7077_v60 = vld [vmem:[%s8452_s5] ss:$0 sm:$0xff] }
  0x52   : > { %v6520_v39 = vpop.eup %6519  ;;  %5616 = vmatpush3.bf16.msra.mxu0 %v6747_v21  ;;  %v1070_v47 = vmul.f32 %v6518_v36, %v6861_v18  ;;  %6539 = vpow2.f32 %v6965_v43 }
  0x53   : > { %v6522_v46 = vpop.eup %6521  ;;  %5617 = vmatprep.subr.bf16.mxu0 %v6775_v33  ;;  %5619 = vmatprep.mubr.bf16.mxu0 %v1082_v56  ;;  %v1027_v25 = vadd.f32 1.0, %v6520_v39  ;;  %v1083_v49 = vpack.c.bf16 %v1069_v45, %v1068_v6  ;;  %v7084_v45 = vld [vmem:[%s8450_s3] ss:$0 sm:$0xff] }
  0x54   : > { %v6524_v14 = vpop.eup %6523  ;;  %v1071_v31 = vmul.f32 %v6522_v46, %v6864_v22  ;;  %5706 = vmatpush3.bf16.msra.mxu1 %v7010_v3 }
  0x55   : > { %v6526_v42 = vpop.eup %6525  ;;  %6541 = vrcp.f32 %v1027_v25  ;;  %v1072_v22 = vmul.f32 %v6524_v14, %v6871_v0 }
  0x56   : > { %5660 = vmatmul.mubr.bf16.gmra.mrb[24].mxu1 %v6344_v63  ;;  %v6528_v21 = vpop.eup %6527  ;;  %5618 = vmatpush3.bf16.msra.mxu0 %v6775_v33  ;;  %v1084_v18 = vpack.c.bf16 %v1071_v31, %v1070_v47  ;;  %v1073_v44 = vmul.f32 %v6526_v42, %v6874_v34 }
  0x57   : > { %5663 = vmatprep.mubr.bf16.mxu1 %v6345_v10  ;;  %v6530_v41 = vpop.eup %6529  ;;  %5667 = vmatprep.subr.bf16.mxu0 %v6978_v48  ;;  %v1074_v34 = vmul.f32 %v6528_v21, %v6884_v52 }
  0x58   : > { %v6532_v43 = vpop.eup %6531  ;;  %v1028_v5 = vadd.f32 1.0, %v6530_v41  ;;  %v1085_v54 = vpack.c.bf16 %v1073_v44, %v1072_v22 }
  0x59   : > { %v6534_v58 = vpop.eup %6533  ;;  %5620 = vmatmul.mubr.bf16.vlgmr.msra.gmra.mrb[16].mxu0 %v1083_v49  ;;  %v1029_v32 = vadd.f32 1.0, %v6532_v43 }
  0x5a   : > { %v6536_v1 = vpop.eup %6535  ;;  %5623 = vmatprep.mubr.bf16.mxu0 %v1084_v18  ;;  %6543 = vrcp.f32 %v1028_v5  ;;  %v1030_v16 = vadd.f32 1.0, %v6534_v58  ;;  %5668 = vmatpush3.bf16.msra.mxu0 %v6978_v48 }
  0x5b   : > { %v6538_v33 = vpop.eup %6537  ;;  %6545 = vrcp.f32 %v1029_v32  ;;  %v1031_v11 = vadd.f32 1.0, %v6536_v1  ;;  %5669 = vmatprep.subr.bf16.mxu0 %v6988_v26 }
  0x5c   : > { %v6540_v7 = vpop.eup %6539  ;;  %6547 = vrcp.f32 %v1030_v16  ;;  %v1032_v17 = vadd.f32 1.0, %v6538_v33 }
  0x5d   : > { %6549 = vrcp.f32 %v1031_v11  ;;  %v1033_v0 = vadd.f32 1.0, %v6540_v7 }
  0x5e   : > { %5664 = vmatmul.mubr.bf16.gmra.mrb[28].mxu1 %v6346_v62  ;;  %6551 = vrcp.f32 %v1032_v17  ;;  %5670 = vmatpush3.bf16.msra.mxu0 %v6988_v26 }
  0x5f   : > { %v6542_v24 = vpop.eup %6541  ;;  %6553 = vrcp.f32 %v1033_v0  ;;  %5671 = vmatprep.subr.bf16.mxu0 %v7002_v51 }
  0x60   : > { %v1075_v48 = vmul.f32 %v6542_v24, %v6895_v27 }
  0x61   : > { %5624 = vmatmul.mubr.bf16.gmra.mrb[20].mxu0 %v1085_v54 }
  0x62   : > { %v1086_v35 = vpack.c.bf16 %v1075_v48, %v1074_v34  ;;  %5672 = vmatpush3.bf16.msra.mxu0 %v7002_v51 }
  0x63   : > { %5673 = vmatprep.subr.bf16.mxu0 %v7010_v3 }
  0x64   : > { %v6544_v50 = vpop.eup %6543  ;;  %5627 = vmatprep.mubr.bf16.mxu0 %v1086_v35 }
  0x65   : > { %v6546_v2 = vpop.eup %6545  ;;  %v1076_v52 = vmul.f32 %v6544_v50, %v6902_v37 }
  0x66   : > { %v6548_v8 = vpop.eup %6547  ;;  %v1077_v26 = vmul.f32 %v6546_v2, %v6905_v38  ;;  %5674 = vmatpush3.bf16.msra.mxu0 %v7010_v3  ;;  %v6351_v38 = vld [vmem:[%s8453_s6 + $0x20] sm:$0xff]  }
  0x67   : > { %v6550_v53 = vpop.eup %6549  ;;  %v1078_v20 = vmul.f32 %v6548_v8, %v6918_v19  ;;  %5675 = vmatprep.subr.bf16.mxu0 %v6351_v38  ;;  %5707 = vmatprep.subr.bf16.mxu1 %v6351_v38  ;;  %v6352_v19 = vld [vmem:[%s8453_s6 + $0x28] sm:$0xff]  }
  0x68   : > { %v6552_v27 = vpop.eup %6551  ;;  %v1087_v40 = vpack.c.bf16 %v1077_v26, %v1076_v52  ;;  %v1079_v9 = vmul.f32 %v6550_v53, %v6925_v28  ;;  %5708 = vmatpush3.bf16.msra.mxu1 %v6351_v38  ;;  %v6353_v28 = vld [vmem:[%s8453_s6 + $0x30] sm:$0xff]   ;;  %v7122_v26 = vld [vmem:[%s8453_s6 + $0x48] sm:$0xff]  }
  0x69   : > { %v6554_v51 = vpop.eup %6553  ;;  %v1080_v13 = vmul.f32 %v6552_v27, %v6933_v30  ;;  %5709 = vmatprep.subr.bf16.mxu1 %v6352_v19  ;;  %v6354_v30 = vld [vmem:[%s8453_s6 + $0x38] sm:$0xff]  }
  0x6a   : > { %5628 = vmatmul.mubr.bf16.gmra.mrb[24].mxu0 %v1087_v40  ;;  %v1088_v55 = vpack.c.bf16 %v1079_v9, %v1078_v20  ;;  %v1081_v61 = vmul.f32 %v6554_v51, %v6941_v15  ;;  %v7070_v15 = vld [vmem:[%s8453_s6 + $0x40] sm:$0xff]  }
  0x6b   : > { %5676 = vmatpush3.bf16.msra.mxu0 %v6351_v38 }
  0x6c   : > { %5631 = vmatprep.mubr.bf16.mxu0 %v1088_v55  ;;  %v1089_v37 = vpack.c.bf16 %v1081_v61, %v1080_v13  ;;  %5677 = vmatprep.subr.bf16.mxu0 %v6352_v19 }
  0x6d   : > { %5710 = vmatpush3.bf16.msra.mxu1 %v6352_v19 }
  0x6e   : > { %5711 = vmatprep.subr.bf16.mxu1 %v6353_v28 }
  0x6f   : > { %5678 = vmatpush3.bf16.msra.mxu0 %v6352_v19 }
  0x70   : > { %5679 = vmatprep.subr.bf16.mxu0 %v6353_v28 }
  0x71   : > { %5712 = vmatpush3.bf16.msra.mxu1 %v6353_v28 }
  0x72   : > { %5632 = vmatmul.mubr.bf16.gmra.mrb[28].mxu0 %v1089_v37  ;;  %5713 = vmatprep.subr.bf16.mxu1 %v6354_v30 }
  0x73   : > { %5680 = vmatpush3.bf16.msra.mxu0 %v6353_v28  ;;  %v7143_v28 = vld [vmem:[%s8453_s6 + $0x50] sm:$0xff]  }
  0x74   : > { %5681 = vmatprep.subr.bf16.mxu0 %v6354_v30 }
  0x75   : > { %5714 = vmatpush3.bf16.msra.mxu1 %v6354_v30 }
  0x76   : > { %5763 = vmatprep.subr.bf16.mxu1 %v7070_v15 }
  0x77   : > { %5682 = vmatpush3.bf16.msra.mxu0 %v6354_v30 }
  0x78   : > { %5731 = vmatprep.subr.bf16.mxu0 %v7070_v15 }
  0xf9   : > { %v5589_v3 = vpop.f32.mrb[0].mxu1 }
  0xfa   : > { %v859_v57 = vpop.f32.mrb[1].mxu1  ;;  %v868_v36 = vadd.f32 %v5589_v3, %v7077_v60 }
  0xfb   : > { %v5590_v59 = vpop.f32.mrb[2].mxu1  ;;  %v860_v6 = vadd.f32 %v7077_v60, %v859_v57 }
  0xfc   : > { %v862_v23 = vpop.f32.mrb[3].mxu1  ;;  %v871_v47 = vadd.f32 %v5590_v59, %v7077_v60  ;;  %v924_v31 = vmax.f32 %v868_v36, 0.0 }
  0xfd   : > { %v863_v25 = vadd.f32 %v7077_v60, %v862_v23  ;;  %v922_v21 = vmax.f32 %v860_v6, 0.0 }
  0xfe   : > { %v925_v43 = vmax.f32 %v871_v47, 0.0 }
  0xff   : > { %v923_v22 = vmax.f32 %v863_v25, 0.0 }
 0x101   : > { %v5593_v29 = vpop.f32.mrb[4].mxu1 }
 0x102   : > { %v875_v4 = vpop.f32.mrb[5].mxu1  ;;  %v884_v62 = vadd.f32 %v5593_v29, %v7077_v60 }
 0x103   : > { %v5594_v12 = vpop.f32.mrb[6].mxu1  ;;  %v876_v11 = vadd.f32 %v7077_v60, %v875_v4 }
 0x104   : > { %v878_v63 = vpop.f32.mrb[7].mxu1  ;;  %v887_v0 = vadd.f32 %v5594_v12, %v7077_v60  ;;  %v928_v2 = vmax.f32 %v884_v62, 0.0 }
 0x105   : > { %v879_v48 = vadd.f32 %v7077_v60, %v878_v63  ;;  %v926_v53 = vmax.f32 %v876_v11, 0.0 }
 0x106   : > { %v929_v40 = vmax.f32 %v887_v0, 0.0 }
 0x107   : > { %v927_v55 = vmax.f32 %v879_v48, 0.0 }
 0x109   : > { %v5597_v10 = vpop.f32.mrb[8].mxu1 }
 0x10a   : > { %v891_v56 = vpop.f32.mrb[9].mxu1  ;;  %v900_v61 = vadd.f32 %v5597_v10, %v7077_v60 }
 0x10b   : > { %v5598_v39 = vpop.f32.mrb[10].mxu1  ;;  %v5557_v14 = vpop.f32.mrb[0].mxu0  ;;  %v892_v30 = vadd.f32 %v7077_v60, %v891_v56 }
 0x10c   : > { %v894_v46 = vpop.f32.mrb[11].mxu1  ;;  %v7089_v42 = vadd.f32 %v5557_v14, %v7084_v45  ;;  %v644_v49 = vpop.f32.mrb[1].mxu0  ;;  %v903_v23 = vadd.f32 %v5598_v39, %v7077_v60  ;;  %v932_v56 = vmax.f32 %v900_v61, 0.0  ;;  %v7164_v39 = vld [vmem:[%s8453_s6 + $0x58] sm:$0xff]  }
 0x10d   : > { %v7092_v18 = vadd.f32 %v7084_v45, %v644_v49  ;;  %v5558_v41 = vpop.f32.mrb[2].mxu0  ;;  %v895_v12 = vadd.f32 %v7077_v60, %v894_v46  ;;  %v930_v25 = vmax.f32 %v892_v30, 0.0 }
 0x10e   : > { %v7095_v5 = vadd.f32 %v5558_v41, %v7084_v45  ;;  %v647_v58 = vpop.f32.mrb[3].mxu0  ;;  %v940_v1 = vadd.f32 %v924_v31, %v7089_v42  ;;  %v933_v31 = vmax.f32 %v903_v23, 0.0 }
 0x10f   : > { %v7098_v44 = vadd.f32 %v7084_v45, %v647_v58  ;;  %v938_v7 = vadd.f32 %v922_v21, %v7092_v18  ;;  %v931_v41 = vmax.f32 %v895_v12, 0.0 }
 0x110   : > { %v941_v16 = vadd.f32 %v925_v43, %v7095_v5 }
 0x111   : > { %v7100_v32 = vpop.f32.mrb[12].mxu1  ;;  %v939_v17 = vadd.f32 %v923_v22, %v7098_v44 }
 0x112   : > { %v7105_v33 = vpop.f32.mrb[13].mxu1  ;;  %v1398_v34 = vpack.c.bf16 %v941_v16, %v940_v1  ;;  %v7182_v1 = vld [vmem:[%s8453_s6 + $0x60] sm:$0xff]   ;;  %v916_v16 = vadd.f32 %v7100_v32, %v7077_v60 }
 0x113   : > { %v7110_v54 = vpop.f32.mrb[14].mxu1  ;;  %v5561_v35 = vpop.f32.mrb[4].mxu0  ;;  %v1397_v50 = vpack.c.bf16 %v939_v17, %v938_v7  ;;  %v908_v0 = vadd.f32 %v7077_v60, %v7105_v33 }
 0x114   : > { %v7113_v24 = vpop.f32.mrb[15].mxu1  ;;  %v7117_v52 = vadd.f32 %v5561_v35, %v7084_v45  ;;  %v660_v8 = vpop.f32.mrb[5].mxu0  ;;  %v919_v35 = vadd.f32 %v7110_v54, %v7077_v60 }
 0x115   : > { %v7125_v20 = vadd.f32 %v7084_v45, %v660_v8  ;;  %v5562_v27 = vpop.f32.mrb[6].mxu0  ;;  %5683 = vmatprep.mubr.bf16.mxu0 %v1397_v50  ;;  %v911_v32 = vadd.f32 %v7077_v60, %v7113_v24 }
 0x116   : > { %v7128_v9 = vadd.f32 %v5562_v27, %v7084_v45  ;;  %v663_v51 = vpop.f32.mrb[7].mxu0  ;;  %5684 = vmatmul.mubr.bf16.vlgmr.msra.gmra.mrb[32].mxu0 %v1398_v34  ;;  %v944_v37 = vadd.f32 %v928_v2, %v7117_v52 }
 0x117   : > { %v7131_v13 = vadd.f32 %v7084_v45, %v663_v51  ;;  %5732 = vmatpush3.bf16.msra.mxu0 %v7070_v15  ;;  %v942_v3 = vadd.f32 %v926_v53, %v7125_v20  ;;  %v936_v53 = vmax.f32 %v916_v16, 0.0 }
 0x118   : > { %v945_v38 = vadd.f32 %v929_v40, %v7128_v9  ;;  %5733 = vmatprep.subr.bf16.mxu0 %v7122_v26  ;;  %v934_v40 = vmax.f32 %v908_v0, 0.0 }
 0x119   : > { %v7137_v19 = vpop.f32.mrb[16].mxu1  ;;  %v943_v57 = vadd.f32 %v927_v55, %v7131_v13  ;;  %v937_v55 = vmax.f32 %v919_v35, 0.0 }
 0x11a   : > { %v7148_v59 = vpop.f32.mrb[17].mxu1  ;;  %v1400_v29 = vpack.c.bf16 %v945_v38, %v944_v37  ;;  %v935_v37 = vmax.f32 %v911_v32, 0.0 }
 0x11b   : > { %v7151_v4 = vpop.f32.mrb[18].mxu1  ;;  %v5565_v63 = vpop.f32.mrb[8].mxu0  ;;  %v1399_v10 = vpack.c.bf16 %v943_v57, %v942_v3  ;;  %5734 = vmatpush3.bf16.msra.mxu0 %v7122_v26  ;;  %v1294_v3 = vadd.f32 %v7137_v19, %v7077_v60  ;;  %v1286_v12 = vadd.f32 %v7077_v60, %v7148_v59 }
 0x11c   : > { %v7154_v36 = vpop.f32.mrb[19].mxu1  ;;  %v7158_v6 = vadd.f32 %v5565_v63, %v7084_v45  ;;  %v676_v47 = vpop.f32.mrb[9].mxu0  ;;  %5735 = vmatprep.subr.bf16.mxu0 %v7143_v28 }
 0x11d   : > { %v7167_v46 = vadd.f32 %v7084_v45, %v676_v47  ;;  %v5566_v14 = vpop.f32.mrb[10].mxu0  ;;  %5687 = vmatprep.mubr.bf16.mxu0 %v1399_v10  ;;  %v1297_v47 = vadd.f32 %v7151_v4, %v7077_v60  ;;  %v1289_v19 = vadd.f32 %v7077_v60, %v7154_v36 }
 0x11e   : > { %v7170_v49 = vadd.f32 %v5566_v14, %v7084_v45  ;;  %v679_v21 = vpop.f32.mrb[11].mxu0  ;;  %5688 = vmatmul.mubr.bf16.gmra.mrb[36].mxu0 %v1400_v29  ;;  %v948_v58 = vadd.f32 %v932_v56, %v7158_v6 }
 0x11f   : > { %v7173_v43 = vadd.f32 %v7084_v45, %v679_v21  ;;  %5736 = vmatpush3.bf16.msra.mxu0 %v7143_v28  ;;  %v946_v11 = vadd.f32 %v930_v25, %v7167_v46  ;;  %v1349_v36 = vmax.f32 %v1289_v19, 0.0 }
 0x120   : > { %v949_v22 = vadd.f32 %v933_v31, %v7170_v49  ;;  %5737 = vmatprep.subr.bf16.mxu0 %v7164_v39 }
 0x121   : > { %v5657_v62 = vpop.f32.mrb[20].mxu1  ;;  %v947_v7 = vadd.f32 %v931_v41, %v7173_v43  ;;  %v1350_v41 = vmax.f32 %v1294_v3, 0.0 }
 0x122   : > { %v1301_v17 = vpop.f32.mrb[21].mxu1  ;;  %v1402_v34 = vpack.c.bf16 %v949_v22, %v948_v58  ;;  %v1348_v22 = vmax.f32 %v1286_v12, 0.0 }
 0x123   : > { %v5658_v48 = vpop.f32.mrb[22].mxu1  ;;  %v1401_v50 = vpack.c.bf16 %v947_v7, %v946_v11  ;;  %5738 = vmatpush3.bf16.msra.mxu0 %v7164_v39  ;;  %v1351_v7 = vmax.f32 %v1297_v47, 0.0 }
 0x124   : > { %v1304_v2 = vpop.f32.mrb[23].mxu1  ;;  %v5569_v8 = vpop.f32.mrb[12].mxu0  ;;  %5739 = vmatprep.subr.bf16.mxu0 %v7182_v1 }
 0x125   : > { %v7197_v27 = vadd.f32 %v5569_v8, %v7084_v45  ;;  %v692_v33 = vpop.f32.mrb[13].mxu0  ;;  %5691 = vmatprep.mubr.bf16.mxu0 %v1401_v50  ;;  %v1310_v50 = vadd.f32 %v5657_v62, %v7077_v60 }
 0x126   : > { %v7200_v51 = vadd.f32 %v7084_v45, %v692_v33  ;;  %v5570_v54 = vpop.f32.mrb[14].mxu0  ;;  %5692 = vmatmul.mubr.bf16.gmra.mrb[40].mxu0 %v1402_v34  ;;  %v1302_v33 = vadd.f32 %v7077_v60, %v1301_v17 }
 0x127   : > { %v7203_v61 = vadd.f32 %v5570_v54, %v7084_v45  ;;  %v695_v24 = vpop.f32.mrb[15].mxu0  ;;  %5740 = vmatpush3.bf16.msra.mxu0 %v7182_v1  ;;  %v952_v57 = vadd.f32 %v936_v53, %v7197_v27  ;;  %v1354_v12 = vmax.f32 %v1310_v50, 0.0 }
 0x128   : > { %v7207_v38 = vadd.f32 %v7084_v45, %v695_v24  ;;  %v950_v63 = vadd.f32 %v934_v40, %v7200_v51  ;;  %v1313_v24 = vadd.f32 %v5658_v48, %v7077_v60  ;;  %v1352_v47 = vmax.f32 %v1302_v33, 0.0 }
 0x129   : > { %v5661_v30 = vpop.f32.mrb[24].mxu1  ;;  %v953_v23 = vadd.f32 %v937_v55, %v7203_v61 }
 0x12a   : > { %v1317_v29 = vpop.f32.mrb[25].mxu1  ;;  %v951_v10 = vadd.f32 %v935_v37, %v7207_v38  ;;  %v1355_v19 = vmax.f32 %v1313_v24, 0.0 }
 0x12b   : > { %v5662_v56 = vpop.f32.mrb[26].mxu1  ;;  %v1404_v25 = vpack.c.bf16 %v953_v23, %v952_v57  ;;  %v1305_v57 = vadd.f32 %v7077_v60, %v1304_v2 }
 0x12c   : > { %v1320_v14 = vpop.f32.mrb[27].mxu1  ;;  %v5621_v31 = vpop.f32.mrb[16].mxu0  ;;  %v1403_v21 = vpack.c.bf16 %v951_v10, %v950_v63  ;;  %v1329_v50 = vadd.f32 %v5662_v56, %v7077_v60 }
 0x12d   : > { %v7222_v58 = vadd.f32 %v5621_v31, %v7084_v45  ;;  %v1124_v59 = vpop.f32.mrb[17].mxu0  ;;  %v1353_v2 = vmax.f32 %v1305_v57, 0.0 }
 0x12e   : > { %v7225_v16 = vadd.f32 %v7084_v45, %v1124_v59  ;;  %v5622_v11 = vpop.f32.mrb[18].mxu0  ;;  %5695 = vmatprep.mubr.bf16.mxu0 %v1403_v21  ;;  %v1359_v56 = vmax.f32 %v1329_v50, 0.0 }
 0x12f   : > { %v7228_v4 = vadd.f32 %v5622_v11, %v7084_v45  ;;  %v1127_v0 = vpop.f32.mrb[19].mxu0  ;;  %5696 = vmatmul.mubr.bf16.gmra.mrb[44].mxu0 %v1404_v25  ;;  %v1366_v32 = vadd.f32 %v1350_v41, %v7222_v58 }
 0x130   : > { %v7231_v34 = vadd.f32 %v7084_v45, %v1127_v0  ;;  %v1364_v40 = vadd.f32 %v1348_v22, %v7225_v16  ;;  %v1326_v22 = vadd.f32 %v5661_v30, %v7077_v60  ;;  %v1318_v0 = vadd.f32 %v7077_v60, %v1317_v29 }
 0x131   : > { %v5665_v35 = vpop.f32.mrb[28].mxu1  ;;  %v1367_v8 = vadd.f32 %v1351_v7, %v7228_v4 }
 0x132   : > { %v1333_v53 = vpop.f32.mrb[29].mxu1  ;;  %v1365_v54 = vadd.f32 %v1349_v36, %v7231_v34  ;;  %v1358_v33 = vmax.f32 %v1326_v22, 0.0 }
 0x133   : > { %v5666_v55 = vpop.f32.mrb[30].mxu1  ;;  %v1589_v37 = vpack.c.bf16 %v1367_v8, %v1366_v32 }
 0x134   : > { %v1336_v3 = vpop.f32.mrb[31].mxu1  ;;  %v5625_v23 = vpop.f32.mrb[20].mxu0  ;;  %v1588_v62 = vpack.c.bf16 %v1365_v54, %v1364_v40  ;;  %v1356_v54 = vmax.f32 %v1318_v0, 0.0 }
 0x135   : > { %v7242_v63 = vadd.f32 %v5625_v23, %v7084_v45  ;;  %v1140_v10 = vpop.f32.mrb[21].mxu0  ;;  %v1342_v23 = vadd.f32 %v5665_v35, %v7077_v60 }
 0x136   : > { %v7245_v17 = vadd.f32 %v7084_v45, %v1140_v10  ;;  %v5626_v25 = vpop.f32.mrb[22].mxu0  ;;  %5715 = vmatprep.mubr.bf16.mxu1 %v1588_v62  ;;  %v1334_v10 = vadd.f32 %v7077_v60, %v1333_v53 }
 0x137   : > { %v7248_v48 = vadd.f32 %v5626_v25, %v7084_v45  ;;  %v1143_v31 = vpop.f32.mrb[23].mxu0  ;;  %5716 = vmatmul.mubr.bf16.vlgmr.msra.gmra.mrb[32].mxu1 %v1589_v37  ;;  %v1370_v41 = vadd.f32 %v1354_v12, %v7242_v63  ;;  %v1362_v35 = vmax.f32 %v1342_v23, 0.0 }
 0x138   : > { %v7251_v21 = vadd.f32 %v7084_v45, %v1143_v31  ;;  %5764 = vmatpush3.bf16.msra.mxu1 %v7070_v15  ;;  %v1368_v11 = vadd.f32 %v1352_v47, %v7245_v17  ;;  %v1321_v15 = vadd.f32 %v7077_v60, %v1320_v14  ;;  %v1337_v31 = vadd.f32 %v7077_v60, %v1336_v3 }
 0x139   : > { %v1371_v59 = vadd.f32 %v1355_v19, %v7248_v48  ;;  %5765 = vmatprep.subr.bf16.mxu1 %v7122_v26  ;;  %v1360_v22 = vmax.f32 %v1334_v10, 0.0 }
 0x13a   : > { %v1369_v7 = vadd.f32 %v1353_v2, %v7251_v21  ;;  %v1357_v37 = vmax.f32 %v1321_v15, 0.0  ;;  %v1361_v3 = vmax.f32 %v1337_v31, 0.0 }
 0x13b   : > { %v1591_v36 = vpack.c.bf16 %v1371_v59, %v1370_v41 }
 0x13c   : > { %v1590_v32 = vpack.c.bf16 %v1369_v7, %v1368_v11  ;;  %5766 = vmatpush3.bf16.msra.mxu1 %v7122_v26 }
 0x13d   : > { %v5629_v8 = vpop.f32.mrb[24].mxu0  ;;  %5767 = vmatprep.subr.bf16.mxu1 %v7143_v28 }
 0x13e   : > { %v7266_v30 = vadd.f32 %v5629_v8, %v7084_v45  ;;  %v1156_v40 = vpop.f32.mrb[25].mxu0  ;;  %5719 = vmatprep.mubr.bf16.mxu1 %v1590_v32 }
 0x13f   : > { %v7269_v29 = vadd.f32 %v7084_v45, %v1156_v40  ;;  %v5630_v24 = vpop.f32.mrb[26].mxu0  ;;  %5720 = vmatmul.mubr.bf16.gmra.mrb[36].mxu1 %v1591_v36  ;;  %v6360_v40 = vld [vmem:[%s8453_s6 + $0x68] sm:$0xff]  }
 0x140   : > { %v7272_v26 = vadd.f32 %v5630_v24, %v7084_v45  ;;  %v1159_v14 = vpop.f32.mrb[27].mxu0  ;;  %5768 = vmatpush3.bf16.msra.mxu1 %v7143_v28  ;;  %v1374_v62 = vadd.f32 %v1358_v33, %v7266_v30  ;;  %v1345_v28 = vadd.f32 %v5666_v55, %v7077_v60  ;;  %5741 = vmatprep.subr.bf16.mxu0 %v6360_v40  ;;  %v7325_v24 = vld [vmem:[%s8454_s7] ss:$0 sm:$0xff] }
 0x141   : > { %v7276_v57 = vadd.f32 %v7084_v45, %v1159_v14  ;;  %5769 = vmatprep.subr.bf16.mxu1 %v7164_v39  ;;  %v1372_v47 = vadd.f32 %v1356_v54, %v7269_v29  ;;  %5742 = vmatpush3.bf16.msra.mxu0 %v6360_v40  ;;  %v7318_v54 = vld [vmem:[%s8453_s6 + $0x80] sm:$0xff]  }
 0x142   : > { %v1375_v12 = vadd.f32 %v1359_v56, %v7272_v26  ;;  %v1363_v55 = vmax.f32 %v1345_v28, 0.0 }
 0x143   : > { %v1373_v25 = vadd.f32 %v1357_v37, %v7276_v57 }
 0x144   : > { %v1593_v19 = vpack.c.bf16 %v1375_v12, %v1374_v62  ;;  %5770 = vmatpush3.bf16.msra.mxu1 %v7164_v39 }
 0x145   : > { %v5633_v2 = vpop.f32.mrb[28].mxu0  ;;  %v1592_v41 = vpack.c.bf16 %v1373_v25, %v1372_v47  ;;  %5771 = vmatprep.subr.bf16.mxu1 %v7182_v1 }
 0x146   : > { %v7290_v59 = vadd.f32 %v5633_v2, %v7084_v45  ;;  %v1172_v53 = vpop.f32.mrb[29].mxu0 }
 0x147   : > { %v7293_v11 = vadd.f32 %v7084_v45, %v1172_v53  ;;  %v5634_v7 = vpop.f32.mrb[30].mxu0  ;;  %5723 = vmatprep.mubr.bf16.mxu1 %v1592_v41 }
 0x148   : > { %v7296_v39 = vadd.f32 %v5634_v7, %v7084_v45  ;;  %v1175_v60 = vpop.f32.mrb[31].mxu0  ;;  %5724 = vmatmul.mubr.bf16.gmra.mrb[40].mxu1 %v1593_v19  ;;  %v1378_v36 = vadd.f32 %v1362_v35, %v7290_v59 }
 0x149   : > { %v7299_v0 = vadd.f32 %v7084_v45, %v1175_v60  ;;  %5772 = vmatpush3.bf16.msra.mxu1 %v7182_v1  ;;  %v1376_v32 = vadd.f32 %v1360_v22, %v7293_v11  ;;  %v6361_v45 = vld [vmem:[%s8453_s6 + $0x70] sm:$0xff]   ;;  %v6362_v1 = vld [vmem:[%s8453_s6 + $0x78] sm:$0xff]  }
 0x14a   : > { %v1379_v50 = vadd.f32 %v1363_v55, %v7296_v39  ;;  %5773 = vmatprep.subr.bf16.mxu1 %v6360_v40  ;;  %5743 = vmatprep.subr.bf16.mxu0 %v6361_v45 }
 0x14b   : > { %v1377_v15 = vadd.f32 %v1361_v3, %v7299_v0  ;;  %5744 = vmatpush3.bf16.msra.mxu0 %v6361_v45 }
 0x14c   : > { %v1595_v8 = vpack.c.bf16 %v1379_v50, %v1378_v36  ;;  %5745 = vmatprep.subr.bf16.mxu0 %v6362_v1 }
 0x14d   : > { %v1594_v33 = vpack.c.bf16 %v1377_v15, %v1376_v32  ;;  %5774 = vmatpush3.bf16.msra.mxu1 %v6360_v40 }
 0x14e   : > { %5775 = vmatprep.subr.bf16.mxu1 %v6361_v45 }
 0x14f   : > { %5727 = vmatprep.mubr.bf16.mxu1 %v1594_v33  ;;  %5746 = vmatpush3.bf16.msra.mxu0 %v6362_v1  ;;  %v7341_v33 = vld [vmem:[%s8453_s6 + $0x88] sm:$0xff]  }
 0x150   : > { %5728 = vmatmul.mubr.bf16.gmra.mrb[44].mxu1 %v1595_v8  ;;  %5795 = vmatprep.subr.bf16.mxu0 %v7318_v54 }
 0x151   : > { %5776 = vmatpush3.bf16.msra.mxu1 %v6361_v45 }
 0x152   : > { %5777 = vmatprep.subr.bf16.mxu1 %v6362_v1 }
 0x155   : > { %5778 = vmatpush3.bf16.msra.mxu1 %v6362_v1 }
 0x156   : > { %5827 = vmatprep.subr.bf16.mxu1 %v7318_v54 }
 0x1e9   : > { %v5685_v56 = vpop.f32.mrb[32].mxu0 }
 0x1ea   : > { %v1502_v14 = vadd.f32 %v5685_v56, %v7325_v24  ;;  %v1493_v37 = vpop.f32.mrb[33].mxu0 }
 0x1eb   : > { %v1494_v23 = vadd.f32 %v7325_v24, %v1493_v37  ;;  %v5686_v62 = vpop.f32.mrb[34].mxu0 }
 0x1ec   : > { %v1558_v12 = vmax.f32 %v1502_v14, 0.0  ;;  %v1505_v10 = vadd.f32 %v5686_v62, %v7325_v24  ;;  %v1496_v47 = vpop.f32.mrb[35].mxu0 }
 0x1ed   : > { %v1556_v25 = vmax.f32 %v1494_v23, 0.0  ;;  %v1497_v28 = vadd.f32 %v7325_v24, %v1496_v47  ;;  %v7351_v23 = vld [vmem:[%s8453_s6 + $0x90] sm:$0xff]  }
 0x1ee   : > { %v1559_v19 = vmax.f32 %v1505_v10, 0.0  ;;  %v1574_v2 = vadd.f32 %v1558_v12, %v7089_v42 }
 0x1ef   : > { %v1557_v31 = vmax.f32 %v1497_v28, 0.0  ;;  %v1572_v35 = vadd.f32 %v1556_v25, %v7092_v18 }
 0x1f0   : > { %v1575_v41 = vadd.f32 %v1559_v19, %v7095_v5 }
 0x1f1   : > { %v1573_v53 = vadd.f32 %v1557_v31, %v7098_v44  ;;  %v5689_v22 = vpop.f32.mrb[36].mxu0 }
 0x1f2   : > { %v1745_v7 = vpack.c.bf16 %v1575_v41, %v1574_v2  ;;  %v1518_v55 = vadd.f32 %v5689_v22, %v7325_v24  ;;  %v1509_v60 = vpop.f32.mrb[37].mxu0  ;;  %v7363_v22 = vld [vmem:[%s8453_s6 + $0x98] sm:$0xff]  }
 0x1f3   : > { %v1510_v3 = vadd.f32 %v7325_v24, %v1509_v60  ;;  %v5690_v36 = vpop.f32.mrb[38].mxu0  ;;  %v1744_v50 = vpack.c.bf16 %v1573_v53, %v1572_v35 }
 0x1f4   : > { %v1562_v32 = vmax.f32 %v1518_v55, 0.0  ;;  %v1521_v15 = vadd.f32 %v5690_v36, %v7325_v24  ;;  %v1512_v8 = vpop.f32.mrb[39].mxu0 }
 0x1f5   : > { %v1560_v40 = vmax.f32 %v1510_v3, 0.0  ;;  %v1513_v45 = vadd.f32 %v7325_v24, %v1512_v8  ;;  %5747 = vmatprep.mubr.bf16.mxu0 %v1744_v50 }
 0x1f6   : > { %v1563_v1 = vmax.f32 %v1521_v15, 0.0  ;;  %5748 = vmatmul.mubr.bf16.vlgmr.msra.gmra.mrb[48].mxu0 %v1745_v7  ;;  %v1578_v14 = vadd.f32 %v1562_v32, %v7117_v52  ;;  %v7373_v32 = vld [vmem:[%s8453_s6 + $0xa0] sm:$0xff]  }
 0x1f7   : > { %v1561_v56 = vmax.f32 %v1513_v45, 0.0  ;;  %5796 = vmatpush3.bf16.msra.mxu0 %v7318_v54  ;;  %v1576_v62 = vadd.f32 %v1560_v40, %v7125_v20 }
 0x1f8   : > { %v1579_v37 = vadd.f32 %v1563_v1, %v7128_v9  ;;  %5797 = vmatprep.subr.bf16.mxu0 %v7341_v33 }
 0x1f9   : > { %v1577_v12 = vadd.f32 %v1561_v56, %v7131_v13  ;;  %v5693_v10 = vpop.f32.mrb[40].mxu0 }
 0x1fa   : > { %v1534_v47 = vadd.f32 %v5693_v10, %v7325_v24  ;;  %v1525_v25 = vpop.f32.mrb[41].mxu0  ;;  %v1747_v28 = vpack.c.bf16 %v1579_v37, %v1578_v14 }
 0x1fb   : > { %v1526_v19 = vadd.f32 %v7325_v24, %v1525_v25  ;;  %v5694_v31 = vpop.f32.mrb[42].mxu0  ;;  %v1746_v2 = vpack.c.bf16 %v1577_v12, %v1576_v62  ;;  %5798 = vmatpush3.bf16.msra.mxu0 %v7341_v33 }
 0x1fc   : > { %v1566_v41 = vmax.f32 %v1534_v47, 0.0  ;;  %v1537_v35 = vadd.f32 %v5694_v31, %v7325_v24  ;;  %v1528_v53 = vpop.f32.mrb[43].mxu0  ;;  %5799 = vmatprep.subr.bf16.mxu0 %v7351_v23 }
 0x1fd   : > { %v1564_v7 = vmax.f32 %v1526_v19, 0.0  ;;  %v1529_v55 = vadd.f32 %v7325_v24, %v1528_v53  ;;  %5751 = vmatprep.mubr.bf16.mxu0 %v1746_v2 }
 0x1fe   : > { %v1567_v60 = vmax.f32 %v1537_v35, 0.0  ;;  %5752 = vmatmul.mubr.bf16.gmra.mrb[52].mxu0 %v1747_v28  ;;  %v1582_v36 = vadd.f32 %v1566_v41, %v7158_v6 }
 0x1ff   : > { %v1565_v3 = vmax.f32 %v1529_v55, 0.0  ;;  %5800 = vmatpush3.bf16.msra.mxu0 %v7351_v23  ;;  %v1580_v15 = vadd.f32 %v1564_v7, %v7167_v46 }
 0x200   : > { %v1583_v50 = vadd.f32 %v1567_v60, %v7170_v49  ;;  %5801 = vmatprep.subr.bf16.mxu0 %v7363_v22 }
 0x201   : > { %v1581_v8 = vadd.f32 %v1565_v3, %v7173_v43 }
 0x202   : > { %v5697_v40 = vpop.f32.mrb[44].mxu0  ;;  %v1749_v45 = vpack.c.bf16 %v1583_v50, %v1582_v36 }
 0x203   : > { %v1550_v1 = vadd.f32 %v5697_v40, %v7325_v24  ;;  %v1541_v56 = vpop.f32.mrb[45].mxu0  ;;  %v1748_v14 = vpack.c.bf16 %v1581_v8, %v1580_v15  ;;  %5802 = vmatpush3.bf16.msra.mxu0 %v7363_v22 }
 0x204   : > { %v1542_v37 = vadd.f32 %v7325_v24, %v1541_v56  ;;  %v5698_v62 = vpop.f32.mrb[46].mxu0  ;;  %5803 = vmatprep.subr.bf16.mxu0 %v7373_v32 }
 0x205   : > { %v1570_v12 = vmax.f32 %v1550_v1, 0.0  ;;  %v1553_v10 = vadd.f32 %v5698_v62, %v7325_v24  ;;  %v1544_v47 = vpop.f32.mrb[47].mxu0  ;;  %5755 = vmatprep.mubr.bf16.mxu0 %v1748_v14 }
 0x206   : > { %v1568_v25 = vmax.f32 %v1542_v37, 0.0  ;;  %v1545_v28 = vadd.f32 %v7325_v24, %v1544_v47  ;;  %5756 = vmatmul.mubr.bf16.gmra.mrb[56].mxu0 %v1749_v45 }
 0x207   : > { %v1571_v19 = vmax.f32 %v1553_v10, 0.0  ;;  %5804 = vmatpush3.bf16.msra.mxu0 %v7373_v32  ;;  %v1586_v2 = vadd.f32 %v1570_v12, %v7197_v27 }
 0x208   : > { %v1569_v31 = vmax.f32 %v1545_v28, 0.0  ;;  %v1584_v35 = vadd.f32 %v1568_v25, %v7200_v51 }
 0x209   : > { %v1587_v41 = vadd.f32 %v1571_v19, %v7203_v61 }
 0x20a   : > { %v1585_v53 = vadd.f32 %v1569_v31, %v7207_v38  ;;  %v5717_v7 = vpop.f32.mrb[32].mxu1 }
 0x20b   : > { %v1639_v55 = vadd.f32 %v5717_v7, %v7325_v24  ;;  %v1630_v60 = vpop.f32.mrb[33].mxu1  ;;  %v1751_v3 = vpack.c.bf16 %v1587_v41, %v1586_v2 }
 0x20c   : > { %v1631_v36 = vadd.f32 %v7325_v24, %v1630_v60  ;;  %v5718_v50 = vpop.f32.mrb[34].mxu1  ;;  %v1750_v15 = vpack.c.bf16 %v1585_v53, %v1584_v35 }
 0x20d   : > { %v1695_v8 = vmax.f32 %v1639_v55, 0.0  ;;  %v1642_v40 = vadd.f32 %v5718_v50, %v7325_v24  ;;  %v1633_v45 = vpop.f32.mrb[35].mxu1 }
 0x20e   : > { %v1693_v1 = vmax.f32 %v1631_v36, 0.0  ;;  %v1634_v56 = vadd.f32 %v7325_v24, %v1633_v45  ;;  %5759 = vmatprep.mubr.bf16.mxu0 %v1750_v15 }
 0x20f   : > { %v1696_v14 = vmax.f32 %v1642_v40, 0.0  ;;  %5760 = vmatmul.mubr.bf16.gmra.mrb[60].mxu0 %v1751_v3  ;;  %v1711_v62 = vadd.f32 %v1695_v8, %v7222_v58 }
 0x210   : > { %v1694_v37 = vmax.f32 %v1634_v56, 0.0  ;;  %v1709_v10 = vadd.f32 %v1693_v1, %v7225_v16 }
 0x211   : > { %v1712_v12 = vadd.f32 %v1696_v14, %v7228_v4 }
 0x212   : > { %v1710_v47 = vadd.f32 %v1694_v37, %v7231_v34  ;;  %v5721_v25 = vpop.f32.mrb[36].mxu1 }
 0x213   : > { %v1936_v28 = vpack.c.bf16 %v1712_v12, %v1711_v62  ;;  %v1655_v19 = vadd.f32 %v5721_v25, %v7325_v24  ;;  %v1646_v31 = vpop.f32.mrb[37].mxu1 }
 0x214   : > { %v1647_v2 = vadd.f32 %v7325_v24, %v1646_v31  ;;  %v5722_v41 = vpop.f32.mrb[38].mxu1  ;;  %v1935_v35 = vpack.c.bf16 %v1710_v47, %v1709_v10 }
 0x215   : > { %v1699_v53 = vmax.f32 %v1655_v19, 0.0  ;;  %v1658_v7 = vadd.f32 %v5722_v41, %v7325_v24  ;;  %v1649_v55 = vpop.f32.mrb[39].mxu1 }
 0x216   : > { %v1697_v60 = vmax.f32 %v1647_v2, 0.0  ;;  %v1650_v3 = vadd.f32 %v7325_v24, %v1649_v55  ;;  %5779 = vmatprep.mubr.bf16.mxu1 %v1935_v35 }
 0x217   : > { %v1700_v36 = vmax.f32 %v1658_v7, 0.0  ;;  %5780 = vmatmul.mubr.bf16.vlgmr.msra.gmra.mrb[48].mxu1 %v1936_v28  ;;  %v1715_v15 = vadd.f32 %v1699_v53, %v7242_v63 }
 0x218   : > { %v1698_v50 = vmax.f32 %v1650_v3, 0.0  ;;  %5828 = vmatpush3.bf16.msra.mxu1 %v7318_v54  ;;  %v1713_v40 = vadd.f32 %v1697_v60, %v7245_v17 }
 0x219   : > { %v1716_v8 = vadd.f32 %v1700_v36, %v7248_v48  ;;  %5829 = vmatprep.subr.bf16.mxu1 %v7341_v33 }
 0x21a   : > { %v1714_v45 = vadd.f32 %v1698_v50, %v7251_v21 }
 0x21b   : > { %v5725_v1 = vpop.f32.mrb[40].mxu1  ;;  %v1938_v56 = vpack.c.bf16 %v1716_v8, %v1715_v15 }
 0x21c   : > { %v1671_v14 = vadd.f32 %v5725_v1, %v7325_v24  ;;  %v1662_v37 = vpop.f32.mrb[41].mxu1  ;;  %v1937_v62 = vpack.c.bf16 %v1714_v45, %v1713_v40  ;;  %5830 = vmatpush3.bf16.msra.mxu1 %v7341_v33 }
 0x21d   : > { %v1663_v54 = vadd.f32 %v7325_v24, %v1662_v37  ;;  %v5726_v12 = vpop.f32.mrb[42].mxu1  ;;  %5831 = vmatprep.subr.bf16.mxu1 %v7351_v23 }
 0x21e   : > { %v1703_v10 = vmax.f32 %v1671_v14, 0.0  ;;  %v1674_v47 = vadd.f32 %v5726_v12, %v7325_v24  ;;  %v1665_v25 = vpop.f32.mrb[43].mxu1  ;;  %5783 = vmatprep.mubr.bf16.mxu1 %v1937_v62 }
 0x21f   : > { %v1701_v28 = vmax.f32 %v1663_v54, 0.0  ;;  %v1666_v19 = vadd.f32 %v7325_v24, %v1665_v25  ;;  %5784 = vmatmul.mubr.bf16.gmra.mrb[52].mxu1 %v1938_v56  ;;  %v7441_v25 = vld [vmem:[%s8453_s6 + $0xc0] sm:$0xff]  }
 0x220   : > { %v1704_v31 = vmax.f32 %v1674_v47, 0.0  ;;  %5832 = vmatpush3.bf16.msra.mxu1 %v7351_v23  ;;  %v1719_v33 = vadd.f32 %v1703_v10, %v7266_v30  ;;  %v6370_v47 = vld [vmem:[%s8453_s6 + $0xb8] sm:$0xff]  }
 0x221   : > { %v1702_v2 = vmax.f32 %v1666_v19, 0.0  ;;  %5833 = vmatprep.subr.bf16.mxu1 %v7363_v22  ;;  %v1717_v35 = vadd.f32 %v1701_v28, %v7269_v29  ;;  %v7448_v28 = vld [vmem:[%s8454_s7 + $0x1] ss:$0 sm:$0xff] }
 0x222   : > { %v1720_v41 = vadd.f32 %v1704_v31, %v7272_v26 }
 0x223   : > { %v1718_v53 = vadd.f32 %v1702_v2, %v7276_v57  ;;  %v5729_v7 = vpop.f32.mrb[44].mxu1 }
 0x224   : > { %v1687_v55 = vadd.f32 %v5729_v7, %v7325_v24  ;;  %v1678_v60 = vpop.f32.mrb[45].mxu1  ;;  %v1940_v3 = vpack.c.bf16 %v1720_v41, %v1719_v33  ;;  %5834 = vmatpush3.bf16.msra.mxu1 %v7363_v22 }
 0x225   : > { %v1679_v23 = vadd.f32 %v7325_v24, %v1678_v60  ;;  %v5730_v36 = vpop.f32.mrb[46].mxu1  ;;  %v1939_v50 = vpack.c.bf16 %v1718_v53, %v1717_v35  ;;  %5835 = vmatprep.subr.bf16.mxu1 %v7373_v32 }
 0x226   : > { %v1707_v15 = vmax.f32 %v1687_v55, 0.0  ;;  %v1690_v8 = vadd.f32 %v5730_v36, %v7325_v24  ;;  %v1681_v40 = vpop.f32.mrb[47].mxu1 }
 0x227   : > { %v1705_v45 = vmax.f32 %v1679_v23, 0.0  ;;  %v1682_v1 = vadd.f32 %v7325_v24, %v1681_v40  ;;  %5787 = vmatprep.mubr.bf16.mxu1 %v1939_v50  ;;  %v6368_v24 = vld [vmem:[%s8453_s6 + $0xa8] sm:$0xff]  }
 0x228   : > { %v1708_v56 = vmax.f32 %v1690_v8, 0.0  ;;  %5788 = vmatmul.mubr.bf16.gmra.mrb[56].mxu1 %v1940_v3  ;;  %v1723_v22 = vadd.f32 %v1707_v15, %v7290_v59  ;;  %5805 = vmatprep.subr.bf16.mxu0 %v6368_v24 }
 0x229   : > { %v1706_v14 = vmax.f32 %v1682_v1, 0.0  ;;  %5836 = vmatpush3.bf16.msra.mxu1 %v7373_v32  ;;  %v1721_v62 = vadd.f32 %v1705_v45, %v7293_v11  ;;  %5806 = vmatpush3.bf16.msra.mxu0 %v6368_v24  ;;  %v6369_v32 = vld [vmem:[%s8453_s6 + $0xb0] sm:$0xff]  }
 0x22a   : > { %v1724_v37 = vadd.f32 %v1708_v56, %v7296_v39  ;;  %5837 = vmatprep.subr.bf16.mxu1 %v6368_v24  ;;  %5807 = vmatprep.subr.bf16.mxu0 %v6369_v32 }
 0x22b   : > { %v1722_v54 = vadd.f32 %v1706_v14, %v7299_v0 }
 0x22c   : > { %v1942_v12 = vpack.c.bf16 %v1724_v37, %v1723_v22 }
 0x22d   : > { %v1941_v10 = vpack.c.bf16 %v1722_v54, %v1721_v62  ;;  %5838 = vmatpush3.bf16.msra.mxu1 %v6368_v24  ;;  %5808 = vmatpush3.bf16.msra.mxu0 %v6369_v32 }
 0x22e   : > { %5839 = vmatprep.subr.bf16.mxu1 %v6369_v32  ;;  %5809 = vmatprep.subr.bf16.mxu0 %v6370_v47 }
 0x22f   : > { %5791 = vmatprep.mubr.bf16.mxu1 %v1941_v10  ;;  %v7464_v10 = vld [vmem:[%s8453_s6 + $0xc8] sm:$0xff]  }
 0x230   : > { %5792 = vmatmul.mubr.bf16.gmra.mrb[60].mxu1 %v1942_v12 }
 0x231   : > { %5840 = vmatpush3.bf16.msra.mxu1 %v6369_v32  ;;  %5810 = vmatpush3.bf16.msra.mxu0 %v6370_v47 }
 0x232   : > { %5841 = vmatprep.subr.bf16.mxu1 %v6370_v47  ;;  %5859 = vmatprep.subr.bf16.mxu0 %v7441_v25 }
 0x235   : > { %5842 = vmatpush3.bf16.msra.mxu1 %v6370_v47 }
 0x236   : > { %5891 = vmatprep.subr.bf16.mxu1 %v7441_v25 }
 0x2c9   : > { %v5749_v19 = vpop.f32.mrb[48].mxu0 }
 0x2ca   : > { %v1849_v31 = vadd.f32 %v5749_v19, %v7448_v28  ;;  %v1840_v2 = vpop.f32.mrb[49].mxu0 }
 0x2cb   : > { %v1841_v33 = vadd.f32 %v7448_v28, %v1840_v2  ;;  %v5750_v41 = vpop.f32.mrb[50].mxu0 }
 0x2cc   : > { %v1905_v35 = vmax.f32 %v1849_v31, 0.0  ;;  %v1852_v53 = vadd.f32 %v5750_v41, %v7448_v28  ;;  %v1843_v7 = vpop.f32.mrb[51].mxu0 }
 0x2cd   : > { %v1903_v55 = vmax.f32 %v1841_v33, 0.0  ;;  %v1844_v60 = vadd.f32 %v7448_v28, %v1843_v7  ;;  %v7474_v33 = vld [vmem:[%s8453_s6 + $0xd0] sm:$0xff]  }
 0x2ce   : > { %v1906_v3 = vmax.f32 %v1852_v53, 0.0  ;;  %v1921_v36 = vadd.f32 %v1905_v35, %v7089_v42 }
 0x2cf   : > { %v1904_v23 = vmax.f32 %v1844_v60, 0.0  ;;  %v1919_v15 = vadd.f32 %v1903_v55, %v7092_v18 }
 0x2d0   : > { %v1922_v50 = vadd.f32 %v1906_v3, %v7095_v5 }
 0x2d1   : > { %v1920_v8 = vadd.f32 %v1904_v23, %v7098_v44  ;;  %v5753_v40 = vpop.f32.mrb[52].mxu0 }
 0x2d2   : > { %v2092_v45 = vpack.c.bf16 %v1922_v50, %v1921_v36  ;;  %v1865_v1 = vadd.f32 %v5753_v40, %v7448_v28  ;;  %v1856_v56 = vpop.f32.mrb[53].mxu0  ;;  %v7486_v40 = vld [vmem:[%s8453_s6 + $0xd8] sm:$0xff]  }
 0x2d3   : > { %v1857_v14 = vadd.f32 %v7448_v28, %v1856_v56  ;;  %v5754_v22 = vpop.f32.mrb[54].mxu0  ;;  %v2091_v37 = vpack.c.bf16 %v1920_v8, %v1919_v15 }
 0x2d4   : > { %v1909_v62 = vmax.f32 %v1865_v1, 0.0  ;;  %v1868_v54 = vadd.f32 %v5754_v22, %v7448_v28  ;;  %v1859_v12 = vpop.f32.mrb[55].mxu0 }
 0x2d5   : > { %v1907_v24 = vmax.f32 %v1857_v14, 0.0  ;;  %v1860_v32 = vadd.f32 %v7448_v28, %v1859_v12  ;;  %5811 = vmatprep.mubr.bf16.mxu0 %v2091_v37 }
 0x2d6   : > { %v1910_v47 = vmax.f32 %v1868_v54, 0.0  ;;  %5812 = vmatmul.mubr.bf16.vlgmr.msra.gmra.mrb[64].mxu0 %v2092_v45  ;;  %v1925_v31 = vadd.f32 %v1909_v62, %v7117_v52  ;;  %v7496_v62 = vld [vmem:[%s8453_s6 + $0xe0] sm:$0xff]  }
 0x2d7   : > { %v1908_v19 = vmax.f32 %v1860_v32, 0.0  ;;  %5860 = vmatpush3.bf16.msra.mxu0 %v7441_v25  ;;  %v1923_v41 = vadd.f32 %v1907_v24, %v7125_v20 }
 0x2d8   : > { %v1926_v2 = vadd.f32 %v1910_v47, %v7128_v9  ;;  %5861 = vmatprep.subr.bf16.mxu0 %v7464_v10 }
 0x2d9   : > { %v1924_v35 = vadd.f32 %v1908_v19, %v7131_v13  ;;  %v5757_v53 = vpop.f32.mrb[56].mxu0 }
 0x2da   : > { %v1881_v7 = vadd.f32 %v5757_v53, %v7448_v28  ;;  %v1872_v55 = vpop.f32.mrb[57].mxu0  ;;  %v2094_v60 = vpack.c.bf16 %v1926_v2, %v1925_v31 }
 0x2db   : > { %v1873_v3 = vadd.f32 %v7448_v28, %v1872_v55  ;;  %v5758_v23 = vpop.f32.mrb[58].mxu0  ;;  %v2093_v36 = vpack.c.bf16 %v1924_v35, %v1923_v41  ;;  %5862 = vmatpush3.bf16.msra.mxu0 %v7464_v10 }
 0x2dc   : > { %v1913_v50 = vmax.f32 %v1881_v7, 0.0  ;;  %v1884_v15 = vadd.f32 %v5758_v23, %v7448_v28  ;;  %v1875_v8 = vpop.f32.mrb[59].mxu0  ;;  %5863 = vmatprep.subr.bf16.mxu0 %v7474_v33 }
 0x2dd   : > { %v1911_v45 = vmax.f32 %v1873_v3, 0.0  ;;  %v1876_v1 = vadd.f32 %v7448_v28, %v1875_v8  ;;  %5815 = vmatprep.mubr.bf16.mxu0 %v2093_v36 }
 0x2de   : > { %v1914_v56 = vmax.f32 %v1884_v15, 0.0  ;;  %5816 = vmatmul.mubr.bf16.gmra.mrb[68].mxu0 %v2094_v60  ;;  %v1929_v22 = vadd.f32 %v1913_v50, %v7158_v6 }
 0x2df   : > { %v1912_v14 = vmax.f32 %v1876_v1, 0.0  ;;  %5864 = vmatpush3.bf16.msra.mxu0 %v7474_v33  ;;  %v1927_v54 = vadd.f32 %v1911_v45, %v7167_v46 }
 0x2e0   : > { %v1930_v37 = vadd.f32 %v1914_v56, %v7170_v49  ;;  %5865 = vmatprep.subr.bf16.mxu0 %v7486_v40 }
 0x2e1   : > { %v1928_v12 = vadd.f32 %v1912_v14, %v7173_v43 }
 0x2e2   : > { %v5761_v24 = vpop.f32.mrb[60].mxu0  ;;  %v2096_v32 = vpack.c.bf16 %v1930_v37, %v1929_v22 }
 0x2e3   : > { %v1897_v47 = vadd.f32 %v5761_v24, %v7448_v28  ;;  %v1888_v19 = vpop.f32.mrb[61].mxu0  ;;  %v2095_v31 = vpack.c.bf16 %v1928_v12, %v1927_v54  ;;  %5866 = vmatpush3.bf16.msra.mxu0 %v7486_v40 }
 0x2e4   : > { %v1889_v2 = vadd.f32 %v7448_v28, %v1888_v19  ;;  %v5762_v41 = vpop.f32.mrb[62].mxu0  ;;  %5867 = vmatprep.subr.bf16.mxu0 %v7496_v62 }
 0x2e5   : > { %v1917_v35 = vmax.f32 %v1897_v47, 0.0  ;;  %v1900_v53 = vadd.f32 %v5762_v41, %v7448_v28  ;;  %v1891_v7 = vpop.f32.mrb[63].mxu0  ;;  %5819 = vmatprep.mubr.bf16.mxu0 %v2095_v31 }
 0x2e6   : > { %v1915_v55 = vmax.f32 %v1889_v2, 0.0  ;;  %v1892_v60 = vadd.f32 %v7448_v28, %v1891_v7  ;;  %5820 = vmatmul.mubr.bf16.gmra.mrb[72].mxu0 %v2096_v32 }
 0x2e7   : > { %v1918_v3 = vmax.f32 %v1900_v53, 0.0  ;;  %5868 = vmatpush3.bf16.msra.mxu0 %v7496_v62  ;;  %v1933_v36 = vadd.f32 %v1917_v35, %v7197_v27 }
 0x2e8   : > { %v1916_v23 = vmax.f32 %v1892_v60, 0.0  ;;  %v1931_v15 = vadd.f32 %v1915_v55, %v7200_v51 }
 0x2e9   : > { %v1934_v50 = vadd.f32 %v1918_v3, %v7203_v61 }
 0x2ea   : > { %v1932_v8 = vadd.f32 %v1916_v23, %v7207_v38  ;;  %v5781_v45 = vpop.f32.mrb[48].mxu1 }
 0x2eb   : > { %v1986_v1 = vadd.f32 %v5781_v45, %v7448_v28  ;;  %v1977_v56 = vpop.f32.mrb[49].mxu1  ;;  %v2098_v14 = vpack.c.bf16 %v1934_v50, %v1933_v36 }
 0x2ec   : > { %v1978_v22 = vadd.f32 %v7448_v28, %v1977_v56  ;;  %v5782_v37 = vpop.f32.mrb[50].mxu1  ;;  %v2097_v54 = vpack.c.bf16 %v1932_v8, %v1931_v15 }
 0x2ed   : > { %v2042_v12 = vmax.f32 %v1986_v1, 0.0  ;;  %v1989_v24 = vadd.f32 %v5782_v37, %v7448_v28  ;;  %v1980_v32 = vpop.f32.mrb[51].mxu1 }
 0x2ee   : > { %v2040_v47 = vmax.f32 %v1978_v22, 0.0  ;;  %v1981_v19 = vadd.f32 %v7448_v28, %v1980_v32  ;;  %5823 = vmatprep.mubr.bf16.mxu0 %v2097_v54 }
 0x2ef   : > { %v2043_v31 = vmax.f32 %v1989_v24, 0.0  ;;  %5824 = vmatmul.mubr.bf16.gmra.mrb[76].mxu0 %v2098_v14  ;;  %v2058_v41 = vadd.f32 %v2042_v12, %v7222_v58 }
 0x2f0   : > { %v2041_v2 = vmax.f32 %v1981_v19, 0.0  ;;  %v2056_v53 = vadd.f32 %v2040_v47, %v7225_v16 }
 0x2f1   : > { %v2059_v35 = vadd.f32 %v2043_v31, %v7228_v4 }
 0x2f2   : > { %v2057_v7 = vadd.f32 %v2041_v2, %v7231_v34  ;;  %v5785_v55 = vpop.f32.mrb[52].mxu1 }
 0x2f3   : > { %v2283_v60 = vpack.c.bf16 %v2059_v35, %v2058_v41  ;;  %v2002_v3 = vadd.f32 %v5785_v55, %v7448_v28  ;;  %v1993_v23 = vpop.f32.mrb[53].mxu1 }
 0x2f4   : > { %v1994_v36 = vadd.f32 %v7448_v28, %v1993_v23  ;;  %v5786_v50 = vpop.f32.mrb[54].mxu1  ;;  %v2282_v15 = vpack.c.bf16 %v2057_v7, %v2056_v53 }
 0x2f5   : > { %v2046_v8 = vmax.f32 %v2002_v3, 0.0  ;;  %v2005_v45 = vadd.f32 %v5786_v50, %v7448_v28  ;;  %v1996_v1 = vpop.f32.mrb[55].mxu1 }
 0x2f6   : > { %v2044_v56 = vmax.f32 %v1994_v36, 0.0  ;;  %v1997_v14 = vadd.f32 %v7448_v28, %v1996_v1  ;;  %5843 = vmatprep.mubr.bf16.mxu1 %v2282_v15 }
 0x2f7   : > { %v2047_v22 = vmax.f32 %v2005_v45, 0.0  ;;  %5844 = vmatmul.mubr.bf16.vlgmr.msra.gmra.mrb[64].mxu1 %v2283_v60  ;;  %v2062_v54 = vadd.f32 %v2046_v8, %v7242_v63 }
 0x2f8   : > { %v2045_v37 = vmax.f32 %v1997_v14, 0.0  ;;  %5892 = vmatpush3.bf16.msra.mxu1 %v7441_v25  ;;  %v2060_v24 = vadd.f32 %v2044_v56, %v7245_v17 }
 0x2f9   : > { %v2063_v12 = vadd.f32 %v2047_v22, %v7248_v48  ;;  %5893 = vmatprep.subr.bf16.mxu1 %v7464_v10 }
 0x2fa   : > { %v2061_v32 = vadd.f32 %v2045_v37, %v7251_v21 }
 0x2fb   : > { %v5789_v47 = vpop.f32.mrb[56].mxu1  ;;  %v2285_v19 = vpack.c.bf16 %v2063_v12, %v2062_v54 }
 0x2fc   : > { %v2018_v31 = vadd.f32 %v5789_v47, %v7448_v28  ;;  %v2009_v2 = vpop.f32.mrb[57].mxu1  ;;  %v2284_v41 = vpack.c.bf16 %v2061_v32, %v2060_v24  ;;  %5894 = vmatpush3.bf16.msra.mxu1 %v7464_v10 }
 0x2fd   : > { %v2010_v25 = vadd.f32 %v7448_v28, %v2009_v2  ;;  %v5790_v35 = vpop.f32.mrb[58].mxu1  ;;  %5895 = vmatprep.subr.bf16.mxu1 %v7474_v33 }
 0x2fe   : > { %v2050_v53 = vmax.f32 %v2018_v31, 0.0  ;;  %v2021_v7 = vadd.f32 %v5790_v35, %v7448_v28  ;;  %v2012_v55 = vpop.f32.mrb[59].mxu1  ;;  %5847 = vmatprep.mubr.bf16.mxu1 %v2284_v41 }
 0x2ff   : > { %v2048_v60 = vmax.f32 %v2010_v25, 0.0  ;;  %v2013_v3 = vadd.f32 %v7448_v28, %v2012_v55  ;;  %5848 = vmatmul.mubr.bf16.gmra.mrb[68].mxu1 %v2285_v19  ;;  %v7564_v55 = vld [vmem:[%s8453_s6 + $0x100] sm:$0xff]  }
 0x300   : > { %v2051_v23 = vmax.f32 %v2021_v7, 0.0  ;;  %5896 = vmatpush3.bf16.msra.mxu1 %v7474_v33  ;;  %v2066_v10 = vadd.f32 %v2050_v53, %v7266_v30  ;;  %v6378_v7 = vld [vmem:[%s8453_s6 + $0xf8] sm:$0xff]  }
 0x301   : > { %v2049_v36 = vmax.f32 %v2013_v3, 0.0  ;;  %5897 = vmatprep.subr.bf16.mxu1 %v7486_v40  ;;  %v2064_v15 = vadd.f32 %v2048_v60, %v7269_v29  ;;  %v7571_v60 = vld [vmem:[%s8454_s7 + $0x2] ss:$0 sm:$0xff] }
 0x302   : > { %v2067_v50 = vadd.f32 %v2051_v23, %v7272_v26 }
 0x303   : > { %v2065_v8 = vadd.f32 %v2049_v36, %v7276_v57  ;;  %v5793_v45 = vpop.f32.mrb[60].mxu1 }
 0x304   : > { %v2034_v1 = vadd.f32 %v5793_v45, %v7448_v28  ;;  %v2025_v56 = vpop.f32.mrb[61].mxu1  ;;  %v2287_v14 = vpack.c.bf16 %v2067_v50, %v2066_v10  ;;  %5898 = vmatpush3.bf16.msra.mxu1 %v7486_v40 }
 0x305   : > { %v2026_v33 = vadd.f32 %v7448_v28, %v2025_v56  ;;  %v5794_v22 = vpop.f32.mrb[62].mxu1  ;;  %v2286_v37 = vpack.c.bf16 %v2065_v8, %v2064_v15  ;;  %5899 = vmatprep.subr.bf16.mxu1 %v7496_v62 }
 0x306   : > { %v2054_v54 = vmax.f32 %v2034_v1, 0.0  ;;  %v2037_v12 = vadd.f32 %v5794_v22, %v7448_v28  ;;  %v2028_v24 = vpop.f32.mrb[63].mxu1 }
 0x307   : > { %v2052_v32 = vmax.f32 %v2026_v33, 0.0  ;;  %v2029_v47 = vadd.f32 %v7448_v28, %v2028_v24  ;;  %5851 = vmatprep.mubr.bf16.mxu1 %v2286_v37  ;;  %v6376_v28 = vld [vmem:[%s8453_s6 + $0xe8] sm:$0xff]  }
 0x308   : > { %v2055_v19 = vmax.f32 %v2037_v12, 0.0  ;;  %5852 = vmatmul.mubr.bf16.gmra.mrb[72].mxu1 %v2287_v14  ;;  %v2070_v40 = vadd.f32 %v2054_v54, %v7290_v59  ;;  %5869 = vmatprep.subr.bf16.mxu0 %v6376_v28 }
 0x309   : > { %v2053_v31 = vmax.f32 %v2029_v47, 0.0  ;;  %5900 = vmatpush3.bf16.msra.mxu1 %v7496_v62  ;;  %v2068_v41 = vadd.f32 %v2052_v32, %v7293_v11  ;;  %5870 = vmatpush3.bf16.msra.mxu0 %v6376_v28  ;;  %v6377_v62 = vld [vmem:[%s8453_s6 + $0xf0] sm:$0xff]  }
 0x30a   : > { %v2071_v2 = vadd.f32 %v2055_v19, %v7296_v39  ;;  %5901 = vmatprep.subr.bf16.mxu1 %v6376_v28  ;;  %5871 = vmatprep.subr.bf16.mxu0 %v6377_v62 }
 0x30b   : > { %v2069_v25 = vadd.f32 %v2053_v31, %v7299_v0 }
 0x30c   : > { %v2289_v35 = vpack.c.bf16 %v2071_v2, %v2070_v40 }
 0x30d   : > { %v2288_v53 = vpack.c.bf16 %v2069_v25, %v2068_v41  ;;  %5902 = vmatpush3.bf16.msra.mxu1 %v6376_v28  ;;  %5872 = vmatpush3.bf16.msra.mxu0 %v6377_v62 }
 0x30e   : > { %5903 = vmatprep.subr.bf16.mxu1 %v6377_v62  ;;  %5873 = vmatprep.subr.bf16.mxu0 %v6378_v7 }
 0x30f   : > { %5855 = vmatprep.mubr.bf16.mxu1 %v2288_v53  ;;  %v7587_v53 = vld [vmem:[%s8453_s6 + $0x108] sm:$0xff]  }
 0x310   : > { %5856 = vmatmul.mubr.bf16.gmra.mrb[76].mxu1 %v2289_v35 }
 0x311   : > { %5904 = vmatpush3.bf16.msra.mxu1 %v6377_v62  ;;  %5874 = vmatpush3.bf16.msra.mxu0 %v6378_v7 }
 0x312   : > { %5905 = vmatprep.subr.bf16.mxu1 %v6378_v7  ;;  %5923 = vmatprep.subr.bf16.mxu0 %v7564_v55 }
 0x315   : > { %5906 = vmatpush3.bf16.msra.mxu1 %v6378_v7 }
 0x316   : > { %5955 = vmatprep.subr.bf16.mxu1 %v7564_v55 }
 0x3a9   : > { %v5813_v3 = vpop.f32.mrb[64].mxu0 }
 0x3aa   : > { %v2196_v23 = vadd.f32 %v5813_v3, %v7571_v60  ;;  %v2187_v36 = vpop.f32.mrb[65].mxu0 }
 0x3ab   : > { %v2188_v10 = vadd.f32 %v7571_v60, %v2187_v36  ;;  %v5814_v50 = vpop.f32.mrb[66].mxu0 }
 0x3ac   : > { %v2252_v15 = vmax.f32 %v2196_v23, 0.0  ;;  %v2199_v8 = vadd.f32 %v5814_v50, %v7571_v60  ;;  %v2190_v45 = vpop.f32.mrb[67].mxu0 }
 0x3ad   : > { %v2250_v1 = vmax.f32 %v2188_v10, 0.0  ;;  %v2191_v56 = vadd.f32 %v7571_v60, %v2190_v45  ;;  %v7597_v10 = vld [vmem:[%s8453_s6 + $0x110] sm:$0xff]  }
 0x3ae   : > { %v2253_v14 = vmax.f32 %v2199_v8, 0.0  ;;  %v2268_v22 = vadd.f32 %v2252_v15, %v7089_v42 }
 0x3af   : > { %v2251_v33 = vmax.f32 %v2191_v56, 0.0  ;;  %v2266_v54 = vadd.f32 %v2250_v1, %v7092_v18 }
 0x3b0   : > { %v2269_v37 = vadd.f32 %v2253_v14, %v7095_v5 }
 0x3b1   : > { %v2267_v12 = vadd.f32 %v2251_v33, %v7098_v44  ;;  %v5817_v24 = vpop.f32.mrb[68].mxu0 }
 0x3b2   : > { %v2439_v32 = vpack.c.bf16 %v2269_v37, %v2268_v22  ;;  %v2212_v47 = vadd.f32 %v5817_v24, %v7571_v60  ;;  %v2203_v19 = vpop.f32.mrb[69].mxu0  ;;  %v7609_v24 = vld [vmem:[%s8453_s6 + $0x118] sm:$0xff]  }
 0x3b3   : > { %v2204_v31 = vadd.f32 %v7571_v60, %v2203_v19  ;;  %v5818_v40 = vpop.f32.mrb[70].mxu0  ;;  %v2438_v2 = vpack.c.bf16 %v2267_v12, %v2266_v54 }
 0x3b4   : > { %v2256_v41 = vmax.f32 %v2212_v47, 0.0  ;;  %v2215_v25 = vadd.f32 %v5818_v40, %v7571_v60  ;;  %v2206_v35 = vpop.f32.mrb[71].mxu0 }
 0x3b5   : > { %v2254_v28 = vmax.f32 %v2204_v31, 0.0  ;;  %v2207_v62 = vadd.f32 %v7571_v60, %v2206_v35  ;;  %5875 = vmatprep.mubr.bf16.mxu0 %v2438_v2 }
 0x3b6   : > { %v2257_v7 = vmax.f32 %v2215_v25, 0.0  ;;  %5876 = vmatmul.mubr.bf16.vlgmr.msra.gmra.mrb[80].mxu0 %v2439_v32  ;;  %v2272_v23 = vadd.f32 %v2256_v41, %v7117_v52  ;;  %v7619_v41 = vld [vmem:[%s8453_s6 + $0x120] sm:$0xff]  }
 0x3b7   : > { %v2255_v3 = vmax.f32 %v2207_v62, 0.0  ;;  %5924 = vmatpush3.bf16.msra.mxu0 %v7564_v55  ;;  %v2270_v50 = vadd.f32 %v2254_v28, %v7125_v20 }
 0x3b8   : > { %v2273_v36 = vadd.f32 %v2257_v7, %v7128_v9  ;;  %5925 = vmatprep.subr.bf16.mxu0 %v7587_v53 }
 0x3b9   : > { %v2271_v15 = vadd.f32 %v2255_v3, %v7131_v13  ;;  %v5821_v8 = vpop.f32.mrb[72].mxu0 }
 0x3ba   : > { %v2228_v45 = vadd.f32 %v5821_v8, %v7571_v60  ;;  %v2219_v1 = vpop.f32.mrb[73].mxu0  ;;  %v2441_v56 = vpack.c.bf16 %v2273_v36, %v2272_v23 }
 0x3bb   : > { %v2220_v14 = vadd.f32 %v7571_v60, %v2219_v1  ;;  %v5822_v33 = vpop.f32.mrb[74].mxu0  ;;  %v2440_v22 = vpack.c.bf16 %v2271_v15, %v2270_v50  ;;  %5926 = vmatpush3.bf16.msra.mxu0 %v7587_v53 }
 0x3bc   : > { %v2260_v37 = vmax.f32 %v2228_v45, 0.0  ;;  %v2231_v54 = vadd.f32 %v5822_v33, %v7571_v60  ;;  %v2222_v12 = vpop.f32.mrb[75].mxu0  ;;  %5927 = vmatprep.subr.bf16.mxu0 %v7597_v10 }
 0x3bd   : > { %v2258_v32 = vmax.f32 %v2220_v14, 0.0  ;;  %v2223_v47 = vadd.f32 %v7571_v60, %v2222_v12  ;;  %5879 = vmatprep.mubr.bf16.mxu0 %v2440_v22 }
 0x3be   : > { %v2261_v19 = vmax.f32 %v2231_v54, 0.0  ;;  %5880 = vmatmul.mubr.bf16.gmra.mrb[84].mxu0 %v2441_v56  ;;  %v2276_v40 = vadd.f32 %v2260_v37, %v7158_v6 }
 0x3bf   : > { %v2259_v31 = vmax.f32 %v2223_v47, 0.0  ;;  %5928 = vmatpush3.bf16.msra.mxu0 %v7597_v10  ;;  %v2274_v25 = vadd.f32 %v2258_v32, %v7167_v46 }
 0x3c0   : > { %v2277_v2 = vadd.f32 %v2261_v19, %v7170_v49  ;;  %5929 = vmatprep.subr.bf16.mxu0 %v7609_v24 }
 0x3c1   : > { %v2275_v35 = vadd.f32 %v2259_v31, %v7173_v43 }
 0x3c2   : > { %v5825_v28 = vpop.f32.mrb[76].mxu0  ;;  %v2443_v62 = vpack.c.bf16 %v2277_v2, %v2276_v40 }
 0x3c3   : > { %v2244_v7 = vadd.f32 %v5825_v28, %v7571_v60  ;;  %v2235_v3 = vpop.f32.mrb[77].mxu0  ;;  %v2442_v23 = vpack.c.bf16 %v2275_v35, %v2274_v25  ;;  %5930 = vmatpush3.bf16.msra.mxu0 %v7609_v24 }
 0x3c4   : > { %v2236_v36 = vadd.f32 %v7571_v60, %v2235_v3  ;;  %v5826_v50 = vpop.f32.mrb[78].mxu0  ;;  %5931 = vmatprep.subr.bf16.mxu0 %v7619_v41 }
 0x3c5   : > { %v2264_v15 = vmax.f32 %v2244_v7, 0.0  ;;  %v2247_v8 = vadd.f32 %v5826_v50, %v7571_v60  ;;  %v2238_v45 = vpop.f32.mrb[79].mxu0  ;;  %5883 = vmatprep.mubr.bf16.mxu0 %v2442_v23 }
 0x3c6   : > { %v2262_v1 = vmax.f32 %v2236_v36, 0.0  ;;  %v2239_v56 = vadd.f32 %v7571_v60, %v2238_v45  ;;  %5884 = vmatmul.mubr.bf16.gmra.mrb[88].mxu0 %v2443_v62 }
 0x3c7   : > { %v2265_v14 = vmax.f32 %v2247_v8, 0.0  ;;  %5932 = vmatpush3.bf16.msra.mxu0 %v7619_v41  ;;  %v2280_v22 = vadd.f32 %v2264_v15, %v7197_v27 }
 0x3c8   : > { %v2263_v33 = vmax.f32 %v2239_v56, 0.0  ;;  %v2278_v54 = vadd.f32 %v2262_v1, %v7200_v51 }
 0x3c9   : > { %v2281_v37 = vadd.f32 %v2265_v14, %v7203_v61 }
 0x3ca   : > { %v2279_v12 = vadd.f32 %v2263_v33, %v7207_v38  ;;  %v5845_v32 = vpop.f32.mrb[64].mxu1 }
 0x3cb   : > { %v2333_v47 = vadd.f32 %v5845_v32, %v7571_v60  ;;  %v2324_v19 = vpop.f32.mrb[65].mxu1  ;;  %v2445_v31 = vpack.c.bf16 %v2281_v37, %v2280_v22 }
 0x3cc   : > { %v2325_v40 = vadd.f32 %v7571_v60, %v2324_v19  ;;  %v5846_v2 = vpop.f32.mrb[66].mxu1  ;;  %v2444_v25 = vpack.c.bf16 %v2279_v12, %v2278_v54 }
 0x3cd   : > { %v2389_v35 = vmax.f32 %v2333_v47, 0.0  ;;  %v2336_v28 = vadd.f32 %v5846_v2, %v7571_v60  ;;  %v2327_v62 = vpop.f32.mrb[67].mxu1 }
 0x3ce   : > { %v2387_v7 = vmax.f32 %v2325_v40, 0.0  ;;  %v2328_v3 = vadd.f32 %v7571_v60, %v2327_v62  ;;  %5887 = vmatprep.mubr.bf16.mxu0 %v2444_v25 }
 0x3cf   : > { %v2390_v23 = vmax.f32 %v2336_v28, 0.0  ;;  %5888 = vmatmul.mubr.bf16.gmra.mrb[92].mxu0 %v2445_v31  ;;  %v2405_v50 = vadd.f32 %v2389_v35, %v7222_v58 }
 0x3d0   : > { %v2388_v36 = vmax.f32 %v2328_v3, 0.0  ;;  %v2403_v8 = vadd.f32 %v2387_v7, %v7225_v16 }
 0x3d1   : > { %v2406_v15 = vadd.f32 %v2390_v23, %v7228_v4 }
 0x3d2   : > { %v2404_v45 = vadd.f32 %v2388_v36, %v7231_v34  ;;  %v5849_v1 = vpop.f32.mrb[68].mxu1 }
 0x3d3   : > { %v2630_v56 = vpack.c.bf16 %v2406_v15, %v2405_v50  ;;  %v2349_v14 = vadd.f32 %v5849_v1, %v7571_v60  ;;  %v2340_v33 = vpop.f32.mrb[69].mxu1 }
 0x3d4   : > { %v2341_v22 = vadd.f32 %v7571_v60, %v2340_v33  ;;  %v5850_v37 = vpop.f32.mrb[70].mxu1  ;;  %v2629_v54 = vpack.c.bf16 %v2404_v45, %v2403_v8 }
 0x3d5   : > { %v2393_v12 = vmax.f32 %v2349_v14, 0.0  ;;  %v2352_v32 = vadd.f32 %v5850_v37, %v7571_v60  ;;  %v2343_v47 = vpop.f32.mrb[71].mxu1 }
 0x3d6   : > { %v2391_v19 = vmax.f32 %v2341_v22, 0.0  ;;  %v2344_v31 = vadd.f32 %v7571_v60, %v2343_v47  ;;  %5907 = vmatprep.mubr.bf16.mxu1 %v2629_v54 }
 0x3d7   : > { %v2394_v40 = vmax.f32 %v2352_v32, 0.0  ;;  %5908 = vmatmul.mubr.bf16.vlgmr.msra.gmra.mrb[80].mxu1 %v2630_v56  ;;  %v2409_v25 = vadd.f32 %v2393_v12, %v7242_v63 }
 0x3d8   : > { %v2392_v2 = vmax.f32 %v2344_v31, 0.0  ;;  %5956 = vmatpush3.bf16.msra.mxu1 %v7564_v55  ;;  %v2407_v28 = vadd.f32 %v2391_v19, %v7245_v17 }
 0x3d9   : > { %v2410_v35 = vadd.f32 %v2394_v40, %v7248_v48  ;;  %5957 = vmatprep.subr.bf16.mxu1 %v7587_v53 }
 0x3da   : > { %v2408_v62 = vadd.f32 %v2392_v2, %v7251_v21 }
 0x3db   : > { %v5853_v7 = vpop.f32.mrb[72].mxu1  ;;  %v2632_v3 = vpack.c.bf16 %v2410_v35, %v2409_v25 }
 0x3dc   : > { %v2365_v23 = vadd.f32 %v5853_v7, %v7571_v60  ;;  %v2356_v36 = vpop.f32.mrb[73].mxu1  ;;  %v2631_v50 = vpack.c.bf16 %v2408_v62, %v2407_v28  ;;  %5958 = vmatpush3.bf16.msra.mxu1 %v7587_v53 }
 0x3dd   : > { %v2357_v55 = vadd.f32 %v7571_v60, %v2356_v36  ;;  %v5854_v15 = vpop.f32.mrb[74].mxu1  ;;  %5959 = vmatprep.subr.bf16.mxu1 %v7597_v10 }
 0x3de   : > { %v2397_v8 = vmax.f32 %v2365_v23, 0.0  ;;  %v2368_v45 = vadd.f32 %v5854_v15, %v7571_v60  ;;  %v2359_v1 = vpop.f32.mrb[75].mxu1  ;;  %5911 = vmatprep.mubr.bf16.mxu1 %v2631_v50 }
 0x3df   : > { %v2395_v56 = vmax.f32 %v2357_v55, 0.0  ;;  %v2360_v14 = vadd.f32 %v7571_v60, %v2359_v1  ;;  %5912 = vmatmul.mubr.bf16.gmra.mrb[84].mxu1 %v2632_v3  ;;  %v7687_v1 = vld [vmem:[%s8453_s6 + $0x140] sm:$0xff]  }
 0x3e0   : > { %v2398_v33 = vmax.f32 %v2368_v45, 0.0  ;;  %5960 = vmatpush3.bf16.msra.mxu1 %v7597_v10  ;;  %v2413_v53 = vadd.f32 %v2397_v8, %v7266_v30  ;;  %v6386_v45 = vld [vmem:[%s8453_s6 + $0x138] sm:$0xff]  }
 0x3e1   : > { %v2396_v22 = vmax.f32 %v2360_v14, 0.0  ;;  %5961 = vmatprep.subr.bf16.mxu1 %v7609_v24  ;;  %v2411_v54 = vadd.f32 %v2395_v56, %v7269_v29  ;;  %v7694_v56 = vld [vmem:[%s8454_s7 + $0x3] ss:$0 sm:$0xff] }
 0x3e2   : > { %v2414_v37 = vadd.f32 %v2398_v33, %v7272_v26 }
 0x3e3   : > { %v2412_v12 = vadd.f32 %v2396_v22, %v7276_v57  ;;  %v5857_v32 = vpop.f32.mrb[76].mxu1 }
 0x3e4   : > { %v2381_v47 = vadd.f32 %v5857_v32, %v7571_v60  ;;  %v2372_v19 = vpop.f32.mrb[77].mxu1  ;;  %v2634_v31 = vpack.c.bf16 %v2414_v37, %v2413_v53  ;;  %5962 = vmatpush3.bf16.msra.mxu1 %v7609_v24 }
 0x3e5   : > { %v2373_v10 = vadd.f32 %v7571_v60, %v2372_v19  ;;  %v5858_v40 = vpop.f32.mrb[78].mxu1  ;;  %v2633_v2 = vpack.c.bf16 %v2412_v12, %v2411_v54  ;;  %5963 = vmatprep.subr.bf16.mxu1 %v7619_v41 }
 0x3e6   : > { %v2401_v25 = vmax.f32 %v2381_v47, 0.0  ;;  %v2384_v35 = vadd.f32 %v5858_v40, %v7571_v60  ;;  %v2375_v28 = vpop.f32.mrb[79].mxu1 }
 0x3e7   : > { %v2399_v62 = vmax.f32 %v2373_v10, 0.0  ;;  %v2376_v7 = vadd.f32 %v7571_v60, %v2375_v28  ;;  %5915 = vmatprep.mubr.bf16.mxu1 %v2633_v2  ;;  %v6384_v60 = vld [vmem:[%s8453_s6 + $0x128] sm:$0xff]  }
 0x3e8   : > { %v2402_v3 = vmax.f32 %v2384_v35, 0.0  ;;  %5916 = vmatmul.mubr.bf16.gmra.mrb[88].mxu1 %v2634_v31  ;;  %v2417_v24 = vadd.f32 %v2401_v25, %v7290_v59  ;;  %5933 = vmatprep.subr.bf16.mxu0 %v6384_v60 }
 0x3e9   : > { %v2400_v23 = vmax.f32 %v2376_v7, 0.0  ;;  %5964 = vmatpush3.bf16.msra.mxu1 %v7619_v41  ;;  %v2415_v50 = vadd.f32 %v2399_v62, %v7293_v11  ;;  %5934 = vmatpush3.bf16.msra.mxu0 %v6384_v60  ;;  %v6385_v41 = vld [vmem:[%s8453_s6 + $0x130] sm:$0xff]  }
 0x3ea   : > { %v2418_v36 = vadd.f32 %v2402_v3, %v7296_v39  ;;  %5965 = vmatprep.subr.bf16.mxu1 %v6384_v60  ;;  %5935 = vmatprep.subr.bf16.mxu0 %v6385_v41 }
 0x3eb   : > { %v2416_v55 = vadd.f32 %v2400_v23, %v7299_v0 }
 0x3ec   : > { %v2636_v15 = vpack.c.bf16 %v2418_v36, %v2417_v24 }
 0x3ed   : > { %v2635_v8 = vpack.c.bf16 %v2416_v55, %v2415_v50  ;;  %5966 = vmatpush3.bf16.msra.mxu1 %v6384_v60  ;;  %5936 = vmatpush3.bf16.msra.mxu0 %v6385_v41 }
 0x3ee   : > { %5967 = vmatprep.subr.bf16.mxu1 %v6385_v41  ;;  %5937 = vmatprep.subr.bf16.mxu0 %v6386_v45 }
 0x3ef   : > { %5919 = vmatprep.mubr.bf16.mxu1 %v2635_v8  ;;  %v7710_v8 = vld [vmem:[%s8453_s6 + $0x148] sm:$0xff]  }
 0x3f0   : > { %5920 = vmatmul.mubr.bf16.gmra.mrb[92].mxu1 %v2636_v15 }
 0x3f1   : > { %5968 = vmatpush3.bf16.msra.mxu1 %v6385_v41  ;;  %5938 = vmatpush3.bf16.msra.mxu0 %v6386_v45 }
 0x3f2   : > { %5969 = vmatprep.subr.bf16.mxu1 %v6386_v45  ;;  %5987 = vmatprep.subr.bf16.mxu0 %v7687_v1 }
 0x3f5   : > { %5970 = vmatpush3.bf16.msra.mxu1 %v6386_v45 }
 0x3f6   : > { %6019 = vmatprep.subr.bf16.mxu1 %v7687_v1 }
 0x489   : > { %v5877_v14 = vpop.f32.mrb[80].mxu0 }
 0x48a   : > { %v2543_v33 = vadd.f32 %v5877_v14, %v7694_v56  ;;  %v2534_v22 = vpop.f32.mrb[81].mxu0 }
 0x48b   : > { %v2535_v53 = vadd.f32 %v7694_v56, %v2534_v22  ;;  %v5878_v37 = vpop.f32.mrb[82].mxu0 }
 0x48c   : > { %v2599_v54 = vmax.f32 %v2543_v33, 0.0  ;;  %v2546_v12 = vadd.f32 %v5878_v37, %v7694_v56  ;;  %v2537_v32 = vpop.f32.mrb[83].mxu0 }
 0x48d   : > { %v2597_v47 = vmax.f32 %v2535_v53, 0.0  ;;  %v2538_v19 = vadd.f32 %v7694_v56, %v2537_v32  ;;  %v7720_v53 = vld [vmem:[%s8453_s6 + $0x150] sm:$0xff]  }
 0x48e   : > { %v2600_v31 = vmax.f32 %v2546_v12, 0.0  ;;  %v2615_v40 = vadd.f32 %v2599_v54, %v7089_v42 }
 0x48f   : > { %v2598_v10 = vmax.f32 %v2538_v19, 0.0  ;;  %v2613_v25 = vadd.f32 %v2597_v47, %v7092_v18 }
 0x490   : > { %v2616_v2 = vadd.f32 %v2600_v31, %v7095_v5 }
 0x491   : > { %v2614_v35 = vadd.f32 %v2598_v10, %v7098_v44  ;;  %v5881_v28 = vpop.f32.mrb[84].mxu0 }
 0x492   : > { %v2786_v62 = vpack.c.bf16 %v2616_v2, %v2615_v40  ;;  %v2559_v7 = vadd.f32 %v5881_v28, %v7694_v56  ;;  %v2550_v3 = vpop.f32.mrb[85].mxu0  ;;  %v7732_v28 = vld [vmem:[%s8453_s6 + $0x158] sm:$0xff]  }
 0x493   : > { %v2551_v23 = vadd.f32 %v7694_v56, %v2550_v3  ;;  %v5882_v24 = vpop.f32.mrb[86].mxu0  ;;  %v2785_v36 = vpack.c.bf16 %v2614_v35, %v2613_v25 }
 0x494   : > { %v2603_v50 = vmax.f32 %v2559_v7, 0.0  ;;  %v2562_v55 = vadd.f32 %v5882_v24, %v7694_v56  ;;  %v2553_v15 = vpop.f32.mrb[87].mxu0 }
 0x495   : > { %v2601_v60 = vmax.f32 %v2551_v23, 0.0  ;;  %v2554_v41 = vadd.f32 %v7694_v56, %v2553_v15  ;;  %5939 = vmatprep.mubr.bf16.mxu0 %v2785_v36 }
 0x496   : > { %v2604_v45 = vmax.f32 %v2562_v55, 0.0  ;;  %5940 = vmatmul.mubr.bf16.vlgmr.msra.gmra.mrb[96].mxu0 %v2786_v62  ;;  %v2619_v33 = vadd.f32 %v2603_v50, %v7117_v52  ;;  %v7742_v50 = vld [vmem:[%s8453_s6 + $0x160] sm:$0xff]  }
 0x497   : > { %v2602_v14 = vmax.f32 %v2554_v41, 0.0  ;;  %5988 = vmatpush3.bf16.msra.mxu0 %v7687_v1  ;;  %v2617_v37 = vadd.f32 %v2601_v60, %v7125_v20 }
 0x498   : > { %v2620_v22 = vadd.f32 %v2604_v45, %v7128_v9  ;;  %5989 = vmatprep.subr.bf16.mxu0 %v7710_v8 }
 0x499   : > { %v2618_v54 = vadd.f32 %v2602_v14, %v7131_v13  ;;  %v5885_v12 = vpop.f32.mrb[88].mxu0 }
 0x49a   : > { %v2575_v32 = vadd.f32 %v5885_v12, %v7694_v56  ;;  %v2566_v47 = vpop.f32.mrb[89].mxu0  ;;  %v2788_v19 = vpack.c.bf16 %v2620_v22, %v2619_v33 }
 0x49b   : > { %v2567_v31 = vadd.f32 %v7694_v56, %v2566_v47  ;;  %v5886_v10 = vpop.f32.mrb[90].mxu0  ;;  %v2787_v40 = vpack.c.bf16 %v2618_v54, %v2617_v37  ;;  %5990 = vmatpush3.bf16.msra.mxu0 %v7710_v8 }
 0x49c   : > { %v2607_v2 = vmax.f32 %v2575_v32, 0.0  ;;  %v2578_v25 = vadd.f32 %v5886_v10, %v7694_v56  ;;  %v2569_v35 = vpop.f32.mrb[91].mxu0  ;;  %5991 = vmatprep.subr.bf16.mxu0 %v7720_v53 }
 0x49d   : > { %v2605_v62 = vmax.f32 %v2567_v31, 0.0  ;;  %v2570_v7 = vadd.f32 %v7694_v56, %v2569_v35  ;;  %5943 = vmatprep.mubr.bf16.mxu0 %v2787_v40 }
 0x49e   : > { %v2608_v3 = vmax.f32 %v2578_v25, 0.0  ;;  %5944 = vmatmul.mubr.bf16.gmra.mrb[100].mxu0 %v2788_v19  ;;  %v2623_v24 = vadd.f32 %v2607_v2, %v7158_v6 }
 0x49f   : > { %v2606_v23 = vmax.f32 %v2570_v7, 0.0  ;;  %5992 = vmatpush3.bf16.msra.mxu0 %v7720_v53  ;;  %v2621_v55 = vadd.f32 %v2605_v62, %v7167_v46 }
 0x4a0   : > { %v2624_v36 = vadd.f32 %v2608_v3, %v7170_v49  ;;  %5993 = vmatprep.subr.bf16.mxu0 %v7732_v28 }
 0x4a1   : > { %v2622_v15 = vadd.f32 %v2606_v23, %v7173_v43 }
 0x4a2   : > { %v5889_v60 = vpop.f32.mrb[92].mxu0  ;;  %v2790_v41 = vpack.c.bf16 %v2624_v36, %v2623_v24 }
 0x4a3   : > { %v2591_v45 = vadd.f32 %v5889_v60, %v7694_v56  ;;  %v2582_v14 = vpop.f32.mrb[93].mxu0  ;;  %v2789_v33 = vpack.c.bf16 %v2622_v15, %v2621_v55  ;;  %5994 = vmatpush3.bf16.msra.mxu0 %v7732_v28 }
 0x4a4   : > { %v2583_v22 = vadd.f32 %v7694_v56, %v2582_v14  ;;  %v5890_v37 = vpop.f32.mrb[94].mxu0  ;;  %5995 = vmatprep.subr.bf16.mxu0 %v7742_v50 }
 0x4a5   : > { %v2611_v54 = vmax.f32 %v2591_v45, 0.0  ;;  %v2594_v12 = vadd.f32 %v5890_v37, %v7694_v56  ;;  %v2585_v32 = vpop.f32.mrb[95].mxu0  ;;  %5947 = vmatprep.mubr.bf16.mxu0 %v2789_v33 }
 0x4a6   : > { %v2609_v47 = vmax.f32 %v2583_v22, 0.0  ;;  %v2586_v19 = vadd.f32 %v7694_v56, %v2585_v32  ;;  %5948 = vmatmul.mubr.bf16.gmra.mrb[104].mxu0 %v2790_v41 }
 0x4a7   : > { %v2612_v31 = vmax.f32 %v2594_v12, 0.0  ;;  %5996 = vmatpush3.bf16.msra.mxu0 %v7742_v50  ;;  %v2627_v40 = vadd.f32 %v2611_v54, %v7197_v27 }
 0x4a8   : > { %v2610_v10 = vmax.f32 %v2586_v19, 0.0  ;;  %v2625_v25 = vadd.f32 %v2609_v47, %v7200_v51 }
 0x4a9   : > { %v2628_v2 = vadd.f32 %v2612_v31, %v7203_v61 }
 0x4aa   : > { %v2626_v35 = vadd.f32 %v2610_v10, %v7207_v38  ;;  %v5909_v62 = vpop.f32.mrb[80].mxu1 }
 0x4ab   : > { %v2680_v7 = vadd.f32 %v5909_v62, %v7694_v56  ;;  %v2671_v3 = vpop.f32.mrb[81].mxu1  ;;  %v2792_v23 = vpack.c.bf16 %v2628_v2, %v2627_v40 }
 0x4ac   : > { %v2672_v24 = vadd.f32 %v7694_v56, %v2671_v3  ;;  %v5910_v36 = vpop.f32.mrb[82].mxu1  ;;  %v2791_v55 = vpack.c.bf16 %v2626_v35, %v2625_v25 }
 0x4ad   : > { %v2736_v15 = vmax.f32 %v2680_v7, 0.0  ;;  %v2683_v60 = vadd.f32 %v5910_v36, %v7694_v56  ;;  %v2674_v41 = vpop.f32.mrb[83].mxu1 }
 0x4ae   : > { %v2734_v45 = vmax.f32 %v2672_v24, 0.0  ;;  %v2675_v14 = vadd.f32 %v7694_v56, %v2674_v41  ;;  %5951 = vmatprep.mubr.bf16.mxu0 %v2791_v55 }
 0x4af   : > { %v2737_v33 = vmax.f32 %v2683_v60, 0.0  ;;  %5952 = vmatmul.mubr.bf16.gmra.mrb[108].mxu0 %v2792_v23  ;;  %v2752_v37 = vadd.f32 %v2736_v15, %v7222_v58 }
 0x4b0   : > { %v2735_v22 = vmax.f32 %v2675_v14, 0.0  ;;  %v2750_v12 = vadd.f32 %v2734_v45, %v7225_v16 }
 0x4b1   : > { %v2753_v54 = vadd.f32 %v2737_v33, %v7228_v4 }
 0x4b2   : > { %v2751_v32 = vadd.f32 %v2735_v22, %v7231_v34  ;;  %v5913_v47 = vpop.f32.mrb[84].mxu1 }
 0x4b3   : > { %v2977_v19 = vpack.c.bf16 %v2753_v54, %v2752_v37  ;;  %v2696_v31 = vadd.f32 %v5913_v47, %v7694_v56  ;;  %v2687_v10 = vpop.f32.mrb[85].mxu1 }
 0x4b4   : > { %v2688_v40 = vadd.f32 %v7694_v56, %v2687_v10  ;;  %v5914_v2 = vpop.f32.mrb[86].mxu1  ;;  %v2976_v25 = vpack.c.bf16 %v2751_v32, %v2750_v12 }
 0x4b5   : > { %v2740_v35 = vmax.f32 %v2696_v31, 0.0  ;;  %v2699_v62 = vadd.f32 %v5914_v2, %v7694_v56  ;;  %v2690_v7 = vpop.f32.mrb[87].mxu1 }
 0x4b6   : > { %v2738_v3 = vmax.f32 %v2688_v40, 0.0  ;;  %v2691_v23 = vadd.f32 %v7694_v56, %v2690_v7  ;;  %5971 = vmatprep.mubr.bf16.mxu1 %v2976_v25 }
 0x4b7   : > { %v2741_v24 = vmax.f32 %v2699_v62, 0.0  ;;  %5972 = vmatmul.mubr.bf16.vlgmr.msra.gmra.mrb[96].mxu1 %v2977_v19  ;;  %v2756_v55 = vadd.f32 %v2740_v35, %v7242_v63 }
 0x4b8   : > { %v2739_v36 = vmax.f32 %v2691_v23, 0.0  ;;  %6020 = vmatpush3.bf16.msra.mxu1 %v7687_v1  ;;  %v2754_v60 = vadd.f32 %v2738_v3, %v7245_v17 }
 0x4b9   : > { %v2757_v15 = vadd.f32 %v2741_v24, %v7248_v48  ;;  %6021 = vmatprep.subr.bf16.mxu1 %v7710_v8 }
 0x4ba   : > { %v2755_v41 = vadd.f32 %v2739_v36, %v7251_v21 }
 0x4bb   : > { %v5917_v45 = vpop.f32.mrb[88].mxu1  ;;  %v2979_v14 = vpack.c.bf16 %v2757_v15, %v2756_v55 }
 0x4bc   : > { %v2712_v33 = vadd.f32 %v5917_v45, %v7694_v56  ;;  %v2703_v22 = vpop.f32.mrb[89].mxu1  ;;  %v2978_v37 = vpack.c.bf16 %v2755_v41, %v2754_v60  ;;  %6022 = vmatpush3.bf16.msra.mxu1 %v7710_v8 }
 0x4bd   : > { %v2704_v1 = vadd.f32 %v7694_v56, %v2703_v22  ;;  %v5918_v54 = vpop.f32.mrb[90].mxu1  ;;  %6023 = vmatprep.subr.bf16.mxu1 %v7720_v53 }
 0x4be   : > { %v2744_v12 = vmax.f32 %v2712_v33, 0.0  ;;  %v2715_v32 = vadd.f32 %v5918_v54, %v7694_v56  ;;  %v2706_v47 = vpop.f32.mrb[91].mxu1  ;;  %5975 = vmatprep.mubr.bf16.mxu1 %v2978_v37 }
 0x4bf   : > { %v2742_v19 = vmax.f32 %v2704_v1, 0.0  ;;  %v2707_v31 = vadd.f32 %v7694_v56, %v2706_v47  ;;  %5976 = vmatmul.mubr.bf16.gmra.mrb[100].mxu1 %v2979_v14  ;;  %v7810_v47 = vld [vmem:[%s8453_s6 + $0x180] sm:$0xff]  }
 0x4c0   : > { %v2745_v10 = vmax.f32 %v2715_v32, 0.0  ;;  %6024 = vmatpush3.bf16.msra.mxu1 %v7720_v53  ;;  %v2760_v8 = vadd.f32 %v2744_v12, %v7266_v30  ;;  %v6394_v32 = vld [vmem:[%s8453_s6 + $0x178] sm:$0xff]  }
 0x4c1   : > { %v2743_v40 = vmax.f32 %v2707_v31, 0.0  ;;  %6025 = vmatprep.subr.bf16.mxu1 %v7732_v28  ;;  %v2758_v25 = vadd.f32 %v2742_v19, %v7269_v29  ;;  %v7817_v19 = vld [vmem:[%s8454_s7 + $0x4] ss:$0 sm:$0xff] }
 0x4c2   : > { %v2761_v2 = vadd.f32 %v2745_v10, %v7272_v26 }
 0x4c3   : > { %v2759_v35 = vadd.f32 %v2743_v40, %v7276_v57  ;;  %v5921_v62 = vpop.f32.mrb[92].mxu1 }
 0x4c4   : > { %v2728_v7 = vadd.f32 %v5921_v62, %v7694_v56  ;;  %v2719_v3 = vpop.f32.mrb[93].mxu1  ;;  %v2981_v23 = vpack.c.bf16 %v2761_v2, %v2760_v8  ;;  %6026 = vmatpush3.bf16.msra.mxu1 %v7732_v28 }
 0x4c5   : > { %v2720_v53 = vadd.f32 %v7694_v56, %v2719_v3  ;;  %v5922_v24 = vpop.f32.mrb[94].mxu1  ;;  %v2980_v36 = vpack.c.bf16 %v2759_v35, %v2758_v25  ;;  %6027 = vmatprep.subr.bf16.mxu1 %v7742_v50 }
 0x4c6   : > { %v2748_v55 = vmax.f32 %v2728_v7, 0.0  ;;  %v2731_v15 = vadd.f32 %v5922_v24, %v7694_v56  ;;  %v2722_v60 = vpop.f32.mrb[95].mxu1 }
 0x4c7   : > { %v2746_v41 = vmax.f32 %v2720_v53, 0.0  ;;  %v2723_v45 = vadd.f32 %v7694_v56, %v2722_v60  ;;  %5979 = vmatprep.mubr.bf16.mxu1 %v2980_v36  ;;  %v6392_v56 = vld [vmem:[%s8453_s6 + $0x168] sm:$0xff]  }
 0x4c8   : > { %v2749_v14 = vmax.f32 %v2731_v15, 0.0  ;;  %5980 = vmatmul.mubr.bf16.gmra.mrb[104].mxu1 %v2981_v23  ;;  %v2764_v28 = vadd.f32 %v2748_v55, %v7290_v59  ;;  %5997 = vmatprep.subr.bf16.mxu0 %v6392_v56 }
 0x4c9   : > { %v2747_v33 = vmax.f32 %v2723_v45, 0.0  ;;  %6028 = vmatpush3.bf16.msra.mxu1 %v7742_v50  ;;  %v2762_v37 = vadd.f32 %v2746_v41, %v7293_v11  ;;  %5998 = vmatpush3.bf16.msra.mxu0 %v6392_v56  ;;  %v6393_v50 = vld [vmem:[%s8453_s6 + $0x170] sm:$0xff]  }
 0x4ca   : > { %v2765_v22 = vadd.f32 %v2749_v14, %v7296_v39  ;;  %6029 = vmatprep.subr.bf16.mxu1 %v6392_v56  ;;  %5999 = vmatprep.subr.bf16.mxu0 %v6393_v50 }
 0x4cb   : > { %v2763_v1 = vadd.f32 %v2747_v33, %v7299_v0 }
 0x4cc   : > { %v2983_v54 = vpack.c.bf16 %v2765_v22, %v2764_v28 }
 0x4cd   : > { %v2982_v12 = vpack.c.bf16 %v2763_v1, %v2762_v37  ;;  %6030 = vmatpush3.bf16.msra.mxu1 %v6392_v56  ;;  %6000 = vmatpush3.bf16.msra.mxu0 %v6393_v50 }
 0x4ce   : > { %6031 = vmatprep.subr.bf16.mxu1 %v6393_v50  ;;  %6001 = vmatprep.subr.bf16.mxu0 %v6394_v32 }
 0x4cf   : > { %5983 = vmatprep.mubr.bf16.mxu1 %v2982_v12  ;;  %v7833_v12 = vld [vmem:[%s8453_s6 + $0x188] sm:$0xff]  }
 0x4d0   : > { %5984 = vmatmul.mubr.bf16.gmra.mrb[108].mxu1 %v2983_v54 }
 0x4d1   : > { %6032 = vmatpush3.bf16.msra.mxu1 %v6393_v50  ;;  %6002 = vmatpush3.bf16.msra.mxu0 %v6394_v32 }
 0x4d2   : > { %6033 = vmatprep.subr.bf16.mxu1 %v6394_v32  ;;  %6051 = vmatprep.subr.bf16.mxu0 %v7810_v47 }
 0x4d5   : > { %6034 = vmatpush3.bf16.msra.mxu1 %v6394_v32 }
 0x4d6   : > { %6083 = vmatprep.subr.bf16.mxu1 %v7810_v47 }
 0x569   : > { %v5941_v31 = vpop.f32.mrb[96].mxu0 }
 0x56a   : > { %v2890_v10 = vadd.f32 %v5941_v31, %v7817_v19  ;;  %v2881_v40 = vpop.f32.mrb[97].mxu0 }
 0x56b   : > { %v2882_v8 = vadd.f32 %v7817_v19, %v2881_v40  ;;  %v5942_v2 = vpop.f32.mrb[98].mxu0 }
 0x56c   : > { %v2946_v25 = vmax.f32 %v2890_v10, 0.0  ;;  %v2893_v35 = vadd.f32 %v5942_v2, %v7817_v19  ;;  %v2884_v62 = vpop.f32.mrb[99].mxu0 }
 0x56d   : > { %v2944_v7 = vmax.f32 %v2882_v8, 0.0  ;;  %v2885_v3 = vadd.f32 %v7817_v19, %v2884_v62  ;;  %v7843_v8 = vld [vmem:[%s8453_s6 + $0x190] sm:$0xff]  }
 0x56e   : > { %v2947_v23 = vmax.f32 %v2893_v35, 0.0  ;;  %v2962_v24 = vadd.f32 %v2946_v25, %v7089_v42 }
 0x56f   : > { %v2945_v53 = vmax.f32 %v2885_v3, 0.0  ;;  %v2960_v55 = vadd.f32 %v2944_v7, %v7092_v18 }
 0x570   : > { %v2963_v36 = vadd.f32 %v2947_v23, %v7095_v5 }
 0x571   : > { %v2961_v15 = vadd.f32 %v2945_v53, %v7098_v44  ;;  %v5945_v60 = vpop.f32.mrb[100].mxu0 }
 0x572   : > { %v3133_v41 = vpack.c.bf16 %v2963_v36, %v2962_v24  ;;  %v2906_v45 = vadd.f32 %v5945_v60, %v7817_v19  ;;  %v2897_v14 = vpop.f32.mrb[101].mxu0  ;;  %v7855_v60 = vld [vmem:[%s8453_s6 + $0x198] sm:$0xff]  }
 0x573   : > { %v2898_v33 = vadd.f32 %v7817_v19, %v2897_v14  ;;  %v5946_v28 = vpop.f32.mrb[102].mxu0  ;;  %v3132_v22 = vpack.c.bf16 %v2961_v15, %v2960_v55 }
 0x574   : > { %v2950_v37 = vmax.f32 %v2906_v45, 0.0  ;;  %v2909_v1 = vadd.f32 %v5946_v28, %v7817_v19  ;;  %v2900_v54 = vpop.f32.mrb[103].mxu0 }
 0x575   : > { %v2948_v56 = vmax.f32 %v2898_v33, 0.0  ;;  %v2901_v50 = vadd.f32 %v7817_v19, %v2900_v54  ;;  %6003 = vmatprep.mubr.bf16.mxu0 %v3132_v22 }
 0x576   : > { %v2951_v32 = vmax.f32 %v2909_v1, 0.0  ;;  %6004 = vmatmul.mubr.bf16.vlgmr.msra.gmra.mrb[112].mxu0 %v3133_v41  ;;  %v2966_v10 = vadd.f32 %v2950_v37, %v7117_v52  ;;  %v7865_v37 = vld [vmem:[%s8453_s6 + $0x1a0] sm:$0xff]  }
 0x577   : > { %v2949_v31 = vmax.f32 %v2901_v50, 0.0  ;;  %6052 = vmatpush3.bf16.msra.mxu0 %v7810_v47  ;;  %v2964_v2 = vadd.f32 %v2948_v56, %v7125_v20 }
 0x578   : > { %v2967_v40 = vadd.f32 %v2951_v32, %v7128_v9  ;;  %6053 = vmatprep.subr.bf16.mxu0 %v7833_v12 }
 0x579   : > { %v2965_v25 = vadd.f32 %v2949_v31, %v7131_v13  ;;  %v5949_v35 = vpop.f32.mrb[104].mxu0 }
 0x57a   : > { %v2922_v62 = vadd.f32 %v5949_v35, %v7817_v19  ;;  %v2913_v7 = vpop.f32.mrb[105].mxu0  ;;  %v3135_v3 = vpack.c.bf16 %v2967_v40, %v2966_v10 }
 0x57b   : > { %v2914_v23 = vadd.f32 %v7817_v19, %v2913_v7  ;;  %v5950_v53 = vpop.f32.mrb[106].mxu0  ;;  %v3134_v24 = vpack.c.bf16 %v2965_v25, %v2964_v2  ;;  %6054 = vmatpush3.bf16.msra.mxu0 %v7833_v12 }
 0x57c   : > { %v2954_v36 = vmax.f32 %v2922_v62, 0.0  ;;  %v2925_v55 = vadd.f32 %v5950_v53, %v7817_v19  ;;  %v2916_v15 = vpop.f32.mrb[107].mxu0  ;;  %6055 = vmatprep.subr.bf16.mxu0 %v7843_v8 }
 0x57d   : > { %v2952_v41 = vmax.f32 %v2914_v23, 0.0  ;;  %v2917_v45 = vadd.f32 %v7817_v19, %v2916_v15  ;;  %6007 = vmatprep.mubr.bf16.mxu0 %v3134_v24 }
 0x57e   : > { %v2955_v14 = vmax.f32 %v2925_v55, 0.0  ;;  %6008 = vmatmul.mubr.bf16.gmra.mrb[116].mxu0 %v3135_v3  ;;  %v2970_v28 = vadd.f32 %v2954_v36, %v7158_v6 }
 0x57f   : > { %v2953_v33 = vmax.f32 %v2917_v45, 0.0  ;;  %6056 = vmatpush3.bf16.msra.mxu0 %v7843_v8  ;;  %v2968_v1 = vadd.f32 %v2952_v41, %v7167_v46 }
 0x580   : > { %v2971_v22 = vadd.f32 %v2955_v14, %v7170_v49  ;;  %6057 = vmatprep.subr.bf16.mxu0 %v7855_v60 }
 0x581   : > { %v2969_v54 = vadd.f32 %v2953_v33, %v7173_v43 }
 0x582   : > { %v5953_v56 = vpop.f32.mrb[108].mxu0  ;;  %v3137_v50 = vpack.c.bf16 %v2971_v22, %v2970_v28 }
 0x583   : > { %v2938_v32 = vadd.f32 %v5953_v56, %v7817_v19  ;;  %v2929_v31 = vpop.f32.mrb[109].mxu0  ;;  %v3136_v10 = vpack.c.bf16 %v2969_v54, %v2968_v1  ;;  %6058 = vmatpush3.bf16.msra.mxu0 %v7855_v60 }
 0x584   : > { %v2930_v40 = vadd.f32 %v7817_v19, %v2929_v31  ;;  %v5954_v2 = vpop.f32.mrb[110].mxu0  ;;  %6059 = vmatprep.subr.bf16.mxu0 %v7865_v37 }
 0x585   : > { %v2958_v25 = vmax.f32 %v2938_v32, 0.0  ;;  %v2941_v35 = vadd.f32 %v5954_v2, %v7817_v19  ;;  %v2932_v62 = vpop.f32.mrb[111].mxu0  ;;  %6011 = vmatprep.mubr.bf16.mxu0 %v3136_v10 }
 0x586   : > { %v2956_v7 = vmax.f32 %v2930_v40, 0.0  ;;  %v2933_v3 = vadd.f32 %v7817_v19, %v2932_v62  ;;  %6012 = vmatmul.mubr.bf16.gmra.mrb[120].mxu0 %v3137_v50 }
 0x587   : > { %v2959_v23 = vmax.f32 %v2941_v35, 0.0  ;;  %6060 = vmatpush3.bf16.msra.mxu0 %v7865_v37  ;;  %v2974_v24 = vadd.f32 %v2958_v25, %v7197_v27 }
 0x588   : > { %v2957_v53 = vmax.f32 %v2933_v3, 0.0  ;;  %v2972_v55 = vadd.f32 %v2956_v7, %v7200_v51 }
 0x589   : > { %v2975_v36 = vadd.f32 %v2959_v23, %v7203_v61 }
 0x58a   : > { %v2973_v15 = vadd.f32 %v2957_v53, %v7207_v38  ;;  %v5973_v41 = vpop.f32.mrb[96].mxu1 }
 0x58b   : > { %v3027_v45 = vadd.f32 %v5973_v41, %v7817_v19  ;;  %v3018_v14 = vpop.f32.mrb[97].mxu1  ;;  %v3139_v33 = vpack.c.bf16 %v2975_v36, %v2974_v24 }
 0x58c   : > { %v3019_v28 = vadd.f32 %v7817_v19, %v3018_v14  ;;  %v5974_v22 = vpop.f32.mrb[98].mxu1  ;;  %v3138_v1 = vpack.c.bf16 %v2973_v15, %v2972_v55 }
 0x58d   : > { %v3083_v54 = vmax.f32 %v3027_v45, 0.0  ;;  %v3030_v56 = vadd.f32 %v5974_v22, %v7817_v19  ;;  %v3021_v50 = vpop.f32.mrb[99].mxu1 }
 0x58e   : > { %v3081_v32 = vmax.f32 %v3019_v28, 0.0  ;;  %v3022_v31 = vadd.f32 %v7817_v19, %v3021_v50  ;;  %6015 = vmatprep.mubr.bf16.mxu0 %v3138_v1 }
 0x58f   : > { %v3084_v10 = vmax.f32 %v3030_v56, 0.0  ;;  %6016 = vmatmul.mubr.bf16.gmra.mrb[124].mxu0 %v3139_v33  ;;  %v3099_v2 = vadd.f32 %v3083_v54, %v7222_v58 }
 0x590   : > { %v3082_v40 = vmax.f32 %v3022_v31, 0.0  ;;  %v3097_v35 = vadd.f32 %v3081_v32, %v7225_v16 }
 0x591   : > { %v3100_v25 = vadd.f32 %v3084_v10, %v7228_v4 }
 0x592   : > { %v3098_v62 = vadd.f32 %v3082_v40, %v7231_v34  ;;  %v5977_v7 = vpop.f32.mrb[100].mxu1 }
 0x593   : > { %v3324_v3 = vpack.c.bf16 %v3100_v25, %v3099_v2  ;;  %v3043_v23 = vadd.f32 %v5977_v7, %v7817_v19  ;;  %v3034_v53 = vpop.f32.mrb[101].mxu1 }
 0x594   : > { %v3035_v24 = vadd.f32 %v7817_v19, %v3034_v53  ;;  %v5978_v36 = vpop.f32.mrb[102].mxu1  ;;  %v3323_v55 = vpack.c.bf16 %v3098_v62, %v3097_v35 }
 0x595   : > { %v3087_v15 = vmax.f32 %v3043_v23, 0.0  ;;  %v3046_v41 = vadd.f32 %v5978_v36, %v7817_v19  ;;  %v3037_v45 = vpop.f32.mrb[103].mxu1 }
 0x596   : > { %v3085_v14 = vmax.f32 %v3035_v24, 0.0  ;;  %v3038_v33 = vadd.f32 %v7817_v19, %v3037_v45  ;;  %6035 = vmatprep.mubr.bf16.mxu1 %v3323_v55 }
 0x597   : > { %v3088_v28 = vmax.f32 %v3046_v41, 0.0  ;;  %6036 = vmatmul.mubr.bf16.vlgmr.msra.gmra.mrb[112].mxu1 %v3324_v3  ;;  %v3103_v1 = vadd.f32 %v3087_v15, %v7242_v63 }
 0x598   : > { %v3086_v22 = vmax.f32 %v3038_v33, 0.0  ;;  %6084 = vmatpush3.bf16.msra.mxu1 %v7810_v47  ;;  %v3101_v56 = vadd.f32 %v3085_v14, %v7245_v17 }
 0x599   : > { %v3104_v54 = vadd.f32 %v3088_v28, %v7248_v48  ;;  %6085 = vmatprep.subr.bf16.mxu1 %v7833_v12 }
 0x59a   : > { %v3102_v50 = vadd.f32 %v3086_v22, %v7251_v21 }
 0x59b   : > { %v5981_v32 = vpop.f32.mrb[104].mxu1  ;;  %v3326_v31 = vpack.c.bf16 %v3104_v54, %v3103_v1 }
 0x59c   : > { %v3059_v10 = vadd.f32 %v5981_v32, %v7817_v19  ;;  %v3050_v40 = vpop.f32.mrb[105].mxu1  ;;  %v3325_v2 = vpack.c.bf16 %v3102_v50, %v3101_v56  ;;  %6086 = vmatpush3.bf16.msra.mxu1 %v7833_v12 }
 0x59d   : > { %v3051_v47 = vadd.f32 %v7817_v19, %v3050_v40  ;;  %v5982_v25 = vpop.f32.mrb[106].mxu1  ;;  %6087 = vmatprep.subr.bf16.mxu1 %v7843_v8 }
 0x59e   : > { %v3091_v35 = vmax.f32 %v3059_v10, 0.0  ;;  %v3062_v62 = vadd.f32 %v5982_v25, %v7817_v19  ;;  %v3053_v7 = vpop.f32.mrb[107].mxu1  ;;  %6039 = vmatprep.mubr.bf16.mxu1 %v3325_v2 }
 0x59f   : > { %v3089_v3 = vmax.f32 %v3051_v47, 0.0  ;;  %v3054_v23 = vadd.f32 %v7817_v19, %v3053_v7  ;;  %6040 = vmatmul.mubr.bf16.gmra.mrb[116].mxu1 %v3326_v31  ;;  %v7933_v7 = vld [vmem:[%s8453_s6 + $0x1c0] sm:$0xff]  }
 0x5a0   : > { %v3092_v53 = vmax.f32 %v3062_v62, 0.0  ;;  %6088 = vmatpush3.bf16.msra.mxu1 %v7843_v8  ;;  %v3107_v12 = vadd.f32 %v3091_v35, %v7266_v30  ;;  %v6402_v62 = vld [vmem:[%s8453_s6 + $0x1b8] sm:$0xff]  }
 0x5a1   : > { %v3090_v24 = vmax.f32 %v3054_v23, 0.0  ;;  %6089 = vmatprep.subr.bf16.mxu1 %v7855_v60  ;;  %v3105_v55 = vadd.f32 %v3089_v3, %v7269_v29  ;;  %v7940_v3 = vld [vmem:[%s8454_s7 + $0x5] ss:$0 sm:$0xff] }
 0x5a2   : > { %v3108_v36 = vadd.f32 %v3092_v53, %v7272_v26 }
 0x5a3   : > { %v3106_v15 = vadd.f32 %v3090_v24, %v7276_v57  ;;  %v5985_v41 = vpop.f32.mrb[108].mxu1 }
 0x5a4   : > { %v3075_v45 = vadd.f32 %v5985_v41, %v7817_v19  ;;  %v3066_v14 = vpop.f32.mrb[109].mxu1  ;;  %v3328_v33 = vpack.c.bf16 %v3108_v36, %v3107_v12  ;;  %6090 = vmatpush3.bf16.msra.mxu1 %v7855_v60 }
 0x5a5   : > { %v3067_v8 = vadd.f32 %v7817_v19, %v3066_v14  ;;  %v5986_v28 = vpop.f32.mrb[110].mxu1  ;;  %v3327_v22 = vpack.c.bf16 %v3106_v15, %v3105_v55  ;;  %6091 = vmatprep.subr.bf16.mxu1 %v7865_v37 }
 0x5a6   : > { %v3095_v1 = vmax.f32 %v3075_v45, 0.0  ;;  %v3078_v54 = vadd.f32 %v5986_v28, %v7817_v19  ;;  %v3069_v56 = vpop.f32.mrb[111].mxu1 }
 0x5a7   : > { %v3093_v50 = vmax.f32 %v3067_v8, 0.0  ;;  %v3070_v32 = vadd.f32 %v7817_v19, %v3069_v56  ;;  %6043 = vmatprep.mubr.bf16.mxu1 %v3327_v22  ;;  %v6400_v19 = vld [vmem:[%s8453_s6 + $0x1a8] sm:$0xff]  }
 0x5a8   : > { %v3096_v31 = vmax.f32 %v3078_v54, 0.0  ;;  %6044 = vmatmul.mubr.bf16.gmra.mrb[120].mxu1 %v3328_v33  ;;  %v3111_v60 = vadd.f32 %v3095_v1, %v7290_v59  ;;  %6061 = vmatprep.subr.bf16.mxu0 %v6400_v19 }
 0x5a9   : > { %v3094_v10 = vmax.f32 %v3070_v32, 0.0  ;;  %6092 = vmatpush3.bf16.msra.mxu1 %v7865_v37  ;;  %v3109_v2 = vadd.f32 %v3093_v50, %v7293_v11  ;;  %6062 = vmatpush3.bf16.msra.mxu0 %v6400_v19  ;;  %v6401_v37 = vld [vmem:[%s8453_s6 + $0x1b0] sm:$0xff]  }
 0x5aa   : > { %v3112_v40 = vadd.f32 %v3096_v31, %v7296_v39  ;;  %6093 = vmatprep.subr.bf16.mxu1 %v6400_v19  ;;  %6063 = vmatprep.subr.bf16.mxu0 %v6401_v37 }
 0x5ab   : > { %v3110_v47 = vadd.f32 %v3094_v10, %v7299_v0 }
 0x5ac   : > { %v3330_v25 = vpack.c.bf16 %v3112_v40, %v3111_v60 }
 0x5ad   : > { %v3329_v35 = vpack.c.bf16 %v3110_v47, %v3109_v2  ;;  %6094 = vmatpush3.bf16.msra.mxu1 %v6400_v19  ;;  %6064 = vmatpush3.bf16.msra.mxu0 %v6401_v37 }
 0x5ae   : > { %6095 = vmatprep.subr.bf16.mxu1 %v6401_v37  ;;  %6065 = vmatprep.subr.bf16.mxu0 %v6402_v62 }
 0x5af   : > { %6047 = vmatprep.mubr.bf16.mxu1 %v3329_v35  ;;  %v7956_v35 = vld [vmem:[%s8453_s6 + $0x1c8] sm:$0xff]  }
 0x5b0   : > { %6048 = vmatmul.mubr.bf16.gmra.mrb[124].mxu1 %v3330_v25 }
 0x5b1   : > { %6096 = vmatpush3.bf16.msra.mxu1 %v6401_v37  ;;  %6066 = vmatpush3.bf16.msra.mxu0 %v6402_v62 }
 0x5b2   : > { %6097 = vmatprep.subr.bf16.mxu1 %v6402_v62  ;;  %6115 = vmatprep.subr.bf16.mxu0 %v7933_v7 }
 0x5b5   : > { %6098 = vmatpush3.bf16.msra.mxu1 %v6402_v62 }
 0x5b6   : > { %6147 = vmatprep.subr.bf16.mxu1 %v7933_v7 }
 0x649   : > { %v6005_v23 = vpop.f32.mrb[112].mxu0 }
 0x64a   : > { %v3237_v53 = vadd.f32 %v6005_v23, %v7940_v3  ;;  %v3228_v24 = vpop.f32.mrb[113].mxu0 }
 0x64b   : > { %v3229_v12 = vadd.f32 %v7940_v3, %v3228_v24  ;;  %v6006_v36 = vpop.f32.mrb[114].mxu0 }
 0x64c   : > { %v3293_v55 = vmax.f32 %v3237_v53, 0.0  ;;  %v3240_v15 = vadd.f32 %v6006_v36, %v7940_v3  ;;  %v3231_v41 = vpop.f32.mrb[115].mxu0 }
 0x64d   : > { %v3291_v45 = vmax.f32 %v3229_v12, 0.0  ;;  %v3232_v14 = vadd.f32 %v7940_v3, %v3231_v41  ;;  %v7966_v12 = vld [vmem:[%s8453_s6 + $0x1d0] sm:$0xff]  }
 0x64e   : > { %v3294_v33 = vmax.f32 %v3240_v15, 0.0  ;;  %v3309_v28 = vadd.f32 %v3293_v55, %v7089_v42 }
 0x64f   : > { %v3292_v8 = vmax.f32 %v3232_v14, 0.0  ;;  %v3307_v1 = vadd.f32 %v3291_v45, %v7092_v18 }
 0x650   : > { %v3310_v22 = vadd.f32 %v3294_v33, %v7095_v5 }
 0x651   : > { %v3308_v54 = vadd.f32 %v3292_v8, %v7098_v44  ;;  %v6009_v56 = vpop.f32.mrb[116].mxu0 }
 0x652   : > { %v3480_v50 = vpack.c.bf16 %v3310_v22, %v3309_v28  ;;  %v3253_v32 = vadd.f32 %v6009_v56, %v7940_v3  ;;  %v3244_v31 = vpop.f32.mrb[117].mxu0  ;;  %v7978_v56 = vld [vmem:[%s8453_s6 + $0x1d8] sm:$0xff]  }
 0x653   : > { %v3245_v10 = vadd.f32 %v7940_v3, %v3244_v31  ;;  %v6010_v60 = vpop.f32.mrb[118].mxu0  ;;  %v3479_v40 = vpack.c.bf16 %v3308_v54, %v3307_v1 }
 0x654   : > { %v3297_v2 = vmax.f32 %v3253_v32, 0.0  ;;  %v3256_v47 = vadd.f32 %v6010_v60, %v7940_v3  ;;  %v3247_v25 = vpop.f32.mrb[119].mxu0 }
 0x655   : > { %v3295_v19 = vmax.f32 %v3245_v10, 0.0  ;;  %v3248_v37 = vadd.f32 %v7940_v3, %v3247_v25  ;;  %6067 = vmatprep.mubr.bf16.mxu0 %v3479_v40 }
 0x656   : > { %v3298_v62 = vmax.f32 %v3256_v47, 0.0  ;;  %6068 = vmatmul.mubr.bf16.vlgmr.msra.gmra.mrb[128].mxu0 %v3480_v50  ;;  %v3313_v53 = vadd.f32 %v3297_v2, %v7117_v52  ;;  %v7988_v2 = vld [vmem:[%s8453_s6 + $0x1e0] sm:$0xff]  }
 0x657   : > { %v3296_v23 = vmax.f32 %v3248_v37, 0.0  ;;  %6116 = vmatpush3.bf16.msra.mxu0 %v7933_v7  ;;  %v3311_v36 = vadd.f32 %v3295_v19, %v7125_v20 }
 0x658   : > { %v3314_v24 = vadd.f32 %v3298_v62, %v7128_v9  ;;  %6117 = vmatprep.subr.bf16.mxu0 %v7956_v35 }
 0x659   : > { %v3312_v55 = vadd.f32 %v3296_v23, %v7131_v13  ;;  %v6013_v15 = vpop.f32.mrb[120].mxu0 }
 0x65a   : > { %v3269_v41 = vadd.f32 %v6013_v15, %v7940_v3  ;;  %v3260_v45 = vpop.f32.mrb[121].mxu0  ;;  %v3482_v14 = vpack.c.bf16 %v3314_v24, %v3313_v53 }
 0x65b   : > { %v3261_v33 = vadd.f32 %v7940_v3, %v3260_v45  ;;  %v6014_v8 = vpop.f32.mrb[122].mxu0  ;;  %v3481_v28 = vpack.c.bf16 %v3312_v55, %v3311_v36  ;;  %6118 = vmatpush3.bf16.msra.mxu0 %v7956_v35 }
 0x65c   : > { %v3301_v22 = vmax.f32 %v3269_v41, 0.0  ;;  %v3272_v1 = vadd.f32 %v6014_v8, %v7940_v3  ;;  %v3263_v54 = vpop.f32.mrb[123].mxu0  ;;  %6119 = vmatprep.subr.bf16.mxu0 %v7966_v12 }
 0x65d   : > { %v3299_v50 = vmax.f32 %v3261_v33, 0.0  ;;  %v3264_v32 = vadd.f32 %v7940_v3, %v3263_v54  ;;  %6071 = vmatprep.mubr.bf16.mxu0 %v3481_v28 }
 0x65e   : > { %v3302_v31 = vmax.f32 %v3272_v1, 0.0  ;;  %6072 = vmatmul.mubr.bf16.gmra.mrb[132].mxu0 %v3482_v14  ;;  %v3317_v60 = vadd.f32 %v3301_v22, %v7158_v6 }
 0x65f   : > { %v3300_v10 = vmax.f32 %v3264_v32, 0.0  ;;  %6120 = vmatpush3.bf16.msra.mxu0 %v7966_v12  ;;  %v3315_v47 = vadd.f32 %v3299_v50, %v7167_v46 }
 0x660   : > { %v3318_v40 = vadd.f32 %v3302_v31, %v7170_v49  ;;  %6121 = vmatprep.subr.bf16.mxu0 %v7978_v56 }
 0x661   : > { %v3316_v25 = vadd.f32 %v3300_v10, %v7173_v43 }
 0x662   : > { %v6017_v19 = vpop.f32.mrb[124].mxu0  ;;  %v3484_v37 = vpack.c.bf16 %v3318_v40, %v3317_v60 }
 0x663   : > { %v3285_v62 = vadd.f32 %v6017_v19, %v7940_v3  ;;  %v3276_v23 = vpop.f32.mrb[125].mxu0  ;;  %v3483_v53 = vpack.c.bf16 %v3316_v25, %v3315_v47  ;;  %6122 = vmatpush3.bf16.msra.mxu0 %v7978_v56 }
 0x664   : > { %v3277_v24 = vadd.f32 %v7940_v3, %v3276_v23  ;;  %v6018_v36 = vpop.f32.mrb[126].mxu0  ;;  %6123 = vmatprep.subr.bf16.mxu0 %v7988_v2 }
 0x665   : > { %v3305_v55 = vmax.f32 %v3285_v62, 0.0  ;;  %v3288_v15 = vadd.f32 %v6018_v36, %v7940_v3  ;;  %v3279_v41 = vpop.f32.mrb[127].mxu0  ;;  %6075 = vmatprep.mubr.bf16.mxu0 %v3483_v53 }
 0x666   : > { %v3303_v45 = vmax.f32 %v3277_v24, 0.0  ;;  %v3280_v14 = vadd.f32 %v7940_v3, %v3279_v41  ;;  %6076 = vmatmul.mubr.bf16.gmra.mrb[136].mxu0 %v3484_v37 }
 0x667   : > { %v3306_v33 = vmax.f32 %v3288_v15, 0.0  ;;  %6124 = vmatpush3.bf16.msra.mxu0 %v7988_v2  ;;  %v3321_v28 = vadd.f32 %v3305_v55, %v7197_v27 }
 0x668   : > { %v3304_v8 = vmax.f32 %v3280_v14, 0.0  ;;  %v3319_v1 = vadd.f32 %v3303_v45, %v7200_v51 }
 0x669   : > { %v3322_v22 = vadd.f32 %v3306_v33, %v7203_v61 }
 0x66a   : > { %v3320_v54 = vadd.f32 %v3304_v8, %v7207_v38  ;;  %v6037_v50 = vpop.f32.mrb[112].mxu1 }
 0x66b   : > { %v3374_v32 = vadd.f32 %v6037_v50, %v7940_v3  ;;  %v3365_v31 = vpop.f32.mrb[113].mxu1  ;;  %v3486_v10 = vpack.c.bf16 %v3322_v22, %v3321_v28 }
 0x66c   : > { %v3366_v60 = vadd.f32 %v7940_v3, %v3365_v31  ;;  %v6038_v40 = vpop.f32.mrb[114].mxu1  ;;  %v3485_v47 = vpack.c.bf16 %v3320_v54, %v3319_v1 }
 0x66d   : > { %v3430_v25 = vmax.f32 %v3374_v32, 0.0  ;;  %v3377_v19 = vadd.f32 %v6038_v40, %v7940_v3  ;;  %v3368_v37 = vpop.f32.mrb[115].mxu1 }
 0x66e   : > { %v3428_v62 = vmax.f32 %v3366_v60, 0.0  ;;  %v3369_v23 = vadd.f32 %v7940_v3, %v3368_v37  ;;  %6079 = vmatprep.mubr.bf16.mxu0 %v3485_v47 }
 0x66f   : > { %v3431_v53 = vmax.f32 %v3377_v19, 0.0  ;;  %6080 = vmatmul.mubr.bf16.gmra.mrb[140].mxu0 %v3486_v10  ;;  %v3446_v36 = vadd.f32 %v3430_v25, %v7222_v58 }
 0x670   : > { %v3429_v24 = vmax.f32 %v3369_v23, 0.0  ;;  %v3444_v15 = vadd.f32 %v3428_v62, %v7225_v16 }
 0x671   : > { %v3447_v55 = vadd.f32 %v3431_v53, %v7228_v4 }
 0x672   : > { %v3445_v41 = vadd.f32 %v3429_v24, %v7231_v34  ;;  %v6041_v45 = vpop.f32.mrb[116].mxu1 }
 0x673   : > { %v3671_v14 = vpack.c.bf16 %v3447_v55, %v3446_v36  ;;  %v3390_v33 = vadd.f32 %v6041_v45, %v7940_v3  ;;  %v3381_v8 = vpop.f32.mrb[117].mxu1 }
 0x674   : > { %v3382_v28 = vadd.f32 %v7940_v3, %v3381_v8  ;;  %v6042_v22 = vpop.f32.mrb[118].mxu1  ;;  %v3670_v1 = vpack.c.bf16 %v3445_v41, %v3444_v15 }
 0x675   : > { %v3434_v54 = vmax.f32 %v3390_v33, 0.0  ;;  %v3393_v50 = vadd.f32 %v6042_v22, %v7940_v3  ;;  %v3384_v32 = vpop.f32.mrb[119].mxu1 }
 0x676   : > { %v3432_v31 = vmax.f32 %v3382_v28, 0.0  ;;  %v3385_v10 = vadd.f32 %v7940_v3, %v3384_v32  ;;  %6099 = vmatprep.mubr.bf16.mxu1 %v3670_v1 }
 0x677   : > { %v3435_v60 = vmax.f32 %v3393_v50, 0.0  ;;  %6100 = vmatmul.mubr.bf16.vlgmr.msra.gmra.mrb[128].mxu1 %v3671_v14  ;;  %v3450_v47 = vadd.f32 %v3434_v54, %v7242_v63 }
 0x678   : > { %v3433_v40 = vmax.f32 %v3385_v10, 0.0  ;;  %6148 = vmatpush3.bf16.msra.mxu1 %v7933_v7  ;;  %v3448_v19 = vadd.f32 %v3432_v31, %v7245_v17 }
 0x679   : > { %v3451_v25 = vadd.f32 %v3435_v60, %v7248_v48  ;;  %6149 = vmatprep.subr.bf16.mxu1 %v7956_v35 }
 0x67a   : > { %v3449_v37 = vadd.f32 %v3433_v40, %v7251_v21 }
 0x67b   : > { %v6045_v62 = vpop.f32.mrb[120].mxu1  ;;  %v3673_v23 = vpack.c.bf16 %v3451_v25, %v3450_v47 }
 0x67c   : > { %v3406_v53 = vadd.f32 %v6045_v62, %v7940_v3  ;;  %v3397_v24 = vpop.f32.mrb[121].mxu1  ;;  %v3672_v36 = vpack.c.bf16 %v3449_v37, %v3448_v19  ;;  %6150 = vmatpush3.bf16.msra.mxu1 %v7956_v35 }
 0x67d   : > { %v3398_v7 = vadd.f32 %v7940_v3, %v3397_v24  ;;  %v6046_v55 = vpop.f32.mrb[122].mxu1  ;;  %6151 = vmatprep.subr.bf16.mxu1 %v7966_v12 }
 0x67e   : > { %v3438_v15 = vmax.f32 %v3406_v53, 0.0  ;;  %v3409_v41 = vadd.f32 %v6046_v55, %v7940_v3  ;;  %v3400_v45 = vpop.f32.mrb[123].mxu1  ;;  %6103 = vmatprep.mubr.bf16.mxu1 %v3672_v36 }
 0x67f   : > { %v3436_v14 = vmax.f32 %v3398_v7, 0.0  ;;  %v3401_v33 = vadd.f32 %v7940_v3, %v3400_v45  ;;  %6104 = vmatmul.mubr.bf16.gmra.mrb[132].mxu1 %v3673_v23  ;;  %v8056_v45 = vld [vmem:[%s8453_s6 + $0x200] sm:$0xff]  }
 0x680   : > { %v3439_v8 = vmax.f32 %v3409_v41, 0.0  ;;  %6152 = vmatpush3.bf16.msra.mxu1 %v7966_v12  ;;  %v3454_v35 = vadd.f32 %v3438_v15, %v7266_v30  ;;  %v6410_v41 = vld [vmem:[%s8453_s6 + $0x1f8] sm:$0xff]  }
 0x681   : > { %v3437_v28 = vmax.f32 %v3401_v33, 0.0  ;;  %6153 = vmatprep.subr.bf16.mxu1 %v7978_v56  ;;  %v3452_v1 = vadd.f32 %v3436_v14, %v7269_v29  ;;  %v8063_v14 = vld [vmem:[%s8454_s7 + $0x6] ss:$0 sm:$0xff] }
 0x682   : > { %v3455_v22 = vadd.f32 %v3439_v8, %v7272_v26 }
 0x683   : > { %v3453_v54 = vadd.f32 %v3437_v28, %v7276_v57  ;;  %v6049_v50 = vpop.f32.mrb[124].mxu1 }
 0x684   : > { %v3422_v32 = vadd.f32 %v6049_v50, %v7940_v3  ;;  %v3413_v31 = vpop.f32.mrb[125].mxu1  ;;  %v3675_v10 = vpack.c.bf16 %v3455_v22, %v3454_v35  ;;  %6154 = vmatpush3.bf16.msra.mxu1 %v7978_v56 }
 0x685   : > { %v3414_v12 = vadd.f32 %v7940_v3, %v3413_v31  ;;  %v6050_v60 = vpop.f32.mrb[126].mxu1  ;;  %v3674_v40 = vpack.c.bf16 %v3453_v54, %v3452_v1  ;;  %6155 = vmatprep.subr.bf16.mxu1 %v7988_v2 }
 0x686   : > { %v3442_v47 = vmax.f32 %v3422_v32, 0.0  ;;  %v3425_v25 = vadd.f32 %v6050_v60, %v7940_v3  ;;  %v3416_v19 = vpop.f32.mrb[127].mxu1 }
 0x687   : > { %v3440_v37 = vmax.f32 %v3414_v12, 0.0  ;;  %v3417_v62 = vadd.f32 %v7940_v3, %v3416_v19  ;;  %6107 = vmatprep.mubr.bf16.mxu1 %v3674_v40  ;;  %v6408_v3 = vld [vmem:[%s8453_s6 + $0x1e8] sm:$0xff]  }
 0x688   : > { %v3443_v23 = vmax.f32 %v3425_v25, 0.0  ;;  %6108 = vmatmul.mubr.bf16.gmra.mrb[136].mxu1 %v3675_v10  ;;  %v3458_v56 = vadd.f32 %v3442_v47, %v7290_v59  ;;  %6125 = vmatprep.subr.bf16.mxu0 %v6408_v3 }
 0x689   : > { %v3441_v53 = vmax.f32 %v3417_v62, 0.0  ;;  %6156 = vmatpush3.bf16.msra.mxu1 %v7988_v2  ;;  %v3456_v36 = vadd.f32 %v3440_v37, %v7293_v11  ;;  %6126 = vmatpush3.bf16.msra.mxu0 %v6408_v3  ;;  %v6409_v2 = vld [vmem:[%s8453_s6 + $0x1f0] sm:$0xff]  }
 0x68a   : > { %v3459_v24 = vadd.f32 %v3443_v23, %v7296_v39  ;;  %6157 = vmatprep.subr.bf16.mxu1 %v6408_v3  ;;  %6127 = vmatprep.subr.bf16.mxu0 %v6409_v2 }
 0x68b   : > { %v3457_v7 = vadd.f32 %v3441_v53, %v7299_v0 }
 0x68c   : > { %v3677_v55 = vpack.c.bf16 %v3459_v24, %v3458_v56 }
 0x68d   : > { %v3676_v15 = vpack.c.bf16 %v3457_v7, %v3456_v36  ;;  %6158 = vmatpush3.bf16.msra.mxu1 %v6408_v3  ;;  %6128 = vmatpush3.bf16.msra.mxu0 %v6409_v2 }
 0x68e   : > { %6159 = vmatprep.subr.bf16.mxu1 %v6409_v2  ;;  %6129 = vmatprep.subr.bf16.mxu0 %v6410_v41 }
 0x68f   : > { %6111 = vmatprep.mubr.bf16.mxu1 %v3676_v15  ;;  %v8079_v15 = vld [vmem:[%s8453_s6 + $0x208] sm:$0xff]  }
 0x690   : > { %6112 = vmatmul.mubr.bf16.gmra.mrb[140].mxu1 %v3677_v55 }
 0x691   : > { %6160 = vmatpush3.bf16.msra.mxu1 %v6409_v2  ;;  %6130 = vmatpush3.bf16.msra.mxu0 %v6410_v41 }
 0x692   : > { %6161 = vmatprep.subr.bf16.mxu1 %v6410_v41  ;;  %6179 = vmatprep.subr.bf16.mxu0 %v8056_v45 }
 0x695   : > { %6162 = vmatpush3.bf16.msra.mxu1 %v6410_v41 }
 0x696   : > { %6211 = vmatprep.subr.bf16.mxu1 %v8056_v45 }
 0x729   : > { %v6069_v33 = vpop.f32.mrb[128].mxu0 }
 0x72a   : > { %v3584_v8 = vadd.f32 %v6069_v33, %v8063_v14  ;;  %v3575_v28 = vpop.f32.mrb[129].mxu0 }
 0x72b   : > { %v3576_v35 = vadd.f32 %v8063_v14, %v3575_v28  ;;  %v6070_v22 = vpop.f32.mrb[130].mxu0 }
 0x72c   : > { %v3640_v1 = vmax.f32 %v3584_v8, 0.0  ;;  %v3587_v54 = vadd.f32 %v6070_v22, %v8063_v14  ;;  %v3578_v50 = vpop.f32.mrb[131].mxu0 }
 0x72d   : > { %v3638_v32 = vmax.f32 %v3576_v35, 0.0  ;;  %v3579_v31 = vadd.f32 %v8063_v14, %v3578_v50  ;;  %v8089_v35 = vld [vmem:[%s8453_s6 + $0x210] sm:$0xff]  }
 0x72e   : > { %v3641_v10 = vmax.f32 %v3587_v54, 0.0  ;;  %v3656_v60 = vadd.f32 %v3640_v1, %v7089_v42 }
 0x72f   : > { %v3639_v12 = vmax.f32 %v3579_v31, 0.0  ;;  %v3654_v47 = vadd.f32 %v3638_v32, %v7092_v18 }
 0x730   : > { %v3657_v40 = vadd.f32 %v3641_v10, %v7095_v5 }
 0x731   : > { %v3655_v25 = vadd.f32 %v3639_v12, %v7098_v44  ;;  %v6073_v19 = vpop.f32.mrb[132].mxu0 }
 0x732   : > { %v3827_v37 = vpack.c.bf16 %v3657_v40, %v3656_v60  ;;  %v3600_v62 = vadd.f32 %v6073_v19, %v8063_v14  ;;  %v3591_v23 = vpop.f32.mrb[133].mxu0  ;;  %v8101_v19 = vld [vmem:[%s8453_s6 + $0x218] sm:$0xff]  }
 0x733   : > { %v3592_v53 = vadd.f32 %v8063_v14, %v3591_v23  ;;  %v6074_v56 = vpop.f32.mrb[134].mxu0  ;;  %v3826_v24 = vpack.c.bf16 %v3655_v25, %v3654_v47 }
 0x734   : > { %v3644_v36 = vmax.f32 %v3600_v62, 0.0  ;;  %v3603_v7 = vadd.f32 %v6074_v56, %v8063_v14  ;;  %v3594_v55 = vpop.f32.mrb[135].mxu0 }
 0x735   : > { %v3642_v3 = vmax.f32 %v3592_v53, 0.0  ;;  %v3595_v2 = vadd.f32 %v8063_v14, %v3594_v55  ;;  %6131 = vmatprep.mubr.bf16.mxu0 %v3826_v24 }
 0x736   : > { %v3645_v41 = vmax.f32 %v3603_v7, 0.0  ;;  %6132 = vmatmul.mubr.bf16.vlgmr.msra.gmra.mrb[144].mxu0 %v3827_v37  ;;  %v3660_v8 = vadd.f32 %v3644_v36, %v7117_v52  ;;  %v8111_v36 = vld [vmem:[%s8453_s6 + $0x220] sm:$0xff]  }
 0x737   : > { %v3643_v33 = vmax.f32 %v3595_v2, 0.0  ;;  %6180 = vmatpush3.bf16.msra.mxu0 %v8056_v45  ;;  %v3658_v22 = vadd.f32 %v3642_v3, %v7125_v20 }
 0x738   : > { %v3661_v28 = vadd.f32 %v3645_v41, %v7128_v9  ;;  %6181 = vmatprep.subr.bf16.mxu0 %v8079_v15 }
 0x739   : > { %v3659_v1 = vadd.f32 %v3643_v33, %v7131_v13  ;;  %v6077_v54 = vpop.f32.mrb[136].mxu0 }
 0x73a   : > { %v3616_v50 = vadd.f32 %v6077_v54, %v8063_v14  ;;  %v3607_v32 = vpop.f32.mrb[137].mxu0  ;;  %v3829_v31 = vpack.c.bf16 %v3661_v28, %v3660_v8 }
 0x73b   : > { %v3608_v10 = vadd.f32 %v8063_v14, %v3607_v32  ;;  %v6078_v12 = vpop.f32.mrb[138].mxu0  ;;  %v3828_v60 = vpack.c.bf16 %v3659_v1, %v3658_v22  ;;  %6182 = vmatpush3.bf16.msra.mxu0 %v8079_v15 }
 0x73c   : > { %v3648_v40 = vmax.f32 %v3616_v50, 0.0  ;;  %v3619_v47 = vadd.f32 %v6078_v12, %v8063_v14  ;;  %v3610_v25 = vpop.f32.mrb[139].mxu0  ;;  %6183 = vmatprep.subr.bf16.mxu0 %v8089_v35 }
 0x73d   : > { %v3646_v37 = vmax.f32 %v3608_v10, 0.0  ;;  %v3611_v62 = vadd.f32 %v8063_v14, %v3610_v25  ;;  %6135 = vmatprep.mubr.bf16.mxu0 %v3828_v60 }
 0x73e   : > { %v3649_v23 = vmax.f32 %v3619_v47, 0.0  ;;  %6136 = vmatmul.mubr.bf16.gmra.mrb[148].mxu0 %v3829_v31  ;;  %v3664_v56 = vadd.f32 %v3648_v40, %v7158_v6 }
 0x73f   : > { %v3647_v53 = vmax.f32 %v3611_v62, 0.0  ;;  %6184 = vmatpush3.bf16.msra.mxu0 %v8089_v35  ;;  %v3662_v7 = vadd.f32 %v3646_v37, %v7167_v46 }
 0x740   : > { %v3665_v24 = vadd.f32 %v3649_v23, %v7170_v49  ;;  %6185 = vmatprep.subr.bf16.mxu0 %v8101_v19 }
 0x741   : > { %v3663_v55 = vadd.f32 %v3647_v53, %v7173_v43 }
 0x742   : > { %v6081_v3 = vpop.f32.mrb[140].mxu0  ;;  %v3831_v2 = vpack.c.bf16 %v3665_v24, %v3664_v56 }
 0x743   : > { %v3632_v41 = vadd.f32 %v6081_v3, %v8063_v14  ;;  %v3623_v33 = vpop.f32.mrb[141].mxu0  ;;  %v3830_v8 = vpack.c.bf16 %v3663_v55, %v3662_v7  ;;  %6186 = vmatpush3.bf16.msra.mxu0 %v8101_v19 }
 0x744   : > { %v3624_v28 = vadd.f32 %v8063_v14, %v3623_v33  ;;  %v6082_v22 = vpop.f32.mrb[142].mxu0  ;;  %6187 = vmatprep.subr.bf16.mxu0 %v8111_v36 }
 0x745   : > { %v3652_v1 = vmax.f32 %v3632_v41, 0.0  ;;  %v3635_v54 = vadd.f32 %v6082_v22, %v8063_v14  ;;  %v3626_v50 = vpop.f32.mrb[143].mxu0  ;;  %6139 = vmatprep.mubr.bf16.mxu0 %v3830_v8 }
 0x746   : > { %v3650_v32 = vmax.f32 %v3624_v28, 0.0  ;;  %v3627_v31 = vadd.f32 %v8063_v14, %v3626_v50  ;;  %6140 = vmatmul.mubr.bf16.gmra.mrb[152].mxu0 %v3831_v2 }
 0x747   : > { %v3653_v10 = vmax.f32 %v3635_v54, 0.0  ;;  %6188 = vmatpush3.bf16.msra.mxu0 %v8111_v36  ;;  %v3668_v60 = vadd.f32 %v3652_v1, %v7197_v27 }
 0x748   : > { %v3651_v12 = vmax.f32 %v3627_v31, 0.0  ;;  %v3666_v47 = vadd.f32 %v3650_v32, %v7200_v51 }
 0x749   : > { %v3669_v40 = vadd.f32 %v3653_v10, %v7203_v61 }
 0x74a   : > { %v3667_v25 = vadd.f32 %v3651_v12, %v7207_v38  ;;  %v6101_v37 = vpop.f32.mrb[128].mxu1 }
 0x74b   : > { %v3721_v62 = vadd.f32 %v6101_v37, %v8063_v14  ;;  %v3712_v23 = vpop.f32.mrb[129].mxu1  ;;  %v3833_v53 = vpack.c.bf16 %v3669_v40, %v3668_v60 }
 0x74c   : > { %v3713_v56 = vadd.f32 %v8063_v14, %v3712_v23  ;;  %v6102_v24 = vpop.f32.mrb[130].mxu1  ;;  %v3832_v7 = vpack.c.bf16 %v3667_v25, %v3666_v47 }
 0x74d   : > { %v3777_v55 = vmax.f32 %v3721_v62, 0.0  ;;  %v3724_v3 = vadd.f32 %v6102_v24, %v8063_v14  ;;  %v3715_v2 = vpop.f32.mrb[131].mxu1 }
 0x74e   : > { %v3775_v41 = vmax.f32 %v3713_v56, 0.0  ;;  %v3716_v33 = vadd.f32 %v8063_v14, %v3715_v2  ;;  %6143 = vmatprep.mubr.bf16.mxu0 %v3832_v7 }
 0x74f   : > { %v3778_v8 = vmax.f32 %v3724_v3, 0.0  ;;  %6144 = vmatmul.mubr.bf16.gmra.mrb[156].mxu0 %v3833_v53  ;;  %v3793_v22 = vadd.f32 %v3777_v55, %v7222_v58 }
 0x750   : > { %v3776_v28 = vmax.f32 %v3716_v33, 0.0  ;;  %v3791_v54 = vadd.f32 %v3775_v41, %v7225_v16 }
 0x751   : > { %v3794_v1 = vadd.f32 %v3778_v8, %v7228_v4 }
 0x752   : > { %v3792_v50 = vadd.f32 %v3776_v28, %v7231_v34  ;;  %v6105_v32 = vpop.f32.mrb[132].mxu1 }
 0x753   : > { %v4018_v31 = vpack.c.bf16 %v3794_v1, %v3793_v22  ;;  %v3737_v10 = vadd.f32 %v6105_v32, %v8063_v14  ;;  %v3728_v12 = vpop.f32.mrb[133].mxu1 }
 0x754   : > { %v3729_v60 = vadd.f32 %v8063_v14, %v3728_v12  ;;  %v6106_v40 = vpop.f32.mrb[134].mxu1  ;;  %v4017_v47 = vpack.c.bf16 %v3792_v50, %v3791_v54 }
 0x755   : > { %v3781_v25 = vmax.f32 %v3737_v10, 0.0  ;;  %v3740_v37 = vadd.f32 %v6106_v40, %v8063_v14  ;;  %v3731_v62 = vpop.f32.mrb[135].mxu1 }
 0x756   : > { %v3779_v23 = vmax.f32 %v3729_v60, 0.0  ;;  %v3732_v53 = vadd.f32 %v8063_v14, %v3731_v62  ;;  %6163 = vmatprep.mubr.bf16.mxu1 %v4017_v47 }
 0x757   : > { %v3782_v56 = vmax.f32 %v3740_v37, 0.0  ;;  %6164 = vmatmul.mubr.bf16.vlgmr.msra.gmra.mrb[144].mxu1 %v4018_v31  ;;  %v3797_v7 = vadd.f32 %v3781_v25, %v7242_v63 }
 0x758   : > { %v3780_v24 = vmax.f32 %v3732_v53, 0.0  ;;  %6212 = vmatpush3.bf16.msra.mxu1 %v8056_v45  ;;  %v3795_v3 = vadd.f32 %v3779_v23, %v7245_v17 }
 0x759   : > { %v3798_v55 = vadd.f32 %v3782_v56, %v7248_v48  ;;  %6213 = vmatprep.subr.bf16.mxu1 %v8079_v15 }
 0x75a   : > { %v3796_v2 = vadd.f32 %v3780_v24, %v7251_v21 }
 0x75b   : > { %v6109_v41 = vpop.f32.mrb[136].mxu1  ;;  %v4020_v33 = vpack.c.bf16 %v3798_v55, %v3797_v7 }
 0x75c   : > { %v3753_v8 = vadd.f32 %v6109_v41, %v8063_v14  ;;  %v3744_v28 = vpop.f32.mrb[137].mxu1  ;;  %v4019_v22 = vpack.c.bf16 %v3796_v2, %v3795_v3  ;;  %6214 = vmatpush3.bf16.msra.mxu1 %v8079_v15 }
 0x75d   : > { %v3745_v45 = vadd.f32 %v8063_v14, %v3744_v28  ;;  %v6110_v1 = vpop.f32.mrb[138].mxu1  ;;  %6215 = vmatprep.subr.bf16.mxu1 %v8089_v35 }
 0x75e   : > { %v3785_v54 = vmax.f32 %v3753_v8, 0.0  ;;  %v3756_v50 = vadd.f32 %v6110_v1, %v8063_v14  ;;  %v3747_v32 = vpop.f32.mrb[139].mxu1  ;;  %6167 = vmatprep.mubr.bf16.mxu1 %v4019_v22 }
 0x75f   : > { %v3783_v31 = vmax.f32 %v3745_v45, 0.0  ;;  %v3748_v10 = vadd.f32 %v8063_v14, %v3747_v32  ;;  %6168 = vmatmul.mubr.bf16.gmra.mrb[148].mxu1 %v4020_v33  ;;  %v8179_v32 = vld [vmem:[%s8455_s8] sm:$0xff]  }
 0x760   : > { %v3786_v12 = vmax.f32 %v3756_v50, 0.0  ;;  %6216 = vmatpush3.bf16.msra.mxu1 %v8089_v35  ;;  %v3801_v15 = vadd.f32 %v3785_v54, %v7266_v30  ;;  %v6418_v50 = vld [vmem:[%s8453_s6 + $0x238] sm:$0xff]  }
 0x761   : > { %v3784_v60 = vmax.f32 %v3748_v10, 0.0  ;;  %6217 = vmatprep.subr.bf16.mxu1 %v8101_v19  ;;  %v3799_v47 = vadd.f32 %v3783_v31, %v7269_v29  ;;  %v8186_v31 = vld [vmem:[%s8454_s7 + $0x7] ss:$0 sm:$0xff] }
 0x762   : > { %v3802_v40 = vadd.f32 %v3786_v12, %v7272_v26 }
 0x763   : > { %v3800_v25 = vadd.f32 %v3784_v60, %v7276_v57  ;;  %v6113_v37 = vpop.f32.mrb[140].mxu1 }
 0x764   : > { %v3769_v62 = vadd.f32 %v6113_v37, %v8063_v14  ;;  %v3760_v23 = vpop.f32.mrb[141].mxu1  ;;  %v4022_v53 = vpack.c.bf16 %v3802_v40, %v3801_v15  ;;  %6218 = vmatpush3.bf16.msra.mxu1 %v8101_v19 }
 0x765   : > { %v3761_v35 = vadd.f32 %v8063_v14, %v3760_v23  ;;  %v6114_v56 = vpop.f32.mrb[142].mxu1  ;;  %v4021_v24 = vpack.c.bf16 %v3800_v25, %v3799_v47  ;;  %6219 = vmatprep.subr.bf16.mxu1 %v8111_v36 }
 0x766   : > { %v3789_v7 = vmax.f32 %v3769_v62, 0.0  ;;  %v3772_v55 = vadd.f32 %v6114_v56, %v8063_v14  ;;  %v3763_v3 = vpop.f32.mrb[143].mxu1 }
 0x767   : > { %v3787_v2 = vmax.f32 %v3761_v35, 0.0  ;;  %v3764_v41 = vadd.f32 %v8063_v14, %v3763_v3  ;;  %6171 = vmatprep.mubr.bf16.mxu1 %v4021_v24  ;;  %v6416_v14 = vld [vmem:[%s8453_s6 + $0x228] sm:$0xff]  }
 0x768   : > { %v3790_v33 = vmax.f32 %v3772_v55, 0.0  ;;  %6172 = vmatmul.mubr.bf16.gmra.mrb[152].mxu1 %v4022_v53  ;;  %v3805_v19 = vadd.f32 %v3789_v7, %v7290_v59  ;;  %6189 = vmatprep.subr.bf16.mxu0 %v6416_v14 }
 0x769   : > { %v3788_v8 = vmax.f32 %v3764_v41, 0.0  ;;  %6220 = vmatpush3.bf16.msra.mxu1 %v8111_v36  ;;  %v3803_v22 = vadd.f32 %v3787_v2, %v7293_v11  ;;  %6190 = vmatpush3.bf16.msra.mxu0 %v6416_v14  ;;  %v6417_v36 = vld [vmem:[%s8453_s6 + $0x230] sm:$0xff]  }
 0x76a   : > { %v3806_v28 = vadd.f32 %v3790_v33, %v7296_v39  ;;  %6221 = vmatprep.subr.bf16.mxu1 %v6416_v14  ;;  %6191 = vmatprep.subr.bf16.mxu0 %v6417_v36 }
 0x76b   : > { %v3804_v45 = vadd.f32 %v3788_v8, %v7299_v0 }
 0x76c   : > { %v4024_v1 = vpack.c.bf16 %v3806_v28, %v3805_v19 }
 0x76d   : > { %v4023_v54 = vpack.c.bf16 %v3804_v45, %v3803_v22  ;;  %6222 = vmatpush3.bf16.msra.mxu1 %v6416_v14  ;;  %6192 = vmatpush3.bf16.msra.mxu0 %v6417_v36 }
 0x76e   : > { %6223 = vmatprep.subr.bf16.mxu1 %v6417_v36  ;;  %6193 = vmatprep.subr.bf16.mxu0 %v6418_v50 }
 0x76f   : > { %6175 = vmatprep.mubr.bf16.mxu1 %v4023_v54  ;;  %v8202_v54 = vld [vmem:[%s8455_s8 + $0x8] sm:$0xff]  }
 0x770   : > { %6176 = vmatmul.mubr.bf16.gmra.mrb[156].mxu1 %v4024_v1 }
 0x771   : > { %6224 = vmatpush3.bf16.msra.mxu1 %v6417_v36  ;;  %6194 = vmatpush3.bf16.msra.mxu0 %v6418_v50 }
 0x772   : > { %6225 = vmatprep.subr.bf16.mxu1 %v6418_v50  ;;  %6243 = vmatprep.subr.bf16.mxu0 %v8179_v32 }
 0x775   : > { %6226 = vmatpush3.bf16.msra.mxu1 %v6418_v50 }
 0x776   : > { %6275 = vmatprep.subr.bf16.mxu1 %v8179_v32 }
 0x809   : > { %v6133_v10 = vpop.f32.mrb[144].mxu0 }
 0x80a   : > { %v3931_v12 = vadd.f32 %v6133_v10, %v8186_v31  ;;  %v3922_v60 = vpop.f32.mrb[145].mxu0 }
 0x80b   : > { %v3923_v15 = vadd.f32 %v8186_v31, %v3922_v60  ;;  %v6134_v40 = vpop.f32.mrb[146].mxu0 }
 0x80c   : > { %v3987_v47 = vmax.f32 %v3931_v12, 0.0  ;;  %v3934_v25 = vadd.f32 %v6134_v40, %v8186_v31  ;;  %v3925_v37 = vpop.f32.mrb[147].mxu0 }
 0x80d   : > { %v3985_v62 = vmax.f32 %v3923_v15, 0.0  ;;  %v3926_v23 = vadd.f32 %v8186_v31, %v3925_v37  ;;  %v8212_v15 = vld [vmem:[%s8455_s8 + $0x10] sm:$0xff]  }
 0x80e   : > { %v3988_v53 = vmax.f32 %v3934_v25, 0.0  ;;  %v4003_v56 = vadd.f32 %v3987_v47, %v7089_v42 }
 0x80f   : > { %v3986_v35 = vmax.f32 %v3926_v23, 0.0  ;;  %v4001_v7 = vadd.f32 %v3985_v62, %v7092_v18 }
 0x810   : > { %v4004_v24 = vadd.f32 %v3988_v53, %v7095_v5 }
 0x811   : > { %v4002_v55 = vadd.f32 %v3986_v35, %v7098_v44  ;;  %v6137_v3 = vpop.f32.mrb[148].mxu0 }
 0x812   : > { %v4174_v2 = vpack.c.bf16 %v4004_v24, %v4003_v56  ;;  %v3947_v41 = vadd.f32 %v6137_v3, %v8186_v31  ;;  %v3938_v33 = vpop.f32.mrb[149].mxu0  ;;  %v8224_v3 = vld [vmem:[%s8455_s8 + $0x18] sm:$0xff]  }
 0x813   : > { %v3939_v8 = vadd.f32 %v8186_v31, %v3938_v33  ;;  %v6138_v19 = vpop.f32.mrb[150].mxu0  ;;  %v4173_v28 = vpack.c.bf16 %v4002_v55, %v4001_v7 }
 0x814   : > { %v3991_v22 = vmax.f32 %v3947_v41, 0.0  ;;  %v3950_v45 = vadd.f32 %v6138_v19, %v8186_v31  ;;  %v3941_v1 = vpop.f32.mrb[151].mxu0 }
 0x815   : > { %v3989_v14 = vmax.f32 %v3939_v8, 0.0  ;;  %v3942_v36 = vadd.f32 %v8186_v31, %v3941_v1  ;;  %6195 = vmatprep.mubr.bf16.mxu0 %v4173_v28 }
 0x816   : > { %v3992_v50 = vmax.f32 %v3950_v45, 0.0  ;;  %6196 = vmatmul.mubr.bf16.vlgmr.msra.gmra.mrb[160].mxu0 %v4174_v2  ;;  %v4007_v12 = vadd.f32 %v3991_v22, %v7117_v52  ;;  %v8234_v22 = vld [vmem:[%s8455_s8 + $0x20] sm:$0xff]  }
 0x817   : > { %v3990_v10 = vmax.f32 %v3942_v36, 0.0  ;;  %6244 = vmatpush3.bf16.msra.mxu0 %v8179_v32  ;;  %v4005_v40 = vadd.f32 %v3989_v14, %v7125_v20 }
 0x818   : > { %v4008_v60 = vadd.f32 %v3992_v50, %v7128_v9  ;;  %6245 = vmatprep.subr.bf16.mxu0 %v8202_v54 }
 0x819   : > { %v4006_v47 = vadd.f32 %v3990_v10, %v7131_v13  ;;  %v6141_v25 = vpop.f32.mrb[152].mxu0 }
 0x81a   : > { %v3963_v37 = vadd.f32 %v6141_v25, %v8186_v31  ;;  %v3954_v62 = vpop.f32.mrb[153].mxu0  ;;  %v4176_v23 = vpack.c.bf16 %v4008_v60, %v4007_v12 }
 0x81b   : > { %v3955_v53 = vadd.f32 %v8186_v31, %v3954_v62  ;;  %v6142_v35 = vpop.f32.mrb[154].mxu0  ;;  %v4175_v56 = vpack.c.bf16 %v4006_v47, %v4005_v40  ;;  %6246 = vmatpush3.bf16.msra.mxu0 %v8202_v54 }
 0x81c   : > { %v3995_v24 = vmax.f32 %v3963_v37, 0.0  ;;  %v3966_v7 = vadd.f32 %v6142_v35, %v8186_v31  ;;  %v3957_v55 = vpop.f32.mrb[155].mxu0  ;;  %6247 = vmatprep.subr.bf16.mxu0 %v8212_v15 }
 0x81d   : > { %v3993_v2 = vmax.f32 %v3955_v53, 0.0  ;;  %v3958_v41 = vadd.f32 %v8186_v31, %v3957_v55  ;;  %6199 = vmatprep.mubr.bf16.mxu0 %v4175_v56 }
 0x81e   : > { %v3996_v33 = vmax.f32 %v3966_v7, 0.0  ;;  %6200 = vmatmul.mubr.bf16.gmra.mrb[164].mxu0 %v4176_v23  ;;  %v4011_v19 = vadd.f32 %v3995_v24, %v7158_v6 }
 0x81f   : > { %v3994_v8 = vmax.f32 %v3958_v41, 0.0  ;;  %6248 = vmatpush3.bf16.msra.mxu0 %v8212_v15  ;;  %v4009_v45 = vadd.f32 %v3993_v2, %v7167_v46 }
 0x820   : > { %v4012_v28 = vadd.f32 %v3996_v33, %v7170_v49  ;;  %6249 = vmatprep.subr.bf16.mxu0 %v8224_v3 }
 0x821   : > { %v4010_v1 = vadd.f32 %v3994_v8, %v7173_v43 }
 0x822   : > { %v6145_v14 = vpop.f32.mrb[156].mxu0  ;;  %v4178_v36 = vpack.c.bf16 %v4012_v28, %v4011_v19 }
 0x823   : > { %v3979_v50 = vadd.f32 %v6145_v14, %v8186_v31  ;;  %v3970_v10 = vpop.f32.mrb[157].mxu0  ;;  %v4177_v12 = vpack.c.bf16 %v4010_v1, %v4009_v45  ;;  %6250 = vmatpush3.bf16.msra.mxu0 %v8224_v3 }
 0x824   : > { %v3971_v60 = vadd.f32 %v8186_v31, %v3970_v10  ;;  %v6146_v40 = vpop.f32.mrb[158].mxu0  ;;  %6251 = vmatprep.subr.bf16.mxu0 %v8234_v22 }
 0x825   : > { %v3999_v47 = vmax.f32 %v3979_v50, 0.0  ;;  %v3982_v25 = vadd.f32 %v6146_v40, %v8186_v31  ;;  %v3973_v37 = vpop.f32.mrb[159].mxu0  ;;  %6203 = vmatprep.mubr.bf16.mxu0 %v4177_v12 }
 0x826   : > { %v3997_v62 = vmax.f32 %v3971_v60, 0.0  ;;  %v3974_v23 = vadd.f32 %v8186_v31, %v3973_v37  ;;  %6204 = vmatmul.mubr.bf16.gmra.mrb[168].mxu0 %v4178_v36 }
 0x827   : > { %v4000_v53 = vmax.f32 %v3982_v25, 0.0  ;;  %6252 = vmatpush3.bf16.msra.mxu0 %v8234_v22  ;;  %v4015_v56 = vadd.f32 %v3999_v47, %v7197_v27 }
 0x828   : > { %v3998_v35 = vmax.f32 %v3974_v23, 0.0  ;;  %v4013_v7 = vadd.f32 %v3997_v62, %v7200_v51 }
 0x829   : > { %v4016_v24 = vadd.f32 %v4000_v53, %v7203_v61 }
 0x82a   : > { %v4014_v55 = vadd.f32 %v3998_v35, %v7207_v38  ;;  %v6165_v2 = vpop.f32.mrb[144].mxu1 }
 0x82b   : > { %v4068_v41 = vadd.f32 %v6165_v2, %v8186_v31  ;;  %v4059_v33 = vpop.f32.mrb[145].mxu1  ;;  %v4180_v8 = vpack.c.bf16 %v4016_v24, %v4015_v56 }
 0x82c   : > { %v4060_v19 = vadd.f32 %v8186_v31, %v4059_v33  ;;  %v6166_v28 = vpop.f32.mrb[146].mxu1  ;;  %v4179_v45 = vpack.c.bf16 %v4014_v55, %v4013_v7 }
 0x82d   : > { %v4124_v1 = vmax.f32 %v4068_v41, 0.0  ;;  %v4071_v14 = vadd.f32 %v6166_v28, %v8186_v31  ;;  %v4062_v36 = vpop.f32.mrb[147].mxu1 }
 0x82e   : > { %v4122_v50 = vmax.f32 %v4060_v19, 0.0  ;;  %v4063_v10 = vadd.f32 %v8186_v31, %v4062_v36  ;;  %6207 = vmatprep.mubr.bf16.mxu0 %v4179_v45 }
 0x82f   : > { %v4125_v12 = vmax.f32 %v4071_v14, 0.0  ;;  %6208 = vmatmul.mubr.bf16.gmra.mrb[172].mxu0 %v4180_v8  ;;  %v4140_v40 = vadd.f32 %v4124_v1, %v7222_v58 }
 0x830   : > { %v4123_v60 = vmax.f32 %v4063_v10, 0.0  ;;  %v4138_v25 = vadd.f32 %v4122_v50, %v7225_v16 }
 0x831   : > { %v4141_v47 = vadd.f32 %v4125_v12, %v7228_v4 }
 0x832   : > { %v4139_v37 = vadd.f32 %v4123_v60, %v7231_v34  ;;  %v6169_v62 = vpop.f32.mrb[148].mxu1 }
 0x833   : > { %v4365_v23 = vpack.c.bf16 %v4141_v47, %v4140_v40  ;;  %v4084_v53 = vadd.f32 %v6169_v62, %v8186_v31  ;;  %v4075_v35 = vpop.f32.mrb[149].mxu1 }
 0x834   : > { %v4076_v56 = vadd.f32 %v8186_v31, %v4075_v35  ;;  %v6170_v24 = vpop.f32.mrb[150].mxu1  ;;  %v4364_v7 = vpack.c.bf16 %v4139_v37, %v4138_v25 }
 0x835   : > { %v4128_v55 = vmax.f32 %v4084_v53, 0.0  ;;  %v4087_v2 = vadd.f32 %v6170_v24, %v8186_v31  ;;  %v4078_v41 = vpop.f32.mrb[151].mxu1 }
 0x836   : > { %v4126_v33 = vmax.f32 %v4076_v56, 0.0  ;;  %v4079_v8 = vadd.f32 %v8186_v31, %v4078_v41  ;;  %6227 = vmatprep.mubr.bf16.mxu1 %v4364_v7 }
 0x837   : > { %v4129_v19 = vmax.f32 %v4087_v2, 0.0  ;;  %6228 = vmatmul.mubr.bf16.vlgmr.msra.gmra.mrb[160].mxu1 %v4365_v23  ;;  %v4144_v45 = vadd.f32 %v4128_v55, %v7242_v63 }
 0x838   : > { %v4127_v28 = vmax.f32 %v4079_v8, 0.0  ;;  %6276 = vmatpush3.bf16.msra.mxu1 %v8179_v32  ;;  %v4142_v14 = vadd.f32 %v4126_v33, %v7245_v17 }
 0x839   : > { %v4145_v1 = vadd.f32 %v4129_v19, %v7248_v48  ;;  %6277 = vmatprep.subr.bf16.mxu1 %v8202_v54 }
 0x83a   : > { %v4143_v36 = vadd.f32 %v4127_v28, %v7251_v21 }
 0x83b   : > { %v6173_v50 = vpop.f32.mrb[152].mxu1  ;;  %v4367_v10 = vpack.c.bf16 %v4145_v1, %v4144_v45 }
 0x83c   : > { %v4100_v12 = vadd.f32 %v6173_v50, %v8186_v31  ;;  %v4091_v60 = vpop.f32.mrb[153].mxu1  ;;  %v4366_v40 = vpack.c.bf16 %v4143_v36, %v4142_v14  ;;  %6278 = vmatpush3.bf16.msra.mxu1 %v8202_v54 }
 0x83d   : > { %v4092_v32 = vadd.f32 %v8186_v31, %v4091_v60  ;;  %v6174_v47 = vpop.f32.mrb[154].mxu1  ;;  %6279 = vmatprep.subr.bf16.mxu1 %v8212_v15 }
 0x83e   : > { %v4132_v25 = vmax.f32 %v4100_v12, 0.0  ;;  %v4103_v37 = vadd.f32 %v6174_v47, %v8186_v31  ;;  %v4094_v62 = vpop.f32.mrb[155].mxu1  ;;  %6231 = vmatprep.mubr.bf16.mxu1 %v4366_v40 }
 0x83f   : > { %v4130_v23 = vmax.f32 %v4092_v32, 0.0  ;;  %v4095_v53 = vadd.f32 %v8186_v31, %v4094_v62  ;;  %6232 = vmatmul.mubr.bf16.gmra.mrb[164].mxu1 %v4367_v10  ;;  %v8302_v62 = vld [vmem:[%s8454_s7 + $0x8] ss:$0 sm:$0xff] }
 0x840   : > { %v4133_v35 = vmax.f32 %v4103_v37, 0.0  ;;  %6280 = vmatpush3.bf16.msra.mxu1 %v8212_v15  ;;  %v4148_v54 = vadd.f32 %v4132_v25, %v7266_v30  ;;  %v6426_v37 = vld [vmem:[%s8455_s8 + $0x38] sm:$0xff]  }
 0x841   : > { %v4131_v56 = vmax.f32 %v4095_v53, 0.0  ;;  %6281 = vmatprep.subr.bf16.mxu1 %v8224_v3  ;;  %v4146_v7 = vadd.f32 %v4130_v23, %v7269_v29 }
 0x842   : > { %v4149_v24 = vadd.f32 %v4133_v35, %v7272_v26 }
 0x843   : > { %v4147_v55 = vadd.f32 %v4131_v56, %v7276_v57  ;;  %v6177_v2 = vpop.f32.mrb[156].mxu1 }
 0x844   : > { %v4116_v41 = vadd.f32 %v6177_v2, %v8186_v31  ;;  %v4107_v33 = vpop.f32.mrb[157].mxu1  ;;  %v4369_v8 = vpack.c.bf16 %v4149_v24, %v4148_v54  ;;  %6282 = vmatpush3.bf16.msra.mxu1 %v8224_v3 }
 0x845   : > { %v4108_v15 = vadd.f32 %v8186_v31, %v4107_v33  ;;  %v6178_v19 = vpop.f32.mrb[158].mxu1  ;;  %v4368_v28 = vpack.c.bf16 %v4147_v55, %v4146_v7  ;;  %6283 = vmatprep.subr.bf16.mxu1 %v8234_v22 }
 0x846   : > { %v4136_v45 = vmax.f32 %v4116_v41, 0.0  ;;  %v4119_v1 = vadd.f32 %v6178_v19, %v8186_v31  ;;  %v4110_v14 = vpop.f32.mrb[159].mxu1 }
 0x847   : > { %v4134_v36 = vmax.f32 %v4108_v15, 0.0  ;;  %v4111_v50 = vadd.f32 %v8186_v31, %v4110_v14  ;;  %6235 = vmatprep.mubr.bf16.mxu1 %v4368_v28  ;;  %v6424_v31 = vld [vmem:[%s8455_s8 + $0x28] sm:$0xff]  }
 0x848   : > { %v4137_v10 = vmax.f32 %v4119_v1, 0.0  ;;  %6236 = vmatmul.mubr.bf16.gmra.mrb[168].mxu1 %v4369_v8  ;;  %v4152_v3 = vadd.f32 %v4136_v45, %v7290_v59  ;;  %6253 = vmatprep.subr.bf16.mxu0 %v6424_v31 }
 0x849   : > { %v4135_v12 = vmax.f32 %v4111_v50, 0.0  ;;  %6284 = vmatpush3.bf16.msra.mxu1 %v8234_v22  ;;  %v4150_v40 = vadd.f32 %v4134_v36, %v7293_v11  ;;  %6254 = vmatpush3.bf16.msra.mxu0 %v6424_v31  ;;  %v6425_v22 = vld [vmem:[%s8455_s8 + $0x30] sm:$0xff]  }
 0x84a   : > { %v4153_v60 = vadd.f32 %v4137_v10, %v7296_v39  ;;  %6285 = vmatprep.subr.bf16.mxu1 %v6424_v31  ;;  %6255 = vmatprep.subr.bf16.mxu0 %v6425_v22 }
 0x84b   : > { %v4151_v32 = vadd.f32 %v4135_v12, %v7299_v0 }
 0x84c   : > { %v4371_v47 = vpack.c.bf16 %v4153_v60, %v4152_v3 }
 0x84d   : > { %v4370_v25 = vpack.c.bf16 %v4151_v32, %v4150_v40  ;;  %6286 = vmatpush3.bf16.msra.mxu1 %v6424_v31  ;;  %6256 = vmatpush3.bf16.msra.mxu0 %v6425_v22 }
 0x84e   : > { %6287 = vmatprep.subr.bf16.mxu1 %v6425_v22  ;;  %6257 = vmatprep.subr.bf16.mxu0 %v6426_v37 }
 0x84f   : > { %6239 = vmatprep.mubr.bf16.mxu1 %v4370_v25 }
 0x850   : > { %6240 = vmatmul.mubr.bf16.gmra.mrb[172].mxu1 %v4371_v47 }
 0x851   : > { %6288 = vmatpush3.bf16.msra.mxu1 %v6425_v22  ;;  %6258 = vmatpush3.bf16.msra.mxu0 %v6426_v37 }
 0x852   : > { %6289 = vmatprep.subr.bf16.mxu1 %v6426_v37 }
 0x855   : > { %6290 = vmatpush3.bf16.msra.mxu1 %v6426_v37 }
 0x8e9   : > { %v6197_v23 = vpop.f32.mrb[160].mxu0 }
 0x8ea   : > { %v4278_v53 = vadd.f32 %v6197_v23, %v8302_v62  ;;  %v4269_v35 = vpop.f32.mrb[161].mxu0 }
 0x8eb   : > { %v4270_v56 = vadd.f32 %v8302_v62, %v4269_v35  ;;  %v6198_v54 = vpop.f32.mrb[162].mxu0 }
 0x8ec   : > { %v4334_v24 = vmax.f32 %v4278_v53, 0.0  ;;  %v4281_v7 = vadd.f32 %v6198_v54, %v8302_v62  ;;  %v4272_v55 = vpop.f32.mrb[163].mxu0 }
 0x8ed   : > { %v4332_v2 = vmax.f32 %v4270_v56, 0.0  ;;  %v4273_v41 = vadd.f32 %v8302_v62, %v4272_v55 }
 0x8ee   : > { %v4335_v33 = vmax.f32 %v4281_v7, 0.0  ;;  %v4350_v15 = vadd.f32 %v4334_v24, %v7089_v42 }
 0x8ef   : > { %v4333_v8 = vmax.f32 %v4273_v41, 0.0  ;;  %v4348_v28 = vadd.f32 %v4332_v2, %v7092_v18 }
 0x8f0   : > { %v4351_v19 = vadd.f32 %v4335_v33, %v7095_v5 }
 0x8f1   : > { %v4349_v45 = vadd.f32 %v4333_v8, %v7098_v44  ;;  %v6201_v1 = vpop.f32.mrb[164].mxu0 }
 0x8f2   : > { %v4519_v14 = vpack.c.bf16 %v4351_v19, %v4350_v15  ;;  %v4294_v36 = vadd.f32 %v6201_v1, %v8302_v62  ;;  %v4285_v50 = vpop.f32.mrb[165].mxu0 }
 0x8f3   : > { %v4286_v10 = vadd.f32 %v8302_v62, %v4285_v50  ;;  %v6202_v12 = vpop.f32.mrb[166].mxu0  ;;  %v4518_v3 = vpack.c.bf16 %v4349_v45, %v4348_v28 }
 0x8f4   : > { %v4338_v60 = vmax.f32 %v4294_v36, 0.0  ;;  %v4297_v40 = vadd.f32 %v6202_v12, %v8302_v62  ;;  %v4288_v32 = vpop.f32.mrb[167].mxu0 }
 0x8f5   : > { %v4336_v42 = vmax.f32 %v4286_v10, 0.0  ;;  %v4289_v5 = vadd.f32 %v8302_v62, %v4288_v32  ;;  %6259 = vmatprep.mubr.bf16.mxu0 %v4518_v3 }
 0x8f6   : > { %v4339_v18 = vmax.f32 %v4297_v40, 0.0  ;;  %6260 = vmatmul.mubr.bf16.vlgmr.msra.gmra.mrb[176].mxu0 %v4519_v14  ;;  %v4354_v47 = vadd.f32 %v4338_v60, %v7117_v52 }
 0x8f7   : > { %v4337_v44 = vmax.f32 %v4289_v5, 0.0  ;;  %v4352_v31 = vadd.f32 %v4336_v42, %v7125_v20 }
 0x8f8   : > { %v4355_v25 = vadd.f32 %v4339_v18, %v7128_v9 }
 0x8f9   : > { %v4353_v22 = vadd.f32 %v4337_v44, %v7131_v13  ;;  %v6205_v37 = vpop.f32.mrb[168].mxu0 }
 0x8fa   : > { %v4310_v23 = vadd.f32 %v6205_v37, %v8302_v62  ;;  %v4301_v53 = vpop.f32.mrb[169].mxu0  ;;  %v4521_v35 = vpack.c.bf16 %v4355_v25, %v4354_v47 }
 0x8fb   : > { %v4302_v56 = vadd.f32 %v8302_v62, %v4301_v53  ;;  %v6206_v54 = vpop.f32.mrb[170].mxu0  ;;  %v4520_v24 = vpack.c.bf16 %v4353_v22, %v4352_v31 }
 0x8fc   : > { %v4342_v7 = vmax.f32 %v4310_v23, 0.0  ;;  %v4313_v55 = vadd.f32 %v6206_v54, %v8302_v62  ;;  %v4304_v2 = vpop.f32.mrb[171].mxu0 }
 0x8fd   : > { %v4340_v52 = vmax.f32 %v4302_v56, 0.0  ;;  %v4305_v9 = vadd.f32 %v8302_v62, %v4304_v2  ;;  %6263 = vmatprep.mubr.bf16.mxu0 %v4520_v24 }
 0x8fe   : > { %v4343_v20 = vmax.f32 %v4313_v55, 0.0  ;;  %6264 = vmatmul.mubr.bf16.gmra.mrb[180].mxu0 %v4521_v35  ;;  %v4358_v41 = vadd.f32 %v4342_v7, %v7158_v6 }
 0x8ff   : > { %v4341_v13 = vmax.f32 %v4305_v9, 0.0  ;;  %v4356_v8 = vadd.f32 %v4340_v52, %v7167_v46 }
 0x900   : > { %v4359_v33 = vadd.f32 %v4343_v20, %v7170_v49 }
 0x901   : > { %v4357_v15 = vadd.f32 %v4341_v13, %v7173_v43 }
 0x902   : > { %v6209_v19 = vpop.f32.mrb[172].mxu0  ;;  %v4523_v28 = vpack.c.bf16 %v4359_v33, %v4358_v41 }
 0x903   : > { %v4326_v45 = vadd.f32 %v6209_v19, %v8302_v62  ;;  %v4317_v1 = vpop.f32.mrb[173].mxu0  ;;  %v4522_v14 = vpack.c.bf16 %v4357_v15, %v4356_v8 }
 0x904   : > { %v4318_v36 = vadd.f32 %v8302_v62, %v4317_v1  ;;  %v6210_v50 = vpop.f32.mrb[174].mxu0 }
 0x905   : > { %v4346_v10 = vmax.f32 %v4326_v45, 0.0  ;;  %v4329_v12 = vadd.f32 %v6210_v50, %v8302_v62  ;;  %v4320_v3 = vpop.f32.mrb[175].mxu0  ;;  %6267 = vmatprep.mubr.bf16.mxu0 %v4522_v14 }
 0x906   : > { %v4344_v6 = vmax.f32 %v4318_v36, 0.0  ;;  %v4321_v49 = vadd.f32 %v8302_v62, %v4320_v3  ;;  %6268 = vmatmul.mubr.bf16.gmra.mrb[184].mxu0 %v4523_v28 }
 0x907   : > { %v4347_v46 = vmax.f32 %v4329_v12, 0.0  ;;  %v4362_v60 = vadd.f32 %v4346_v10, %v7197_v27 }
 0x908   : > { %v4345_v43 = vmax.f32 %v4321_v49, 0.0  ;;  %v4360_v32 = vadd.f32 %v4344_v6, %v7200_v51 }
 0x909   : > { %v4363_v40 = vadd.f32 %v4347_v46, %v7203_v61 }
 0x90a   : > { %v4361_v42 = vadd.f32 %v4345_v43, %v7207_v38  ;;  %v6229_v5 = vpop.f32.mrb[160].mxu1 }
 0x90b   : > { %v4415_v18 = vadd.f32 %v6229_v5, %v8302_v62  ;;  %v4406_v44 = vpop.f32.mrb[161].mxu1  ;;  %v4525_v47 = vpack.c.bf16 %v4363_v40, %v4362_v60 }
 0x90c   : > { %v4407_v25 = vadd.f32 %v8302_v62, %v4406_v44  ;;  %v6230_v31 = vpop.f32.mrb[162].mxu1  ;;  %v4524_v22 = vpack.c.bf16 %v4361_v42, %v4360_v32 }
 0x90d   : > { %v4471_v37 = vmax.f32 %v4415_v18, 0.0  ;;  %v4418_v23 = vadd.f32 %v6230_v31, %v8302_v62  ;;  %v4409_v53 = vpop.f32.mrb[163].mxu1 }
 0x90e   : > { %v4469_v27 = vmax.f32 %v4407_v25, 0.0  ;;  %v4410_v61 = vadd.f32 %v8302_v62, %v4409_v53  ;;  %6271 = vmatprep.mubr.bf16.mxu0 %v4524_v22 }
 0x90f   : > { %v4472_v51 = vmax.f32 %v4418_v23, 0.0  ;;  %6272 = vmatmul.mubr.bf16.gmra.mrb[188].mxu0 %v4525_v47  ;;  %v4487_v35 = vadd.f32 %v4471_v37, %v7222_v58 }
 0x910   : > { %v4470_v38 = vmax.f32 %v4410_v61, 0.0  ;;  %v4485_v54 = vadd.f32 %v4469_v27, %v7225_v16 }
 0x911   : > { %v4488_v56 = vadd.f32 %v4472_v51, %v7228_v4 }
 0x912   : > { %v4486_v24 = vadd.f32 %v4470_v38, %v7231_v34  ;;  %v6233_v7 = vpop.f32.mrb[164].mxu1 }
 0x913   : > { %v4694_v55 = vpack.c.bf16 %v4488_v56, %v4487_v35  ;;  %v4431_v2 = vadd.f32 %v6233_v7, %v8302_v62  ;;  %v4422_v52 = vpop.f32.mrb[165].mxu1 }
 0x914   : > { %v4423_v9 = vadd.f32 %v8302_v62, %v4422_v52  ;;  %v6234_v20 = vpop.f32.mrb[166].mxu1  ;;  %v4693_v13 = vpack.c.bf16 %v4486_v24, %v4485_v54 }
 0x915   : > { %v4475_v41 = vmax.f32 %v4431_v2, 0.0  ;;  %v4434_v33 = vadd.f32 %v6234_v20, %v8302_v62  ;;  %v4425_v8 = vpop.f32.mrb[167].mxu1 }
 0x916   : > { %v4473_v58 = vmax.f32 %v4423_v9, 0.0  ;;  %v4426_v4 = vadd.f32 %v8302_v62, %v4425_v8  ;;  %6291 = vmatprep.mubr.bf16.mxu1 %v4693_v13 }
 0x917   : > { %v4476_v16 = vmax.f32 %v4434_v33, 0.0  ;;  %6292 = vmatmul.mubr.bf16.vlgmr.msra.gmra.mrb[176].mxu1 %v4694_v55  ;;  %v4491_v15 = vadd.f32 %v4475_v41, %v7242_v63 }
 0x918   : > { %v4474_v34 = vmax.f32 %v4426_v4, 0.0  ;;  %v4489_v28 = vadd.f32 %v4473_v58, %v7245_v17 }
 0x919   : > { %v4492_v19 = vadd.f32 %v4476_v16, %v7248_v48 }
 0x91a   : > { %v4490_v45 = vadd.f32 %v4474_v34, %v7251_v21 }
 0x91b   : > { %v6237_v1 = vpop.f32.mrb[168].mxu1  ;;  %v4696_v14 = vpack.c.bf16 %v4492_v19, %v4491_v15 }
 0x91c   : > { %v4447_v36 = vadd.f32 %v6237_v1, %v8302_v62  ;;  %v4438_v50 = vpop.f32.mrb[169].mxu1  ;;  %v4695_v10 = vpack.c.bf16 %v4490_v45, %v4489_v28 }
 0x91d   : > { %v4439_v12 = vadd.f32 %v8302_v62, %v4438_v50  ;;  %v6238_v3 = vpop.f32.mrb[170].mxu1 }
 0x91e   : > { %v4479_v6 = vmax.f32 %v4447_v36, 0.0  ;;  %v4450_v49 = vadd.f32 %v6238_v3, %v8302_v62  ;;  %v4441_v46 = vpop.f32.mrb[171].mxu1  ;;  %6295 = vmatprep.mubr.bf16.mxu1 %v4695_v10 }
 0x91f   : > { %v4477_v63 = vmax.f32 %v4439_v12, 0.0  ;;  %v4442_v48 = vadd.f32 %v8302_v62, %v4441_v46  ;;  %6296 = vmatmul.mubr.bf16.gmra.mrb[180].mxu1 %v4696_v14 }
 0x920   : > { %v4480_v17 = vmax.f32 %v4450_v49, 0.0  ;;  %v4495_v43 = vadd.f32 %v4479_v6, %v7266_v30 }
 0x921   : > { %v4478_v21 = vmax.f32 %v4442_v48, 0.0  ;;  %v4493_v40 = vadd.f32 %v4477_v63, %v7269_v29 }
 0x922   : > { %v4496_v60 = vadd.f32 %v4480_v17, %v7272_v26 }
 0x923   : > { %v4494_v32 = vadd.f32 %v4478_v21, %v7276_v57  ;;  %v6241_v42 = vpop.f32.mrb[172].mxu1 }
 0x924   : > { %v4463_v5 = vadd.f32 %v6241_v42, %v8302_v62  ;;  %v4454_v18 = vpop.f32.mrb[173].mxu1  ;;  %v4698_v44 = vpack.c.bf16 %v4496_v60, %v4495_v43 }
 0x925   : > { %v4455_v47 = vadd.f32 %v8302_v62, %v4454_v18  ;;  %v6242_v25 = vpop.f32.mrb[174].mxu1  ;;  %v4697_v31 = vpack.c.bf16 %v4494_v32, %v4493_v40 }
 0x926   : > { %v4483_v22 = vmax.f32 %v4463_v5, 0.0  ;;  %v4466_v37 = vadd.f32 %v6242_v25, %v8302_v62  ;;  %v4457_v23 = vpop.f32.mrb[175].mxu1 }
 0x927   : > { %v4481_v30 = vmax.f32 %v4455_v47, 0.0  ;;  %v4458_v26 = vadd.f32 %v8302_v62, %v4457_v23  ;;  %6299 = vmatprep.mubr.bf16.mxu1 %v4697_v31  ;;  %v8371_v62 = vld [vmem:[%s8456_s9] ss:$0 sm:$0xff] }
 0x928   : > { %v4484_v29 = vmax.f32 %v4466_v37, 0.0  ;;  %6300 = vmatmul.mubr.bf16.gmra.mrb[184].mxu1 %v4698_v44  ;;  %v4499_v53 = vadd.f32 %v4483_v22, %v7290_v59 }
 0x929   : > { %v4482_v57 = vmax.f32 %v4458_v26, 0.0  ;;  %v4497_v61 = vadd.f32 %v4481_v30, %v7293_v11 }
 0x92a   : > { %v4500_v27 = vadd.f32 %v4484_v29, %v7296_v39 }
 0x92b   : > { %v4498_v51 = vadd.f32 %v4482_v57, %v7299_v0 }
 0x92c   : > { %v4700_v38 = vpack.c.bf16 %v4500_v27, %v4499_v53 }
 0x92d   : > { %v4699_v35 = vpack.c.bf16 %v4498_v51, %v4497_v61 }
 0x92f   : > { %6303 = vmatprep.mubr.bf16.mxu1 %v4699_v35 }
 0x930   : > { %6304 = vmatmul.mubr.bf16.gmra.mrb[188].mxu1 %v4700_v38 }
 0x9c9   : > { %v6261_v59 = vpop.f32.mrb[176].mxu0 }
 0x9ca   : > { %v4623_v11 = vadd.f32 %v6261_v59, %v8371_v62  ;;  %v4614_v39 = vpop.f32.mrb[177].mxu0 }
 0x9cb   : > { %v4615_v0 = vadd.f32 %v8371_v62, %v4614_v39  ;;  %v6262_v56 = vpop.f32.mrb[178].mxu0 }
 0x9cc   : > { %4679 = vst [vmem:[%s8378_s21 + $0x10] sm:$0xff] %v4623_v11  ;;  %v4626_v54 = vadd.f32 %v6262_v56, %v8371_v62  ;;  %v4617_v24 = vpop.f32.mrb[179].mxu0 }
 0x9cd   : > { %4677 = vst [vmem:[%s8378_s21] sm:$0xff] %v4615_v0  ;;  %v4618_v7 = vadd.f32 %v8371_v62, %v4617_v24 }
 0x9ce   : > { %4680 = vst [vmem:[%s8378_s21 + $0x18] sm:$0xff] %v4626_v54 }
 0x9cf   : > { %4678 = vst [vmem:[%s8378_s21 + $0x8] sm:$0xff] %v4618_v7 }
 0x9d1   : > { %v6265_v55 = vpop.f32.mrb[180].mxu0 }
 0x9d2   : > { %v4639_v2 = vadd.f32 %v6265_v55, %v8371_v62  ;;  %v4630_v52 = vpop.f32.mrb[181].mxu0 }
 0x9d3   : > { %v4631_v9 = vadd.f32 %v8371_v62, %v4630_v52  ;;  %v6266_v20 = vpop.f32.mrb[182].mxu0 }
 0x9d4   : > { %4683 = vst [vmem:[%s8378_s21 + $0x30] sm:$0xff] %v4639_v2  ;;  %v4642_v13 = vadd.f32 %v6266_v20, %v8371_v62  ;;  %v4633_v41 = vpop.f32.mrb[183].mxu0 }
 0x9d5   : > { %4681 = vst [vmem:[%s8378_s21 + $0x20] sm:$0xff] %v4631_v9  ;;  %v4634_v33 = vadd.f32 %v8371_v62, %v4633_v41 }
 0x9d6   : > { %4684 = vst [vmem:[%s8378_s21 + $0x38] sm:$0xff] %v4642_v13 }
 0x9d7   : > { %4682 = vst [vmem:[%s8378_s21 + $0x28] sm:$0xff] %v4634_v33 }
 0x9d9   : > { %v6269_v8 = vpop.f32.mrb[184].mxu0 }
 0x9da   : > { %v4655_v58 = vadd.f32 %v6269_v8, %v8371_v62  ;;  %v4646_v4 = vpop.f32.mrb[185].mxu0 }
 0x9db   : > { %v4647_v16 = vadd.f32 %v8371_v62, %v4646_v4  ;;  %v6270_v34 = vpop.f32.mrb[186].mxu0 }
 0x9dc   : > { %4687 = vst [vmem:[%s8378_s21 + $0x50] sm:$0xff] %v4655_v58  ;;  %v4658_v15 = vadd.f32 %v6270_v34, %v8371_v62  ;;  %v4649_v19 = vpop.f32.mrb[187].mxu0 }
 0x9dd   : > { %4685 = vst [vmem:[%s8378_s21 + $0x40] sm:$0xff] %v4647_v16  ;;  %v4650_v28 = vadd.f32 %v8371_v62, %v4649_v19 }
 0x9de   : > { %4688 = vst [vmem:[%s8378_s21 + $0x58] sm:$0xff] %v4658_v15 }
 0x9df   : > { %4686 = vst [vmem:[%s8378_s21 + $0x48] sm:$0xff] %v4650_v28 }
 0x9e2   : > { %v6273_v45 = vpop.f32.mrb[188].mxu0 }
 0x9e3   : > { %v4671_v1 = vadd.f32 %v6273_v45, %v8371_v62  ;;  %v4662_v14 = vpop.f32.mrb[189].mxu0 }
 0x9e4   : > { %v4663_v36 = vadd.f32 %v8371_v62, %v4662_v14  ;;  %v6274_v50 = vpop.f32.mrb[190].mxu0 }
 0x9e5   : > { %4691 = vst [vmem:[%s8378_s21 + $0x70] sm:$0xff] %v4671_v1  ;;  %v4674_v10 = vadd.f32 %v6274_v50, %v8371_v62  ;;  %v4665_v12 = vpop.f32.mrb[191].mxu0 }
 0x9e6   : > { %4689 = vst [vmem:[%s8378_s21 + $0x60] sm:$0xff] %v4663_v36  ;;  %v4666_v3 = vadd.f32 %v8371_v62, %v4665_v12 }
 0x9e7   : > { %4692 = vst [vmem:[%s8378_s21 + $0x78] sm:$0xff] %v4674_v10 }
 0x9e8   : > { %4690 = vst [vmem:[%s8378_s21 + $0x68] sm:$0xff] %v4666_v3 }
 0x9ea   : > { %v6293_v6 = vpop.f32.mrb[176].mxu1 }
 0x9eb   : > { %v4744_v49 = vadd.f32 %v6293_v6, %v8371_v62  ;;  %v4735_v46 = vpop.f32.mrb[177].mxu1 }
 0x9ec   : > { %v4736_v63 = vadd.f32 %v8371_v62, %v4735_v46  ;;  %v6294_v48 = vpop.f32.mrb[178].mxu1 }
 0x9ed   : > { %4800 = vst [vmem:[%s8378_s21 + $0x90] sm:$0xff] %v4744_v49  ;;  %v4747_v17 = vadd.f32 %v6294_v48, %v8371_v62  ;;  %v4738_v21 = vpop.f32.mrb[179].mxu1 }
 0x9ee   : > { %4798 = vst [vmem:[%s8378_s21 + $0x80] sm:$0xff] %v4736_v63  ;;  %v4739_v43 = vadd.f32 %v8371_v62, %v4738_v21 }
 0x9ef   : > { %4801 = vst [vmem:[%s8378_s21 + $0x98] sm:$0xff] %v4747_v17 }
 0x9f0   : > { %4799 = vst [vmem:[%s8378_s21 + $0x88] sm:$0xff] %v4739_v43 }
 0x9f2   : > { %v6297_v60 = vpop.f32.mrb[180].mxu1 }
 0x9f3   : > { %v4760_v40 = vadd.f32 %v6297_v60, %v8371_v62  ;;  %v4751_v32 = vpop.f32.mrb[181].mxu1 }
 0x9f4   : > { %v4752_v42 = vadd.f32 %v8371_v62, %v4751_v32  ;;  %v6298_v5 = vpop.f32.mrb[182].mxu1 }
 0x9f5   : > { %4804 = vst [vmem:[%s8378_s21 + $0xb0] sm:$0xff] %v4760_v40  ;;  %v4763_v18 = vadd.f32 %v6298_v5, %v8371_v62  ;;  %v4754_v44 = vpop.f32.mrb[183].mxu1 }
 0x9f6   : > { %4802 = vst [vmem:[%s8378_s21 + $0xa0] sm:$0xff] %v4752_v42  ;;  %v4755_v47 = vadd.f32 %v8371_v62, %v4754_v44 }
 0x9f7   : > { %4805 = vst [vmem:[%s8378_s21 + $0xb8] sm:$0xff] %v4763_v18 }
 0x9f8   : > { %4803 = vst [vmem:[%s8378_s21 + $0xa8] sm:$0xff] %v4755_v47 }
 0x9fb   : > { %v6301_v25 = vpop.f32.mrb[184].mxu1 }
 0x9fc   : > { %v4776_v31 = vadd.f32 %v6301_v25, %v8371_v62  ;;  %v4767_v22 = vpop.f32.mrb[185].mxu1 }
 0x9fd   : > { %v4768_v37 = vadd.f32 %v8371_v62, %v4767_v22  ;;  %v6302_v23 = vpop.f32.mrb[186].mxu1 }
 0x9fe   : > { %4808 = vst [vmem:[%s8378_s21 + $0xd0] sm:$0xff] %v4776_v31  ;;  %v4779_v30 = vadd.f32 %v6302_v23, %v8371_v62  ;;  %v4770_v26 = vpop.f32.mrb[187].mxu1 }
 0x9ff   : > { %4806 = vst [vmem:[%s8378_s21 + $0xc0] sm:$0xff] %v4768_v37  ;;  %v4771_v29 = vadd.f32 %v8371_v62, %v4770_v26 }
 0xa00   : > { %4809 = vst [vmem:[%s8378_s21 + $0xd8] sm:$0xff] %v4779_v30 }
 0xa01   : > { %4807 = vst [vmem:[%s8378_s21 + $0xc8] sm:$0xff] %v4771_v29 }
 0xa03   : > { %v6305_v57 = vpop.f32.mrb[188].mxu1 }
 0xa04   : > { %v4792_v53 = vadd.f32 %v6305_v57, %v8371_v62  ;;  %v4783_v27 = vpop.f32.mrb[189].mxu1 }
 0xa05   : > { %v4784_v61 = vadd.f32 %v8371_v62, %v4783_v27  ;;  %v6306_v51 = vpop.f32.mrb[190].mxu1 }
 0xa06   : > { %4812 = vst [vmem:[%s8378_s21 + $0xf0] sm:$0xff] %v4792_v53  ;;  %v4795_v38 = vadd.f32 %v6306_v51, %v8371_v62  ;;  %v4786_v35 = vpop.f32.mrb[191].mxu1 }
 0xa07   : > { %4810 = vst [vmem:[%s8378_s21 + $0xe0] sm:$0xff] %v4784_v61  ;;  %v4787_v59 = vadd.f32 %v8371_v62, %v4786_v35 }
 0xa08   : > { %4813 = vst [vmem:[%s8378_s21 + $0xf8] sm:$0xff] %v4795_v38 }
 0xa09   : > { %4811 = vst [vmem:[%s8378_s21 + $0xe8] sm:$0xff] %v4787_v59 }
 0xa0a PF: > { %s20_s13 = sadd.s32 1, %s6561_s13  }
 0xa0b   : > { %p17_p4 = scmp.ge.s32.totalorder %s20_s13, 4  }
 0xa0d   :  { %19 = sbr.rel (!%p17_p4) target bundleno = 1 (0x1), region = 109 }

</bundles_post_ra>
